<compile_context>
chip_gen: v7x
topology: tpu7x:2x2x1
jax: 0.10.0
libtpu: 0.0.40
codegen_flags: <defaults>
</compile_context>

<pallas_src>
import math
import functools

import jax
import jax.numpy as jnp
from jax import lax
from jax.experimental import pallas as pl
from jax.experimental.pallas import tpu as pltpu

_INV_SQRT2 = 0.7071067811865476  # 1/sqrt(2)


def _gelu_linear_kernel(x_ref, w_ref, b_ref, o_ref, *, bf16_gelu):
    # x_ref: (tm, K) f32  w_ref: (K, N) bf16  b_ref: (1, N) f32  o_ref: (tm, N) f32
    x = x_ref[...]
    if bf16_gelu:
        # v6e/v7x: native bf16 VPU -> evaluate the exact erf-GELU in bf16 and
        # feed it straight to the MXU (no separate f32->bf16 pack afterwards).
        xb = x.astype(jnp.bfloat16)
        g = 0.5 * xb * (1.0 + lax.erf(xb * _INV_SQRT2))
    else:
        # v5e: no bf16 VALU path -> keep GELU math in f32, cast once for MXU.
        g = (0.5 * x * (1.0 + lax.erf(x * _INV_SQRT2))).astype(jnp.bfloat16)
    acc = jnp.dot(g, w_ref[...], preferred_element_type=jnp.float32)
    o_ref[...] = (acc + b_ref[...]).astype(o_ref.dtype)


@functools.partial(jax.jit,
                   static_argnames=("tm", "bf16_gelu", "single_buffer_params"))
def _gelu_linear_impl(x, w_t_bf16, b, *, tm, bf16_gelu, single_buffer_params):
    """x: (B, S, K) f32; w_t_bf16: (K, N) bf16; b: (N,) f32 -> (B, S, N) f32."""
    B, S, K = x.shape
    N = w_t_bf16.shape[1]
    M = B * S
    x2d = x.reshape(M, K)
    b2d = b.reshape(1, N)

    grid_m = pl.cdiv(M, tm)

    # Weight / bias have a constant index_map -> they stay resident in VMEM.
    # Optionally drop their second pipeline buffer (free ~0.5 MiB of VMEM).
    if single_buffer_params:
        w_spec = pl.BlockSpec((K, N), lambda i: (0, 0),
                              pipeline_mode=pl.Buffered(1))
        b_spec = pl.BlockSpec((1, N), lambda i: (0, 0),
                              pipeline_mode=pl.Buffered(1))
    else:
        w_spec = pl.BlockSpec((K, N), lambda i: (0, 0))
        b_spec = pl.BlockSpec((1, N), lambda i: (0, 0))

    cost = pl.CostEstimate(
        flops=2 * M * K * N,
        transcendentals=M * K,
        bytes_accessed=(x2d.size * 4) + (w_t_bf16.size * 2)
        + (b.size * 4) + (M * N * 4),
    )

    out2d = pl.pallas_call(
        functools.partial(_gelu_linear_kernel, bf16_gelu=bf16_gelu),
        out_shape=jax.ShapeDtypeStruct((M, N), x.dtype),
        grid_spec=pltpu.PrefetchScalarGridSpec(
            num_scalar_prefetch=0,
            grid=(grid_m,),
            in_specs=[
                pl.BlockSpec((tm, K), lambda i: (i, 0)),
                w_spec,
                b_spec,
            ],
            out_specs=pl.BlockSpec((tm, N), lambda i: (i, 0)),
        ),
        compiler_params=pltpu.CompilerParams(
            dimension_semantics=("parallel",)),
        cost_estimate=cost,
    )(x2d, w_t_bf16, b2d)
    return out2d.reshape(B, S, N)


def _pick_config():
    """Chip-generation-aware tile size and GELU dtype."""
    try:
        kind = jax.devices()[0].device_kind.lower()
    except Exception:  # pragma: no cover - defensive only
        kind = ""
    is_v7 = ("v7" in kind) or ("7x" in kind)
    is_v6 = "v6" in kind
    # v7x (2 TCs, megacore): grid=4 -> 2 steps per TC, intra-TC DMA overlap.
    # v6e / v5e (1 TC): grid=3 finer pipeline; grid=2 would just be a serial
    # loop with exposed x DMA and ~0.35 us/step overhead.
    tm = 96 if is_v7 else 128
    bf16_gelu = is_v6 or is_v7   # bf16 VPU/EUP only on v6e and newer
    return tm, bf16_gelu


def gelu_linear(x, w_t_bf16, b):
    tm, bf16_pref = _pick_config()
    # Preferred config first; degrade gracefully if a feature (single-buffer
    # pipeline_mode hint or bf16 erf lowering) is unavailable on this
    # jax/Mosaic build. Final fallback is the previously-validated f32-GELU,
    # default-buffered configuration.
    configs = []
    for cfg in ((bf16_pref, True), (bf16_pref, False), (False, False)):
        if cfg not in configs:
            configs.append(cfg)
    last_err = None
    for bf16_gelu, single_buf in configs:
        try:
            return _gelu_linear_impl(x, w_t_bf16, b, tm=tm,
                                     bf16_gelu=bf16_gelu,
                                     single_buffer_params=single_buf)
        except Exception as e:  # noqa: BLE001 - portability fallback only
            last_err = e
    raise last_err


if __name__ == "__main__":
    key = jax.random.PRNGKey(0)
    k_x, k_w, k_b = jax.random.split(key, 3)

    B, S, K, N = 1, 384, 1024, 256
    x = jax.random.normal(k_x, (B, S, K), dtype=jnp.float32)

    # Deterministic parameter init for Linear(1024, 256): weight (N, K), bias (N,)
    bound = 1.0 / math.sqrt(K)
    w = jax.random.uniform(k_w, (N, K), minval=-bound, maxval=bound,
                           dtype=jnp.float32)
    b = jax.random.uniform(k_b, (N,), minval=-bound, maxval=bound,
                           dtype=jnp.float32)

    # Pre-transpose + pre-cast weight once (half the weight HBM bytes, bf16 MXU).
    w_t_bf16 = w.T.astype(jnp.bfloat16)

    out = gelu_linear(x, w_t_bf16, b)
    out = jax.block_until_ready(out)

    # Reference: exact-erf GELU + f32 linear. Tolerance absorbs the intentional
    # bf16 MXU operands and (on v6e/v7x) the bf16 GELU evaluation.
    ref = 0.5 * x * (1.0 + lax.erf(x * _INV_SQRT2))
    ref = jnp.einsum("bsk,nk->bsn", ref, w,
                     precision=lax.Precision.HIGHEST) + b
    assert out.shape == (B, S, N)
    assert jnp.allclose(out, ref, atol=5e-2, rtol=5e-2)

    print("KERNEL_OK")
</pallas_src>

<mosaic_0001>
module attributes {stable_mosaic.version = 11 : i64} {
  func.func @_gelu_linear_kernel(%arg0: i32, %arg1: memref<128x1024xf32, #tpu.memory_space<vmem>>, %arg2: memref<1024x256xbf16, #tpu.memory_space<vmem>>, %arg3: memref<1x256xf32, #tpu.memory_space<vmem>>, %arg4: memref<128x256xf32, #tpu.memory_space<vmem>>) attributes {dimension_semantics = [#tpu.dimension_semantics<parallel>], iteration_bounds = array<i64: 3>, scalar_prefetch = 0 : i64, scratch_operands = 0 : i64, tpu.core_type = #tpu.core_type<tc>, window_params = [{transform_indices = @transform_0, window_bounds = array<i64: 128, 1024>}, {pipeline_mode = #tpu.pipeline_mode<synchronous>, transform_indices = @transform_1, window_bounds = array<i64: 1024, 256>}, {pipeline_mode = #tpu.pipeline_mode<synchronous>, transform_indices = @transform_2, window_bounds = array<i64: 1, 256>}, {transform_indices = @transform_3, window_bounds = array<i64: 128, 256>}]} {
    %c0 = arith.constant 0 : index
    %c0_0 = arith.constant 0 : index
    %0 = vector.load %arg1[%c0, %c0_0] : memref<128x1024xf32, #tpu.memory_space<vmem>>, vector<128x1024xf32>
    %cst = arith.constant 5.000000e-01 : f32
    %1 = vector.broadcast %cst : f32 to vector<128x1024xf32>
    %2 = arith.mulf %1, %0 : vector<128x1024xf32>
    %cst_1 = arith.constant 0.707106769 : f32
    %3 = vector.broadcast %cst_1 : f32 to vector<128x1024xf32>
    %4 = arith.mulf %0, %3 : vector<128x1024xf32>
    %5 = math.erf %4 : vector<128x1024xf32>
    %cst_2 = arith.constant 1.000000e+00 : f32
    %6 = vector.broadcast %cst_2 : f32 to vector<128x1024xf32>
    %7 = arith.addf %6, %5 : vector<128x1024xf32>
    %8 = arith.mulf %2, %7 : vector<128x1024xf32>
    %9 = arith.truncf %8 : vector<128x1024xf32> to vector<128x1024xbf16>
    %c0_3 = arith.constant 0 : index
    %c0_4 = arith.constant 0 : index
    %10 = vector.load %arg2[%c0_3, %c0_4] : memref<1024x256xbf16, #tpu.memory_space<vmem>>, vector<1024x256xbf16>
    %cst_5 = arith.constant dense<0.000000e+00> : vector<128x256xf32>
    %11 = tpu.matmul %9, %10, %cst_5 {dimension_numbers = #tpu.dot_dimension_numbers<[1], [0], [0], [1], [0, 0, 1, 1], [], []>} : vector<128x1024xbf16>, vector<1024x256xbf16>, vector<128x256xf32> -> vector<128x256xf32>
    %c0_6 = arith.constant 0 : index
    %c0_7 = arith.constant 0 : index
    %12 = vector.load %arg3[%c0_6, %c0_7] : memref<1x256xf32, #tpu.memory_space<vmem>>, vector<1x256xf32>
    %13 = vector.broadcast %12 : vector<1x256xf32> to vector<128x256xf32>
    %14 = arith.addf %11, %13 : vector<128x256xf32>
    %c0_8 = arith.constant 0 : index
    %c0_9 = arith.constant 0 : index
    %15 = vector.load %arg4[%c0_8, %c0_9] : memref<128x256xf32, #tpu.memory_space<vmem>>, vector<128x256xf32>
    tpu.vector_store %arg4[%c0_8, %c0_9], %14 {strides = array<i32>} : memref<128x256xf32, #tpu.memory_space<vmem>>, vector<128x256xf32>,
    return
  }
  func.func @transform_0(%arg0: i32) -> (i32, i32) {
    %c0_i32 = arith.constant 0 : i32
    %c0_i32_0 = arith.constant 0 : i32
    return %arg0, %c0_i32 : i32, i32
  }
  func.func @transform_1(%arg0: i32) -> (i32, i32) {
    %c0_i32 = arith.constant 0 : i32
    %c0_i32_0 = arith.constant 0 : i32
    %c0_i32_1 = arith.constant 0 : i32
    return %c0_i32, %c0_i32_0 : i32, i32
  }
  func.func @transform_2(%arg0: i32) -> (i32, i32) {
    %c0_i32 = arith.constant 0 : i32
    %c0_i32_0 = arith.constant 0 : i32
    %c0_i32_1 = arith.constant 0 : i32
    return %c0_i32, %c0_i32_0 : i32, i32
  }
  func.func @transform_3(%arg0: i32) -> (i32, i32) {
    %c0_i32 = arith.constant 0 : i32
    %c0_i32_0 = arith.constant 0 : i32
    return %arg0, %c0_i32 : i32, i32
  }
}

module attributes {stable_mosaic.version = 11 : i64} {
  func.func @_gelu_linear_kernel(%arg0: i32, %arg1: memref<128x1024xf32, #tpu.memory_space<vmem>>, %arg2: memref<1024x256xbf16, #tpu.memory_space<vmem>>, %arg3: memref<1x256xf32, #tpu.memory_space<vmem>>, %arg4: memref<128x256xf32, #tpu.memory_space<vmem>>) attributes {dimension_semantics = [#tpu.dimension_semantics<parallel>], iteration_bounds = array<i64: 3>, scalar_prefetch = 0 : i64, scratch_operands = 0 : i64, tpu.core_type = #tpu.core_type<tc>, window_params = [{transform_indices = @transform_0, window_bounds = array<i64: 128, 1024>}, {pipeline_mode = #tpu.pipeline_mode<synchronous>, transform_indices = @transform_1, window_bounds = array<i64: 1024, 256>}, {pipeline_mode = #tpu.pipeline_mode<synchronous>, transform_indices = @transform_2, window_bounds = array<i64: 1, 256>}, {transform_indices = @transform_3, window_bounds = array<i64: 128, 256>}]} {
    %c0 = arith.constant 0 : index
    %c0_0 = arith.constant 0 : index
    %0 = vector.load %arg1[%c0, %c0_0] : memref<128x1024xf32, #tpu.memory_space<vmem>>, vector<128x1024xf32>
    %cst = arith.constant 5.000000e-01 : f32
    %1 = vector.broadcast %cst : f32 to vector<128x1024xf32>
    %2 = arith.mulf %1, %0 : vector<128x1024xf32>
    %cst_1 = arith.constant 0.707106769 : f32
    %3 = vector.broadcast %cst_1 : f32 to vector<128x1024xf32>
    %4 = arith.mulf %0, %3 : vector<128x1024xf32>
    %5 = math.erf %4 : vector<128x1024xf32>
    %cst_2 = arith.constant 1.000000e+00 : f32
    %6 = vector.broadcast %cst_2 : f32 to vector<128x1024xf32>
    %7 = arith.addf %6, %5 : vector<128x1024xf32>
    %8 = arith.mulf %2, %7 : vector<128x1024xf32>
    %9 = arith.truncf %8 : vector<128x1024xf32> to vector<128x1024xbf16>
    %c0_3 = arith.constant 0 : index
    %c0_4 = arith.constant 0 : index
    %10 = vector.load %arg2[%c0_3, %c0_4] : memref<1024x256xbf16, #tpu.memory_space<vmem>>, vector<1024x256xbf16>
    %cst_5 = arith.constant dense<0.000000e+00> : vector<128x256xf32>
    %11 = tpu.matmul %9, %10, %cst_5 {dimension_numbers = #tpu.dot_dimension_numbers<[1], [0], [0], [1], [0, 0, 1, 1], [], []>} : vector<128x1024xbf16>, vector<1024x256xbf16>, vector<128x256xf32> -> vector<128x256xf32>
    %c0_6 = arith.constant 0 : index
    %c0_7 = arith.constant 0 : index
    %12 = vector.load %arg3[%c0_6, %c0_7] : memref<1x256xf32, #tpu.memory_space<vmem>>, vector<1x256xf32>
    %13 = vector.broadcast %12 : vector<1x256xf32> to vector<128x256xf32>
    %14 = arith.addf %11, %13 : vector<128x256xf32>
    %c0_8 = arith.constant 0 : index
    %c0_9 = arith.constant 0 : index
    %15 = vector.load %arg4[%c0_8, %c0_9] : memref<128x256xf32, #tpu.memory_space<vmem>>, vector<128x256xf32>
    tpu.vector_store %arg4[%c0_8, %c0_9], %14 {strides = array<i32>} : memref<128x256xf32, #tpu.memory_space<vmem>>, vector<128x256xf32>,
    return
  }
  func.func @transform_0(%arg0: i32) -> (i32, i32) {
    %c0_i32 = arith.constant 0 : i32
    %c0_i32_0 = arith.constant 0 : i32
    return %arg0, %c0_i32 : i32, i32
  }
  func.func @transform_1(%arg0: i32) -> (i32, i32) {
    %c0_i32 = arith.constant 0 : i32
    %c0_i32_0 = arith.constant 0 : i32
    %c0_i32_1 = arith.constant 0 : i32
    return %c0_i32, %c0_i32_0 : i32, i32
  }
  func.func @transform_2(%arg0: i32) -> (i32, i32) {
    %c0_i32 = arith.constant 0 : i32
    %c0_i32_0 = arith.constant 0 : i32
    %c0_i32_1 = arith.constant 0 : i32
    return %c0_i32, %c0_i32_0 : i32, i32
  }
  func.func @transform_3(%arg0: i32) -> (i32, i32) {
    %c0_i32 = arith.constant 0 : i32
    %c0_i32_0 = arith.constant 0 : i32
    return %arg0, %c0_i32 : i32, i32
  }
}

</mosaic_0001>

<bundles_post_ra>
// kernel: _gelu_linear_impl.1
= control target key start
LH: loop header
LB: loop body
LE: loop exit
PB: predicated region body
PF: predicated region fallthrough
CT: control target
= control target key end

     0   :  { %8 = vsyncpa [#allocation3], 0  ;;  %s4260_s0 = inlined_call_operand.hbm [shape: f32[384,1024], index: 0, kind: input, shape index: {}]   ;;  %s4261_s1 = inlined_call_operand.hbm [shape: bf16[1024,256], index: 1, kind: input, shape index: {}]   ;;  %s4262_s2 = inlined_call_operand.hbm [shape: f32[1,256], index: 2, kind: input, shape index: {}]   ;;  %s4263_s3 = inlined_call_operand.hbm [shape: f32[384,256], index: 3, kind: output, shape index: {}]  }
   0x1   :  { %10 = vsyncpa [#allocation3 + $0x1], 0 }
   0x2   :  { %11 = vsyncpa [#allocation6], 0 }
   0x3   :  { %12 = vsyncpa [#allocation4], 0 }
   0x4   :  { %14 = vsyncpa [#allocation4 + $0x1], 0  ;;  %s3411_s12 = smov 0   ;;  %s3413_s13 = smov 0  }
   0x5   :  { %s3415_s14 = smov 0   ;;  %s3417_s15 = smov 0  }
   0x6 LB: > { %s3432_s16 = sadd.s32 4294967295, %s3379_s15   ;;  %s2422_s17 = sadd.s32 4294967294, %s3379_s15   ;;  %s3379_s15 = sphi %s3417_s15, %s4282_s15   ;;  %s3375_s14 = sphi %s3415_s14, %s4281_s14   ;;  %s3371_s13 = sphi %s3413_s13, %s4280_s13   ;;  %s3367_s12 = sphi %s3411_s12, %s4279_s12  }
   0x7   : > { %p40_p0 = scmp.ne.s32.totalorder %s3371_s13, %s3367_s12  ;;  %p4264_p1 = scmp.eq.s32.totalorder %s3432_s16, 0 }
   0x8   : > { %p112_p3 = scmp.eq.s32.totalorder %s2422_s17, 2  ;;  %p2423_p5 = scmp.ge.s32.totalorder %s3379_s15, 1 }
   0x9   : > { %p3441_p4 = por %p4264_p1, %p40_p0  ;;  %p119_p7 = scmp.lt.s32.totalorder %s3379_s15, 4 }
   0xa   : > { %p3446_p6 = por %p112_p3, %p40_p0  ;;  %s3381_s21 = smov [#allocation5]  }
   0xb   : > { %s4267_s18 = scalar_select %p3441_p4, 1, 0 }
   0xc   : > { %s4268_s19 = scalar_select %p3446_p6, 1, 0 }
   0xd   : > { %p3451_p8 = pnand %p2423_p5, %p119_p7  ;;  %s131_s22 = sshll.u32 %s3381_s21, 4  ;;  %s132_s22 = int_to_ptr.vmem [resolvable:$true] %s131_s22 }
   0xe   : > { %s3382_s24 = smov [#allocation7]   ;;  %s3223_s28 = scalar_lea.hbm %s4261_s1, 16384 }
   0xf   : > { %s4269_s20 = scalar_select %p3451_p8, 1, 0 }
  0x10   : > { %p2714_p9 = pneg %p3451_p8  ;;  %s145_s25 = sshll.u32 %s3382_s24, 4  ;;  %s3463_s25 = int_to_ptr.vmem [resolvable:$true] %s145_s25 }
  0x11   : > { %p3224_p11 = scmp.ne.s32.totalorder %s4261_s1, %s3223_s28  ;;  %p3230_p3 = scmp.lt.u32.totalorder %s3223_s28, %s4261_s1 }
  0x12   : > { %p3459_p10 = pnand %p2714_p9, %p4264_p1 }
  0x14   : > { %p3225_p12 = pneg %p3459_p10 }
  0x16   : > { %p3226_p13 = pnand %p3225_p12, %p3224_p11 }
  0x18   : > { %p3227_p0 = pneg %p3226_p13 }
  0x1a   : > { %p3232_p5 = pnand %p3230_p3, %p3227_p0 }
  0x1c   : > { %3235 = shalt.err (!%p3232_p5)
}
  0x1d   : > { %s3236_s6 = scalar_lea.vmem %s132_s22, 16384  ;;  %p3244_p2 = scmp.lt.s32.totalorder %s132_s22, %s132_s22 }
  0x1e   : > { %p3237_p7 = scmp.ne.s32.totalorder %s132_s22, %s3236_s6  ;;  %p3245_p6 = scmp.lt.s32.totalorder %s3236_s6, %s3236_s6 }
  0x20   : > { %p3239_p9 = pnand %p3237_p7, %p3225_p12  ;;  %p3246_p4 = por %p3245_p6, %p3244_p2 }
  0x22   : > { %p3240_p1 = pneg %p3239_p9 }
  0x24   : > { %p3247_p8 = pnand %p3246_p4, %p3240_p1 }
  0x26   : > { %3250 = shalt.err (!%p3247_p8)
}
  0x27   : > { %s3383_s7 = smov 128   ;;  %s3384_s8 = smov 8  }
  0x28   : > { %2717 = dma.hbm_to_vmem [thread:$0]  (!%p3459_p10), %s4261_s1, 16384, %s132_s22, [#allocation6], %s3383_s7, %s3383_s7, %s3384_s8  }
  0x29   : > { %s3251_s21 = scalar_lea.hbm %s4262_s2, 32 }
  0x2a   : > { %p3252_p11 = scmp.ne.s32.totalorder %s4262_s2, %s3251_s21  ;;  %p3258_p4 = scmp.lt.u32.totalorder %s3251_s21, %s4262_s2 }
  0x2c   : > { %p3254_p1 = pnand %p3252_p11, %p3225_p12 }
  0x2e   : > { %p3255_p2 = pneg %p3254_p1 }
  0x30   : > { %p3260_p6 = pnand %p3258_p4, %p3255_p2 }
  0x32   : > { %3263 = shalt.err (!%p3260_p6)
}
  0x33   : > { %s3264_s22 = scalar_lea.vmem %s3463_s25, 32  ;;  %p3272_p3 = scmp.lt.s32.totalorder %s3463_s25, %s3463_s25 }
  0x34   : > { %p3265_p8 = scmp.ne.s32.totalorder %s3463_s25, %s3264_s22  ;;  %p3273_p5 = scmp.lt.s32.totalorder %s3264_s22, %s3264_s22 }
  0x36   : > { %p3267_p13 = pnand %p3265_p8, %p3225_p12  ;;  %p3274_p7 = por %p3273_p5, %p3272_p3 }
  0x38   : > { %p3268_p0 = pneg %p3267_p13 }
  0x3a   : > { %p3275_p9 = pnand %p3274_p7, %p3268_p0 }
  0x3c   : > { %3278 = shalt.err (!%p3275_p9)
}
  0x3d   : > { %2720 = dma.hbm_to_vmem [thread:$0]  (!%p3459_p10), %s4262_s2, 32, %s3463_s25, [#allocation6]  }
  0x3e   : > { %s3513_s4 = sadd.s32 1, %s3379_s15   ;;  %s27_s23 = sadd.s32 1, %s3375_s14 }
  0x3f   : > { %s24_s5 = ssub.s32 %s3379_s15, %s3513_s4  ;;  %p34_p12 = scmp.ne.s32.totalorder %s3375_s14, %s3371_s13 }
  0x40   : > { %p25_p11 = scmp.eq.s32.totalorder %s24_s5, 0  ;;  %p35_p1 = scmp.eq.s32.totalorder %s3379_s15, 0 }
  0x41   : > { %p4271_p2 = scmp.eq.s32.totalorder %s3432_s16, 2  ;;  %p2731_p6 = scmp.lt.s32.totalorder %s3379_s15, 3 }
  0x42   : > { %s3529_s7 = scalar_select %p25_p11, %s3375_s14, %s27_s23  }
  0x43   : > { %p3523_p4 = por %p4271_p2, %p34_p12  ;;  %p36_p8 = por %p35_p1, %p34_p12 }
  0x44   : > { %s156_s8 = sand.u32 1, %s3375_s14   ;;  %s2571_s25 = sshll.u32 %s3379_s15, 14 }
  0x45   : > { %s2427_s9 = sshll.u32 %s156_s8, 10  ;;  %s3536_s17 = scalar_lea.hbm %s4260_s0, %s2571_s25 }
  0x46   : > { %s160_s21 = scalar_lea.vmem [#allocation2], %s2427_s9  ;;  %p3540_p10 = pnand %p2731_p6, %p36_p8 }
  0x47   : > { %s168_s24 = sshll.u32 %s160_s21, 4  ;;  %s3544_s27 = scalar_lea.sflag [#allocation3], %s156_s8  ;;  %s3538_s24 = int_to_ptr.vmem [resolvable:$true] %s168_s24 }
  0x48   : > { %s3279_s28 = scalar_lea.hbm %s3536_s17, 16384  ;;  %p3281_p0 = pneg %p3540_p10 }
  0x49   : > { %p3280_p13 = scmp.ne.s32.totalorder %s3536_s17, %s3279_s28  ;;  %s3284_s30 = scalar_lea.hbm %s4260_s0, 49152 }
  0x4a   : > { %p3285_p7 = scmp.lt.u32.totalorder %s3536_s17, %s4260_s0  ;;  %p3286_p9 = scmp.lt.u32.totalorder %s3284_s30, %s3279_s28 }
  0x4b   : > { %p3282_p3 = pnand %p3281_p0, %p3280_p13  ;;  %p3288_p11 = scmp.lt.u32.totalorder %s3279_s28, %s3536_s17 }
  0x4c   : > { %p3287_p12 = por %p3286_p9, %p3285_p7 }
  0x4d   : > { %p3283_p5 = pneg %p3282_p3 }
  0x4e   : > { %p3289_p1 = por %p3288_p11, %p3287_p12 }
  0x50   : > { %p3290_p2 = pnand %p3289_p1, %p3283_p5 }
  0x52   : > { %3293 = shalt.err (!%p3290_p2)
}
  0x53   : > { %s3294_s8 = scalar_lea.vmem %s3538_s24, 16384  ;;  %s3385_s9 = smov [#allocation2]  }
  0x54   : > { %p3295_p6 = scmp.ne.s32.totalorder %s3538_s24, %s3294_s8  ;;  %s3299_s25 = sshll.u32 %s3385_s9, 4  ;;  %s3300_s25 = int_to_ptr.vmem [resolvable:$false] %s3299_s25 }
  0x55   : > { %s3301_s10 = scalar_lea.vmem %s3300_s25, 32768  ;;  %p3302_p3 = scmp.lt.s32.totalorder %s3538_s24, %s3300_s25 }
  0x56   : > { %p3297_p8 = pnand %p3295_p6, %p3281_p0  ;;  %p3303_p7 = scmp.lt.s32.totalorder %s3301_s10, %s3294_s8 }
  0x58   : > { %p3298_p13 = pneg %p3297_p8  ;;  %p3304_p9 = por %p3303_p7, %p3302_p3 }
  0x5a   : > { %p3305_p12 = pnand %p3304_p9, %p3298_p13 }
  0x5c   : > { %3308 = shalt.err (!%p3305_p12)
}
  0x5d   : > { %s3386_s11 = smov 1024   ;;  %s3387_s21 = smov 64  }
  0x5e   : > { %2724 = dma.hbm_to_vmem [thread:$0]  (!%p3540_p10), %s3536_s17, 16384, %s3538_s24, %s3544_s27, %s3386_s11, %s3386_s11, %s3387_s21  }
  0x5f   : > { %p4274_p0 = scmp.ne.s32.totalorder %s4269_s20, 0 }
  0x60   : > { %s3575_s28 = sand.u32 (!%p4274_p0), 1, %s3371_s13   ;;  %p4275_p5 = scmp.ne.s32.totalorder (!%p4274_p0), %s4267_s18, 0 }
  0x61   : > { %180 = sbr.rel (%p4274_p0) target bundleno = 566 (0x236), region = 32  ;;  %s2432_s22 = sshll.u32 (!%p4274_p0), %s3575_s28, 10 }
  0x62   : > { %s183_s29 = scalar_lea.sflag (!%p4274_p0), [#allocation3], %s3575_s28  ;;  %s3579_s30 = scalar_lea.vmem (!%p4274_p0), [#allocation2], %s2432_s22 }
  0x68   : > { %3354 = dma.done.wait (%p4275_p5), %s183_s29, 16384  }
  0x69   : > { %3356 = vsyncadd (%p4275_p5), %s183_s29, 4294950912  ;;  %p4276_p10 = scmp.eq.s32.totalorder %s3432_s16, 0 }
  0x6b   : > { %3358 = dma.done.wait (%p4276_p10), [#allocation6], 16416   ;;  %p4277_p11 = pmov %p4276_p10 }
  0x6c   : > { %v2775_v0 = vld [vmem:[#allocation5 + $0x4] ss:$8 sps:$4 sm:$0xff]   ;;  %v2779_v2 = vld [vmem:[#allocation5] ss:$8 sps:$4 sm:$0xff]   ;;  %v2781_v4 = vld [vmem:[#allocation5 + $0x14] ss:$8 sps:$4 sm:$0xff]  }
  0x6d   : > { %3360 = vsyncadd (%p4277_p11), [#allocation6], 4294950880  ;;  %v2777_v1 = vld [vmem:[#allocation5 + $0x204] ss:$8 sps:$4 sm:$0xff]   ;;  %1831 = vmatprep.subr.bf16.mxu1 %v2775_v0  ;;  %v2780_v3 = vld [vmem:[#allocation5 + $0x200] ss:$8 sps:$4 sm:$0xff]  }
  0x6e   : > { %2057 = vmatprep.subr.bf16.mxu0 %v2777_v1  ;;  %1832 = vmatpush1.bf16.msra.mxu1 %v2779_v2  ;;  %v2783_v5 = vld [vmem:[#allocation5 + $0x214] ss:$8 sps:$4 sm:$0xff]   ;;  %v2785_v6 = vld [vmem:[#allocation5 + $0x10] ss:$8 sps:$4 sm:$0xff]   ;;  %v2787_v8 = vld [vmem:[#allocation5 + $0x24] ss:$8 sps:$4 sm:$0xff]  }
  0x6f   : > { %2058 = vmatpush1.bf16.msra.mxu0 %v2780_v3  ;;  %1833 = vmatprep.subr.bf16.mxu1 %v2781_v4  ;;  %v2786_v7 = vld [vmem:[#allocation5 + $0x210] ss:$8 sps:$4 sm:$0xff]   ;;  %v2789_v9 = vld [vmem:[#allocation5 + $0x224] ss:$8 sps:$4 sm:$0xff]   ;;  %v2791_v10 = vld [vmem:[#allocation5 + $0x20] ss:$8 sps:$4 sm:$0xff]  }
  0x70   : > { %2059 = vmatprep.subr.bf16.mxu0 %v2783_v5  ;;  %v2792_v11 = vld [vmem:[#allocation5 + $0x220] ss:$8 sps:$4 sm:$0xff]   ;;  %v2793_v12 = vld [vmem:[#allocation5 + $0x34] ss:$8 sps:$4 sm:$0xff]   ;;  %v2797_v14 = vld [vmem:[#allocation5 + $0x30] ss:$8 sps:$4 sm:$0xff]  }
  0x71   : > { %v2795_v13 = vld [vmem:[#allocation5 + $0x234] ss:$8 sps:$4 sm:$0xff]   ;;  %v2798_v15 = vld [vmem:[#allocation5 + $0x230] ss:$8 sps:$4 sm:$0xff]   ;;  %v2799_v16 = vld [vmem:[#allocation5 + $0x44] ss:$8 sps:$4 sm:$0xff]  }
  0x72   : > { %1834 = vmatpush1.bf16.msra.mxu1 %v2785_v6  ;;  %v2801_v17 = vld [vmem:[#allocation5 + $0x244] ss:$8 sps:$4 sm:$0xff]   ;;  %v2803_v18 = vld [vmem:[#allocation5 + $0x40] ss:$8 sps:$4 sm:$0xff]   ;;  %v2805_v20 = vld [vmem:[#allocation5 + $0x54] ss:$8 sps:$4 sm:$0xff]  }
  0x73   : > { %2060 = vmatpush1.bf16.msra.mxu0 %v2786_v7  ;;  %1835 = vmatprep.subr.bf16.mxu1 %v2787_v8  ;;  %v2804_v19 = vld [vmem:[#allocation5 + $0x240] ss:$8 sps:$4 sm:$0xff]   ;;  %v2807_v21 = vld [vmem:[#allocation5 + $0x254] ss:$8 sps:$4 sm:$0xff]   ;;  %v2809_v22 = vld [vmem:[#allocation5 + $0x50] ss:$8 sps:$4 sm:$0xff]  }
  0x74   : > { %2061 = vmatprep.subr.bf16.mxu0 %v2789_v9  ;;  %v2810_v23 = vld [vmem:[#allocation5 + $0x250] ss:$8 sps:$4 sm:$0xff]   ;;  %v2811_v24 = vld [vmem:[#allocation5 + $0x64] ss:$8 sps:$4 sm:$0xff]   ;;  %v2815_v26 = vld [vmem:[#allocation5 + $0x60] ss:$8 sps:$4 sm:$0xff]  }
  0x75   : > { %v2813_v25 = vld [vmem:[#allocation5 + $0x264] ss:$8 sps:$4 sm:$0xff]   ;;  %v2816_v27 = vld [vmem:[#allocation5 + $0x260] ss:$8 sps:$4 sm:$0xff]   ;;  %v2817_v28 = vld [vmem:[#allocation5 + $0x74] ss:$8 sps:$4 sm:$0xff]  }
  0x76   : > { %1836 = vmatpush1.bf16.msra.mxu1 %v2791_v10  ;;  %v2819_v29 = vld [vmem:[#allocation5 + $0x274] ss:$8 sps:$4 sm:$0xff]   ;;  %v2821_v30 = vld [vmem:[#allocation5 + $0x70] ss:$8 sps:$4 sm:$0xff]   ;;  %v2823_v32 = vld [vmem:[#allocation5 + $0x84] ss:$8 sps:$4 sm:$0xff]  }
  0x77   : > { %2062 = vmatpush1.bf16.msra.mxu0 %v2792_v11  ;;  %1837 = vmatprep.subr.bf16.mxu1 %v2793_v12  ;;  %v2822_v31 = vld [vmem:[#allocation5 + $0x270] ss:$8 sps:$4 sm:$0xff]   ;;  %v2825_v33 = vld [vmem:[#allocation5 + $0x284] ss:$8 sps:$4 sm:$0xff]   ;;  %v2827_v34 = vld [vmem:[#allocation5 + $0x80] ss:$8 sps:$4 sm:$0xff]  }
  0x78   : > { %2063 = vmatprep.subr.bf16.mxu0 %v2795_v13  ;;  %v2828_v35 = vld [vmem:[#allocation5 + $0x280] ss:$8 sps:$4 sm:$0xff]   ;;  %v2829_v36 = vld [vmem:[#allocation5 + $0x94] ss:$8 sps:$4 sm:$0xff]   ;;  %v2833_v38 = vld [vmem:[#allocation5 + $0x90] ss:$8 sps:$4 sm:$0xff]  }
  0x79   : > { %v2831_v37 = vld [vmem:[#allocation5 + $0x294] ss:$8 sps:$4 sm:$0xff]   ;;  %v2834_v39 = vld [vmem:[#allocation5 + $0x290] ss:$8 sps:$4 sm:$0xff]   ;;  %v2835_v40 = vld [vmem:[#allocation5 + $0xa4] ss:$8 sps:$4 sm:$0xff]  }
  0x7a   : > { %1838 = vmatpush1.bf16.msra.mxu1 %v2797_v14  ;;  %v2837_v41 = vld [vmem:[#allocation5 + $0x2a4] ss:$8 sps:$4 sm:$0xff]   ;;  %v2839_v42 = vld [vmem:[#allocation5 + $0xa0] ss:$8 sps:$4 sm:$0xff]   ;;  %v2841_v44 = vld [vmem:[#allocation5 + $0xb4] ss:$8 sps:$4 sm:$0xff]  }
  0x7b   : > { %2064 = vmatpush1.bf16.msra.mxu0 %v2798_v15  ;;  %1839 = vmatprep.subr.bf16.mxu1 %v2799_v16  ;;  %v2840_v43 = vld [vmem:[#allocation5 + $0x2a0] ss:$8 sps:$4 sm:$0xff]   ;;  %v2843_v45 = vld [vmem:[#allocation5 + $0x2b4] ss:$8 sps:$4 sm:$0xff]   ;;  %v2845_v46 = vld [vmem:[#allocation5 + $0xb0] ss:$8 sps:$4 sm:$0xff]  }
  0x7c   : > { %2065 = vmatprep.subr.bf16.mxu0 %v2801_v17  ;;  %v2846_v47 = vld [vmem:[#allocation5 + $0x2b0] ss:$8 sps:$4 sm:$0xff]   ;;  %v220_v48 = vld [vmem:[%s3579_s30 + $0x8] sm:$0xff]  ;;  %v219_v56 = vld [vmem:[%s3579_s30] sm:$0xff]  ;;  %s2435_s18 = sshll.u32 %s3575_s28, 8  ;;  %s2573_s17 = sshll.u32 %s3432_s16, 12 }
  0x7d   : > { %v2847_v49 = vld [vmem:[#allocation5 + $0xc4] ss:$8 sps:$4 sm:$0xff]   ;;  %v476_v51 = vmul.f32 0.70710677, %v220_v48  ;;  %v2851_v60 = vld [vmem:[#allocation5 + $0xc0] ss:$8 sps:$4 sm:$0xff]   ;;  %s4212_s16 = scalar_lea.hbm %s4263_s3, %s2573_s17 }
  0x7e   : > { %1840 = vmatpush1.bf16.msra.mxu1 %v2803_v18  ;;  %v228_v50 = vld [vmem:[%s3579_s30 + $0x48] sm:$0xff]  ;;  %v227_v59 = vld [vmem:[%s3579_s30 + $0x40] sm:$0xff]  ;;  %v475_v61 = vmul.f32 0.70710677, %v219_v56  ;;  %v2853_v0 = vld [vmem:[#allocation5 + $0xd4] ss:$8 sps:$4 sm:$0xff]  }
  0x7f   : > { %2066 = vmatpush1.bf16.msra.mxu0 %v2804_v19  ;;  %1841 = vmatprep.subr.bf16.mxu1 %v2805_v20  ;;  %v224_v52 = vld [vmem:[%s3579_s30 + $0x28] sm:$0xff]  ;;  %v484_v55 = vmul.f32 0.70710677, %v228_v50  ;;  %2967 = verf.f32 %v476_v51  ;;  %v483_v62 = vmul.f32 0.70710677, %v227_v59  ;;  %v223_v1 = vld [vmem:[%s3579_s30 + $0x20] sm:$0xff] }
  0x80   : > { %2067 = vmatprep.subr.bf16.mxu0 %v2807_v21  ;;  %v232_v53 = vld [vmem:[%s3579_s30 + $0x68] sm:$0xff]  ;;  %v480_v57 = vmul.f32 0.70710677, %v224_v52  ;;  %v231_v2 = vld [vmem:[%s3579_s30 + $0x60] sm:$0xff]  ;;  %v2855_v3 = vld [vmem:[#allocation5 + $0x2d4] ss:$8 sps:$4 sm:$0xff]  }
  0x81   : > { %v2849_v54 = vld [vmem:[#allocation5 + $0x2c4] ss:$8 sps:$4 sm:$0xff]   ;;  %v488_v58 = vmul.f32 0.70710677, %v232_v53  ;;  %2969 = verf.f32 %v484_v55  ;;  %v2852_v63 = vld [vmem:[#allocation5 + $0x2c0] ss:$8 sps:$4 sm:$0xff]  }
  0x82   : > { %1842 = vmatpush1.bf16.msra.mxu1 %v2809_v22  ;;  %2971 = verf.f32 %v480_v57  ;;  %v479_v4 = vmul.f32 0.70710677, %v223_v1  ;;  %v487_v5 = vmul.f32 0.70710677, %v231_v2  ;;  %v2857_v6 = vld [vmem:[#allocation5 + $0xd0] ss:$8 sps:$4 sm:$0xff]  }
  0x83   : > { %2068 = vmatpush1.bf16.msra.mxu0 %v2810_v23  ;;  %1843 = vmatprep.subr.bf16.mxu1 %v2811_v24  ;;  %2973 = verf.f32 %v488_v58  ;;  %v2858_v7 = vld [vmem:[#allocation5 + $0x2d0] ss:$8 sps:$4 sm:$0xff]   ;;  %v2859_v8 = vld [vmem:[#allocation5 + $0xe4] ss:$8 sps:$4 sm:$0xff]   ;;  %v2863_v12 = vld [vmem:[#allocation5 + $0xe0] ss:$8 sps:$4 sm:$0xff]  }
  0x84   : > { %2069 = vmatprep.subr.bf16.mxu0 %v2813_v25  ;;  %2975 = verf.f32 %v475_v61  ;;  %v2861_v9 = vld [vmem:[#allocation5 + $0x2e4] ss:$8 sps:$4 sm:$0xff]   ;;  %v2864_v13 = vld [vmem:[#allocation5 + $0x2e0] ss:$8 sps:$4 sm:$0xff]   ;;  %v348_v14 = vmul.f32 0.5, %v220_v48  ;;  %v356_v20 = vmul.f32 0.5, %v228_v50 }
  0x85   : > { %2977 = verf.f32 %v483_v62  ;;  %v3598_v10 = vld [vmem:[%s3579_s30 + $0x88] sm:$0xff]  ;;  %v2865_v18 = vld [vmem:[#allocation5 + $0xf4] ss:$8 sps:$4 sm:$0xff]   ;;  %v352_v21 = vmul.f32 0.5, %v224_v52  ;;  %v360_v22 = vmul.f32 0.5, %v232_v53  ;;  %v239_v51 = vld [vmem:[%s3579_s30 + $0xa0] sm:$0xff] }
  0x86   : > { %1844 = vmatpush1.bf16.msra.mxu1 %v2815_v26  ;;  %2979 = verf.f32 %v479_v4  ;;  %v3601_v11 = vld [vmem:[%s3579_s30 + $0xc8] sm:$0xff]  ;;  %v492_v15 = vmul.f32 0.70710677, %v3598_v10  ;;  %v2867_v19 = vld [vmem:[#allocation5 + $0x2f4] ss:$8 sps:$4 sm:$0xff]   ;;  %s4148_s20 = scalar_lea.vmem [#allocation8], %s2435_s18 }
  0x87   : > { %2070 = vmatpush1.bf16.msra.mxu0 %v2816_v27  ;;  %1845 = vmatprep.subr.bf16.mxu1 %v2817_v28  ;;  %2981 = verf.f32 %v487_v5  ;;  %v500_v16 = vmul.f32 0.70710677, %v3601_v11  ;;  %v3606_v23 = vld [vmem:[%s3579_s30 + $0xa8] sm:$0xff]  ;;  %v347_v27 = vmul.f32 0.5, %v219_v56  ;;  %v355_v28 = vmul.f32 0.5, %v227_v59  ;;  %v247_v56 = vld [vmem:[%s3579_s30 + $0xe0] sm:$0xff] }
  0x88   : > { %2071 = vmatprep.subr.bf16.mxu0 %v2819_v29  ;;  %v3609_v24 = vld [vmem:[%s3579_s30 + $0xe8] sm:$0xff]  ;;  %2983 = verf.f32 %v492_v15  ;;  %v3612_v29 = vld [vmem:[%s3579_s30 + $0x80] sm:$0xff]  ;;  %v372_v5 = vmul.f32 0.5, %v3601_v11  ;;  %s2330_s24 = sshll.u32 %s4148_s20, 4  ;;  %s2316_s23 = scalar_lea.sflag [#allocation4], %s3575_s28  ;;  %s4214_s24 = int_to_ptr.vmem [resolvable:$true] %s2330_s24 }
  0x89   : > { %v2968_v17 = vpop.eup %2967  ;;  %2985 = verf.f32 %v500_v16  ;;  %v2871_v59 = vld [vmem:[#allocation5 + $0x100] ss:$8 sps:$4 sm:$0xff]   ;;  %v2876_v61 = vld [vmem:[#allocation5 + $0x304] ss:$8 sps:$4 sm:$0xff]   ;;  %v363_v11 = vmul.f32 0.5, %v3612_v29  ;;  %s3309_s5 = scalar_lea.vmem %s4214_s24, 4096 }
  0x8a   : > { %1846 = vmatpush1.bf16.msra.mxu1 %v2821_v30  ;;  %v732_v26 = vadd.f32 1.0, %v2968_v17  ;;  %v2874_v4 = vld [vmem:[#allocation5 + $0x300] ss:$8 sps:$4 sm:$0xff]   ;;  %v2877_v17 = vld [vmem:[#allocation5 + $0x110] ss:$8 sps:$4 sm:$0xff]   ;;  %p3310_p1 = scmp.ne.s32.totalorder %s4214_s24, %s3309_s5  ;;  %s3388_s8 = smov [#allocation8]  }
  0x8b   : > { %2072 = vmatpush1.bf16.msra.mxu0 %v2822_v31  ;;  %1847 = vmatprep.subr.bf16.mxu1 %v2823_v32  ;;  %v2970_v25 = vpop.eup %2969  ;;  %v496_v32 = vmul.f32 0.70710677, %v3606_v23  ;;  %v260_v15 = vld [vmem:[%s3579_s30 + $0x148] sm:$0xff]  ;;  %s3313_s9 = sshll.u32 %s3388_s8, 4  ;;  %s3314_s9 = int_to_ptr.vmem [resolvable:$false] %s3313_s9 }
  0x8c   : > { %2073 = vmatprep.subr.bf16.mxu0 %v2825_v33  ;;  %v2972_v30 = vpop.eup %2971  ;;  %v740_v31 = vadd.f32 1.0, %v2970_v25  ;;  %v504_v33 = vmul.f32 0.70710677, %v3609_v24  ;;  %p3311_p2 = pnand %p3310_p1, %p3523_p4  ;;  %s3315_s25 = scalar_lea.vmem %s3314_s9, 8192 }
  0x8d   : > { %2987 = verf.f32 %v496_v32  ;;  %v259_v32 = vld [vmem:[%s3579_s30 + $0x140] sm:$0xff]  ;;  %p3316_p8 = scmp.lt.s32.totalorder %s4214_s24, %s3314_s9  ;;  %p3317_p13 = scmp.lt.s32.totalorder %s3315_s25, %s3309_s5 }
  0x8e   : > { %1848 = vmatpush1.bf16.msra.mxu1 %v2827_v34  ;;  %v243_v34 = vld [vmem:[%s3579_s30 + $0xc0] sm:$0xff]  ;;  %2989 = verf.f32 %v504_v33  ;;  %p3312_p6 = pneg %p3311_p2 }
  0x8f   : > { %2074 = vmatpush1.bf16.msra.mxu0 %v2828_v35  ;;  %1849 = vmatprep.subr.bf16.mxu1 %v2829_v36  ;;  %v2974_v35 = vpop.eup %2973  ;;  %v2869_v36 = vld [vmem:[#allocation5 + $0xf0] ss:$8 sps:$4 sm:$0xff]   ;;  %v499_v50 = vmul.f32 0.70710677, %v243_v34  ;;  %p3318_p3 = por %p3317_p13, %p3316_p8 }
  0x90   : > { %2075 = vmatprep.subr.bf16.mxu0 %v2831_v37  ;;  %v2870_v37 = vld [vmem:[#allocation5 + $0x2f0] ss:$8 sps:$4 sm:$0xff]  }
  0x91   : > { %p3319_p7 = pnand %p3318_p3, %p3312_p6 }
  0x92   : > { %1850 = vmatpush1.bf16.msra.mxu1 %v2833_v38  ;;  %v860_v38 = vmul.f32 %v732_v26, %v348_v14  ;;  %v252_v14 = vld [vmem:[%s3579_s30 + $0x108] sm:$0xff]  ;;  %v516_v26 = vmul.f32 0.70710677, %v260_v15 }
  0x93   : > { %2076 = vmatpush1.bf16.msra.mxu0 %v2834_v39  ;;  %1851 = vmatprep.subr.bf16.mxu1 %v2835_v40  ;;  %v736_v39 = vadd.f32 1.0, %v2972_v30  ;;  %v351_v40 = vmul.f32 0.5, %v223_v1  ;;  %v2879_v1 = vld [vmem:[#allocation5 + $0x114] ss:$8 sps:$4 sm:$0xff]   ;;  %v3631_v30 = vmul.f32 0.5, %v239_v51 }
  0x94   : > { %2077 = vmatprep.subr.bf16.mxu0 %v2837_v41  ;;  %v359_v41 = vmul.f32 0.5, %v231_v2  ;;  %v364_v2 = vmul.f32 0.5, %v3598_v10  ;;  %v376_v10 = vmul.f32 0.5, %v3609_v24  ;;  %v2885_v24 = vld [vmem:[#allocation5 + $0x124] ss:$8 sps:$4 sm:$0xff]  }
  0x95   : > { %v864_v48 = vmul.f32 %v736_v39, %v352_v21  ;;  %v264_v21 = vld [vmem:[%s3579_s30 + $0x168] sm:$0xff] }
  0x96   : > { %1852 = vmatpush1.bf16.msra.mxu1 %v2839_v42  ;;  %v2976_v42 = vpop.eup %2975 }
  0x97   : > { %2078 = vmatpush1.bf16.msra.mxu0 %v2840_v43  ;;  %1853 = vmatprep.subr.bf16.mxu1 %v2841_v44  ;;  %v868_v43 = vmul.f32 %v740_v31, %v356_v20  ;;  %v744_v44 = vadd.f32 1.0, %v2974_v35  ;;  %v256_v20 = vld [vmem:[%s3579_s30 + $0x128] sm:$0xff]  ;;  %v251_v31 = vld [vmem:[%s3579_s30 + $0x100] sm:$0xff] }
  0x98   : > { %2079 = vmatprep.subr.bf16.mxu0 %v2843_v45  ;;  %v2873_v45 = vld [vmem:[#allocation5 + $0x104] ss:$8 sps:$4 sm:$0xff]  }
  0x99   : > { %v988_v53 = vpack.c.bf16 %v868_v43, %v860_v38  ;;  %v2888_v35 = vld [vmem:[#allocation5 + $0x324] ss:$8 sps:$4 sm:$0xff]   ;;  %v3639_v43 = vmul.f32 0.5, %v260_v15 }
  0x9a   : > { %1854 = vmatpush1.bf16.msra.mxu1 %v2845_v46  ;;  %v491_v46 = vmul.f32 0.70710677, %v3612_v29  ;;  %v3633_v29 = vmul.f32 0.5, %v247_v56 }
  0x9b   : > { %2080 = vmatpush1.bf16.msra.mxu0 %v2846_v47  ;;  %1855 = vmatprep.subr.bf16.mxu1 %v2847_v49  ;;  %v2978_v47 = vpop.eup %2977  ;;  %v731_v49 = vadd.f32 1.0, %v2976_v42  ;;  %v3637_v42 = vmul.f32 0.5, %v252_v14 }
  0x9c   : > { %2081 = vmatprep.subr.bf16.mxu0 %v2849_v54  ;;  %v2980_v52 = vpop.eup %2979  ;;  %v872_v54 = vmul.f32 %v744_v44, %v360_v22  ;;  %v739_v55 = vadd.f32 1.0, %v2978_v47  ;;  %2991 = verf.f32 %v491_v46  ;;  %1863 = vmatprep.mubr.bf16.mxu1 %v988_v53  ;;  %v255_v44 = vld [vmem:[%s3579_s30 + $0x120] sm:$0xff]  ;;  %v507_v47 = vmul.f32 0.70710677, %v251_v31 }
  0x9d   : > { %v2982_v57 = vpop.eup %2981  ;;  %v859_v58 = vmul.f32 %v731_v49, %v347_v27  ;;  %2993 = verf.f32 %v499_v50  ;;  %v2880_v27 = vld [vmem:[#allocation5 + $0x310] ss:$8 sps:$4 sm:$0xff]   ;;  %v2886_v53 = vld [vmem:[#allocation5 + $0x320] ss:$8 sps:$4 sm:$0xff]  }
  0x9e   : > { %1856 = vmatpush1.bf16.msra.mxu1 %v2851_v60  ;;  %v735_v60 = vadd.f32 1.0, %v2980_v52  ;;  %v992_v62 = vpack.c.bf16 %v872_v54, %v864_v48  ;;  %v2984_v16 = vpop.eup %2983  ;;  %v515_v48 = vmul.f32 0.70710677, %v259_v32  ;;  %v263_v54 = vld [vmem:[%s3579_s30 + $0x160] sm:$0xff] }
  0x9f   : > { %2082 = vmatpush1.bf16.msra.mxu0 %v2852_v63  ;;  %1857 = vmatprep.subr.bf16.mxu1 %v2853_v0  ;;  %v867_v63 = vmul.f32 %v739_v55, %v355_v28  ;;  %v743_v0 = vadd.f32 1.0, %v2982_v57  ;;  %v2986_v22 = vpop.eup %2985  ;;  %v748_v25 = vadd.f32 1.0, %v2984_v16  ;;  %v2891_v57 = vld [vmem:[#allocation5 + $0x134] ss:$8 sps:$4 sm:$0xff]  }
  0xa0   : > { %2083 = vmatprep.subr.bf16.mxu0 %v2855_v3  ;;  %v863_v3 = vmul.f32 %v735_v60, %v351_v40  ;;  %2089 = vmatprep.mubr.bf16.mxu0 %v992_v62  ;;  %v756_v28 = vadd.f32 1.0, %v2986_v22  ;;  %v2988_v33 = vpop.eup %2987  ;;  %v3645_v62 = vmul.f32 0.5, %v264_v21 }
  0xa1   : > { %v2990_v38 = vpop.eup %2989  ;;  %v752_v40 = vadd.f32 1.0, %v2988_v33 }
  0xa2   : > { %1858 = vmatpush1.bf16.msra.mxu1 %v2857_v6  ;;  %v495_v6 = vmul.f32 0.70710677, %v239_v51  ;;  %v884_v39 = vmul.f32 %v756_v28, %v372_v5  ;;  %v760_v46 = vadd.f32 1.0, %v2990_v38  ;;  %v519_v5 = vmul.f32 0.70710677, %v263_v54 }
  0xa3   : > { %2084 = vmatpush1.bf16.msra.mxu0 %v2858_v7  ;;  %1859 = vmatprep.subr.bf16.mxu1 %v2859_v8  ;;  %v503_v7 = vmul.f32 0.70710677, %v247_v56  ;;  %v987_v8 = vpack.c.bf16 %v867_v63, %v859_v58  ;;  %v2894_v58 = vld [vmem:[#allocation5 + $0x334] ss:$8 sps:$4 sm:$0xff]   ;;  %v511_v63 = vmul.f32 0.70710677, %v255_v44 }
  0xa4   : > { %2085 = vmatprep.subr.bf16.mxu0 %v2861_v9  ;;  %v871_v9 = vmul.f32 %v743_v0, %v359_v41  ;;  %2995 = verf.f32 %v495_v6  ;;  %v2883_v41 = vld [vmem:[#allocation5 + $0x120] ss:$8 sps:$4 sm:$0xff]   ;;  %v888_v55 = vmul.f32 %v760_v46, %v376_v10 }
  0xa5   : > { %2997 = verf.f32 %v503_v7  ;;  %v268_v0 = vld [vmem:[%s3579_s30 + $0x188] sm:$0xff]  ;;  %v2892_v7 = vld [vmem:[#allocation5 + $0x330] ss:$8 sps:$4 sm:$0xff]  }
  0xa6   : > { %1860 = vmatpush1.bf16.msra.mxu1 %v2863_v12  ;;  %v2882_v12 = vld [vmem:[#allocation5 + $0x314] ss:$8 sps:$4 sm:$0xff]   ;;  %v272_v10 = vld [vmem:[%s3579_s30 + $0x1a8] sm:$0xff]  ;;  %v3660_v22 = vmul.f32 0.5, %v268_v0 }
  0xa7   : > { %2086 = vmatpush1.bf16.msra.mxu0 %v2864_v13  ;;  %1861 = vmatprep.subr.bf16.mxu1 %v2865_v18  ;;  %v368_v13 = vmul.f32 0.5, %v3606_v23  ;;  %v3627_v18 = vmul.f32 0.5, %v243_v34  ;;  %v991_v23 = vpack.c.bf16 %v871_v9, %v863_v3  ;;  %v876_v34 = vmul.f32 %v748_v25, %v364_v2 }
  0xa8   : > { %2087 = vmatprep.subr.bf16.mxu0 %v2867_v19  ;;  %v508_v19 = vmul.f32 0.70710677, %v252_v14  ;;  %v3649_v3 = vmul.f32 0.5, %v251_v31  ;;  %v3653_v9 = vmul.f32 0.5, %v255_v44  ;;  %v528_v31 = vmul.f32 0.70710677, %v272_v10 }
  0xa9   : > { %v996_v50 = vpack.c.bf16 %v884_v39, %v876_v34  ;;  %v880_v51 = vmul.f32 %v752_v40, %v368_v13  ;;  %v524_v13 = vmul.f32 0.70710677, %v268_v0  ;;  %v2898_v34 = vld [vmem:[#allocation5 + $0x340] ss:$8 sps:$4 sm:$0xff]   ;;  %v2906_v39 = vld [vmem:[#allocation5 + $0x354] ss:$8 sps:$4 sm:$0xff]  }
  0xaa   : > { %1862 = vmatpush1.bf16.msra.mxu1 %v2869_v36  ;;  %2999 = verf.f32 %v508_v19  ;;  %v512_v36 = vmul.f32 0.70710677, %v256_v20  ;;  %v3669_v40 = vmul.f32 0.5, %v272_v10  ;;  %v271_v44 = vld [vmem:[%s3579_s30 + $0x1a0] sm:$0xff] }
  0xab   : > { %2088 = vmatpush1.bf16.msra.mxu0 %v2870_v37  ;;  %1944 = vmatprep.subr.bf16.mxu1 %v2873_v45  ;;  %3001 = verf.f32 %v516_v26  ;;  %v520_v37 = vmul.f32 0.70710677, %v264_v21  ;;  %v2992_v45 = vpop.eup %2991  ;;  %v2895_v21 = vld [vmem:[#allocation5 + $0x140] ss:$8 sps:$4 sm:$0xff]   ;;  %v2912_v10 = vld [vmem:[#allocation5 + $0x364] ss:$8 sps:$4 sm:$0xff]  }
  0xac   : > { %2170 = vmatprep.subr.bf16.mxu0 %v2876_v61  ;;  %3003 = verf.f32 %v512_v36  ;;  %v2994_v49 = vpop.eup %2993  ;;  %v747_v52 = vadd.f32 1.0, %v2992_v45  ;;  %v2889_v61 = vld [vmem:[#allocation5 + $0x130] ss:$8 sps:$4 sm:$0xff]   ;;  %v267_v36 = vld [vmem:[%s3579_s30 + $0x180] sm:$0xff] }
  0xad   : > { %1864 = vmatmul.mubr.bf16.vlgmr.msra.gmra.mrb[0].mxu1 %v987_v8  ;;  %3005 = verf.f32 %v520_v37  ;;  %v755_v56 = vadd.f32 1.0, %v2994_v49  ;;  %v3651_v8 = vmul.f32 0.5, %v259_v32  ;;  %v275_v37 = vld [vmem:[%s3579_s30 + $0x1c0] sm:$0xff] }
  0xae   : > { %1945 = vmatpush1.bf16.msra.mxu1 %v2871_v59  ;;  %2090 = vmatmul.mubr.bf16.vlgmr.msra.gmra.mrb[0].mxu0 %v991_v23  ;;  %v3643_v59 = vmul.f32 0.5, %v256_v20  ;;  %3007 = verf.f32 %v507_v47  ;;  %v875_v60 = vmul.f32 %v747_v52, %v363_v11  ;;  %v2996_v6 = vpop.eup %2995  ;;  %v2900_v11 = vld [vmem:[#allocation5 + $0x344] ss:$8 sps:$4 sm:$0xff]   ;;  %v531_v52 = vmul.f32 0.70710677, %v275_v37 }
  0xaf   : > { %1946 = vmatprep.subr.bf16.mxu1 %v2879_v1  ;;  %2171 = vmatpush1.bf16.msra.mxu0 %v2874_v4  ;;  %3009 = verf.f32 %v515_v48  ;;  %v1000_v1 = vpack.c.bf16 %v888_v55, %v880_v51  ;;  %v883_v2 = vmul.f32 %v755_v56, %v3627_v18  ;;  %v2897_v4 = vld [vmem:[#allocation5 + $0x144] ss:$8 sps:$4 sm:$0xff]   ;;  %v2998_v14 = vpop.eup %2997  ;;  %v751_v16 = vadd.f32 1.0, %v2996_v6 }
  0xb0   : > { %2172 = vmatprep.subr.bf16.mxu0 %v2882_v12  ;;  %1873 = vmatprep.mubr.bf16.mxu1 %v996_v50  ;;  %3011 = verf.f32 %v511_v63  ;;  %v276_v12 = vld [vmem:[%s3579_s30 + $0x1c8] sm:$0xff]  ;;  %v759_v20 = vadd.f32 1.0, %v2998_v14  ;;  %v279_v48 = vld [vmem:[%s3579_s30 + $0x1e0] sm:$0xff]  ;;  %v523_v51 = vmul.f32 0.70710677, %v267_v36 }
  0xb1   : > { %2099 = vmatprep.mubr.bf16.mxu0 %v1000_v1  ;;  %v995_v15 = vpack.c.bf16 %v883_v2, %v875_v60  ;;  %3013 = verf.f32 %v519_v5  ;;  %v280_v18 = vld [vmem:[%s3579_s30 + $0x1e8] sm:$0xff]  ;;  %v532_v23 = vmul.f32 0.70710677, %v276_v12  ;;  %v3663_v28 = vmul.f32 0.5, %v276_v12 }
  0xb2   : > { %1947 = vmatpush1.bf16.msra.mxu1 %v2877_v17  ;;  %v3657_v17 = vmul.f32 0.5, %v263_v54  ;;  %3015 = verf.f32 %v524_v13  ;;  %v887_v32 = vmul.f32 %v759_v20, %v3633_v29  ;;  %v527_v63 = vmul.f32 0.70710677, %v271_v44  ;;  %v284_v5 = vld [vmem:[%s3579_s30 + $0x208] sm:$0xff] }
  0xb3   : > { %1948 = vmatprep.subr.bf16.mxu1 %v2885_v24  ;;  %2173 = vmatpush1.bf16.msra.mxu0 %v2880_v27  ;;  %v879_v24 = vmul.f32 %v751_v16, %v3631_v30  ;;  %v2903_v27 = vld [vmem:[#allocation5 + $0x154] ss:$8 sps:$4 sm:$0xff]   ;;  %3017 = verf.f32 %v532_v23  ;;  %v3683_v2 = vmul.f32 0.5, %v271_v44  ;;  %v2907_v13 = vld [vmem:[#allocation5 + $0x160] ss:$8 sps:$4 sm:$0xff]   ;;  %v3688_v16 = vmul.f32 0.5, %v279_v48 }
  0xb4   : > { %2174 = vmatprep.subr.bf16.mxu0 %v2888_v35  ;;  %v3000_v19 = vpop.eup %2999  ;;  %v536_v35 = vmul.f32 0.70710677, %v280_v18  ;;  %3019 = verf.f32 %v528_v31  ;;  %v292_v14 = vld [vmem:[%s3579_s30 + $0x248] sm:$0xff]  ;;  %v540_v23 = vmul.f32 0.70710677, %v284_v5 }
  0xb5   : > { %v3002_v25 = vpop.eup %3001  ;;  %1874 = vmatmul.mubr.bf16.gmra.mrb[4].mxu1 %v995_v15  ;;  %v764_v26 = vadd.f32 1.0, %v3000_v19  ;;  %v999_v45 = vpack.c.bf16 %v887_v32, %v879_v24  ;;  %v2918_v31 = vld [vmem:[#allocation5 + $0x374] ss:$8 sps:$4 sm:$0xff]   ;;  %v3694_v32 = vmul.f32 0.5, %v284_v5  ;;  %v2922_v5 = vld [vmem:[#allocation5 + $0x380] ss:$8 sps:$4 sm:$0xff]  }
  0xb6   : > { %1949 = vmatpush1.bf16.msra.mxu1 %v2883_v41  ;;  %v772_v33 = vadd.f32 1.0, %v3002_v25  ;;  %v3004_v38 = vpop.eup %3003  ;;  %v3671_v41 = vmul.f32 0.5, %v280_v18  ;;  %3021 = verf.f32 %v536_v35  ;;  %v288_v18 = vld [vmem:[%s3579_s30 + $0x228] sm:$0xff] }
  0xb7   : > { %1950 = vmatprep.subr.bf16.mxu1 %v2891_v57  ;;  %2175 = vmatpush1.bf16.msra.mxu0 %v2886_v53  ;;  %v892_v30 = vmul.f32 %v764_v26, %v3637_v42  ;;  %v3006_v29 = vpop.eup %3005  ;;  %v768_v47 = vadd.f32 1.0, %v3004_v38  ;;  %v3676_v42 = vmul.f32 0.5, %v267_v36  ;;  %v2901_v57 = vld [vmem:[#allocation5 + $0x150] ss:$8 sps:$4 sm:$0xff]   ;;  %3023 = verf.f32 %v523_v51  ;;  %v296_v25 = vld [vmem:[%s3579_s30 + $0x268] sm:$0xff]  ;;  %v283_v38 = vld [vmem:[%s3579_s30 + $0x200] sm:$0xff] }
  0xb8   : > { %2176 = vmatprep.subr.bf16.mxu0 %v2894_v58  ;;  %v900_v46 = vmul.f32 %v772_v33, %v3639_v43  ;;  %v3008_v49 = vpop.eup %3007  ;;  %v776_v50 = vadd.f32 1.0, %v3006_v29  ;;  %2100 = vmatmul.mubr.bf16.gmra.mrb[4].mxu0 %v999_v45  ;;  %v3679_v43 = vmul.f32 0.5, %v275_v37  ;;  %v2909_v58 = vld [vmem:[#allocation5 + $0x164] ss:$8 sps:$4 sm:$0xff]   ;;  %3025 = verf.f32 %v531_v52 }
  0xb9   : > { %v3010_v53 = vpop.eup %3009  ;;  %v896_v55 = vmul.f32 %v768_v47, %v3643_v59  ;;  %v763_v56 = vadd.f32 1.0, %v3008_v49  ;;  %v2904_v59 = vld [vmem:[#allocation5 + $0x350] ss:$8 sps:$4 sm:$0xff]   ;;  %3027 = verf.f32 %v527_v63  ;;  %v3696_v33 = vmul.f32 0.5, %v292_v14  ;;  %v2921_v45 = vld [vmem:[#allocation5 + $0x184] ss:$8 sps:$4 sm:$0xff]  }
  0xba   : > { %1951 = vmatpush1.bf16.msra.mxu1 %v2889_v61  ;;  %v1004_v54 = vpack.c.bf16 %v900_v46, %v892_v30  ;;  %v904_v60 = vmul.f32 %v776_v50, %v3645_v62  ;;  %v771_v61 = vadd.f32 1.0, %v3010_v53  ;;  %v3012_v0 = vpop.eup %3011  ;;  %v544_v37 = vmul.f32 0.70710677, %v288_v18  ;;  %v291_v30 = vld [vmem:[%s3579_s30 + $0x240] sm:$0xff] }
  0xbb   : > { %1952 = vmatprep.subr.bf16.mxu1 %v2897_v4  ;;  %2177 = vmatpush1.bf16.msra.mxu0 %v2892_v7  ;;  %v891_v1 = vmul.f32 %v763_v56, %v3649_v3  ;;  %v535_v4 = vmul.f32 0.70710677, %v279_v48  ;;  %v3014_v6 = vpop.eup %3013  ;;  %v767_v12 = vadd.f32 1.0, %v3012_v0  ;;  %v552_v29 = vmul.f32 0.70710677, %v296_v25  ;;  %v287_v49 = vld [vmem:[%s3579_s30 + $0x220] sm:$0xff] }
  0xbc   : > { %2178 = vmatprep.subr.bf16.mxu0 %v2900_v11  ;;  %1883 = vmatprep.mubr.bf16.mxu1 %v1004_v54  ;;  %v1008_v7 = vpack.c.bf16 %v904_v60, %v896_v55  ;;  %v899_v62 = vmul.f32 %v771_v61, %v3651_v8  ;;  %v3016_v3 = vpop.eup %3015  ;;  %v775_v15 = vadd.f32 1.0, %v3014_v6  ;;  %v2915_v11 = vld [vmem:[#allocation5 + $0x174] ss:$8 sps:$4 sm:$0xff]   ;;  %v2916_v48 = vld [vmem:[#allocation5 + $0x370] ss:$8 sps:$4 sm:$0xff]   ;;  %v3706_v51 = vmul.f32 0.5, %v296_v25 }
  0xbd   : > { %3029 = verf.f32 %v535_v4  ;;  %v895_v20 = vmul.f32 %v767_v12, %v3653_v9  ;;  %v780_v8 = vadd.f32 1.0, %v3016_v3  ;;  %v3018_v24 = vpop.eup %3017  ;;  %v539_v52 = vmul.f32 0.70710677, %v283_v38  ;;  %v295_v53 = vld [vmem:[%s3579_s30 + $0x260] sm:$0xff]  ;;  %v2927_v6 = vld [vmem:[#allocation5 + $0x194] ss:$8 sps:$4 sm:$0xff]  }
  0xbe   : > { %1953 = vmatpush1.bf16.msra.mxu1 %v2895_v21  ;;  %2109 = vmatprep.mubr.bf16.mxu0 %v1008_v7  ;;  %v1003_v19 = vpack.c.bf16 %v899_v62, %v891_v1  ;;  %v2910_v21 = vld [vmem:[#allocation5 + $0x360] ss:$8 sps:$4 sm:$0xff]   ;;  %v903_v26 = vmul.f32 %v775_v15, %v3657_v17  ;;  %v3020_v35 = vpop.eup %3019  ;;  %v788_v9 = vadd.f32 1.0, %v3018_v24  ;;  %3031 = verf.f32 %v540_v23  ;;  %v2924_v0 = vld [vmem:[#allocation5 + $0x384] ss:$8 sps:$4 sm:$0xff]  }
  0xbf   : > { %1954 = vmatprep.subr.bf16.mxu1 %v2903_v27  ;;  %2179 = vmatpush1.bf16.msra.mxu0 %v2898_v34  ;;  %v2913_v27 = vld [vmem:[#allocation5 + $0x170] ss:$8 sps:$4 sm:$0xff]   ;;  %v548_v34 = vmul.f32 0.70710677, %v292_v14  ;;  %v908_v36 = vmul.f32 %v780_v8, %v3660_v22  ;;  %v784_v44 = vadd.f32 1.0, %v3020_v35  ;;  %v3702_v22 = vmul.f32 0.5, %v288_v18 }
  0xc0   : > { %2180 = vmatprep.subr.bf16.mxu0 %v2906_v39  ;;  %1884 = vmatmul.mubr.bf16.gmra.mrb[8].mxu1 %v1003_v19  ;;  %v3022_v17 = vpop.eup %3021  ;;  %v1007_v39 = vpack.c.bf16 %v903_v26, %v895_v20  ;;  %v916_v46 = vmul.f32 %v788_v9, %v3663_v28  ;;  %v3710_v28 = vmul.f32 0.5, %v283_v38  ;;  %v543_v63 = vmul.f32 0.70710677, %v287_v49  ;;  %v300_v7 = vld [vmem:[%s3579_s30 + $0x288] sm:$0xff]  ;;  %v2925_v14 = vld [vmem:[#allocation5 + $0x190] ss:$8 sps:$4 sm:$0xff]  }
  0xc1   : > { %3033 = verf.f32 %v548_v34  ;;  %v792_v47 = vadd.f32 1.0, %v3022_v17  ;;  %v912_v50 = vmul.f32 %v784_v44, %v3669_v40  ;;  %v3024_v54 = vpop.eup %3023  ;;  %v3712_v40 = vmul.f32 0.5, %v291_v30  ;;  %v308_v3 = vld [vmem:[%s3579_s30 + $0x2c8] sm:$0xff]  ;;  %v2930_v20 = vld [vmem:[#allocation5 + $0x394] ss:$8 sps:$4 sm:$0xff]   ;;  %v299_v35 = vld [vmem:[%s3579_s30 + $0x280] sm:$0xff] }
  0xc2   : > { %1955 = vmatpush1.bf16.msra.mxu1 %v2901_v57  ;;  %3035 = verf.f32 %v544_v37  ;;  %2110 = vmatmul.mubr.bf16.gmra.mrb[8].mxu0 %v1007_v39  ;;  %v1012_v55 = vpack.c.bf16 %v916_v46, %v908_v36  ;;  %v547_v57 = vmul.f32 0.70710677, %v291_v30  ;;  %v3026_v60 = vpop.eup %3025  ;;  %v779_v61 = vadd.f32 1.0, %v3024_v54  ;;  %v304_v15 = vld [vmem:[%s3579_s30 + $0x2a8] sm:$0xff]  ;;  %v307_v37 = vld [vmem:[%s3579_s30 + $0x2c0] sm:$0xff] }
  0xc3   : > { %1956 = vmatprep.subr.bf16.mxu1 %v2909_v58  ;;  %2181 = vmatpush1.bf16.msra.mxu0 %v2904_v59  ;;  %3037 = verf.f32 %v552_v29  ;;  %v920_v56 = vmul.f32 %v792_v47, %v3671_v41  ;;  %v2919_v58 = vld [vmem:[#allocation5 + $0x180] ss:$8 sps:$4 sm:$0xff]   ;;  %v3028_v1 = vpop.eup %3027  ;;  %v787_v59 = vadd.f32 1.0, %v3026_v60  ;;  %v551_v4 = vmul.f32 0.70710677, %v295_v53 }
  0xc4   : > { %2182 = vmatprep.subr.bf16.mxu0 %v2912_v10  ;;  %3039 = verf.f32 %v539_v52  ;;  %1893 = vmatprep.mubr.bf16.mxu1 %v1012_v55  ;;  %v907_v12 = vmul.f32 %v779_v61, %v3676_v42  ;;  %v3716_v10 = vmul.f32 0.5, %v287_v49  ;;  %v3721_v19 = vmul.f32 0.5, %v295_v53  ;;  %v312_v8 = vld [vmem:[%s3579_s30 + $0x2e8] sm:$0xff]  ;;  %v311_v49 = vld [vmem:[%s3579_s30 + $0x2e0] sm:$0xff]  ;;  %v2939_v60 = vld [vmem:[#allocation5 + $0x1b4] ss:$8 sps:$4 sm:$0xff]  }
  0xc5   : > { %v1016_v41 = vpack.c.bf16 %v920_v56, %v912_v50  ;;  %3041 = verf.f32 %v547_v57  ;;  %v556_v23 = vmul.f32 0.70710677, %v300_v7  ;;  %v564_v25 = vmul.f32 0.70710677, %v308_v3  ;;  %v2933_v38 = vld [vmem:[#allocation5 + $0x1a4] ss:$8 sps:$4 sm:$0xff]  }
  0xc6   : > { %1957 = vmatpush1.bf16.msra.mxu1 %v2907_v13  ;;  %v783_v13 = vadd.f32 1.0, %v3028_v1  ;;  %3043 = verf.f32 %v543_v63  ;;  %v560_v34 = vmul.f32 0.70710677, %v304_v15  ;;  %v2931_v44 = vld [vmem:[#allocation5 + $0x1a0] ss:$8 sps:$4 sm:$0xff]   ;;  %v3739_v57 = vmul.f32 0.5, %v312_v8 }
  0xc7   : > { %1958 = vmatprep.subr.bf16.mxu1 %v2915_v11  ;;  %2183 = vmatpush1.bf16.msra.mxu0 %v2910_v21  ;;  %v3030_v62 = vpop.eup %3029  ;;  %v915_v11 = vmul.f32 %v787_v59, %v3679_v43  ;;  %3045 = verf.f32 %v551_v4  ;;  %v3725_v21 = vmul.f32 0.5, %v300_v7  ;;  %v555_v47 = vmul.f32 0.70710677, %v299_v35  ;;  %v2936_v54 = vld [vmem:[#allocation5 + $0x3a4] ss:$8 sps:$4 sm:$0xff]  }
  0xc8   : > { %2184 = vmatprep.subr.bf16.mxu0 %v2918_v31  ;;  %2119 = vmatprep.mubr.bf16.mxu0 %v1016_v41  ;;  %v791_v18 = vadd.f32 1.0, %v3030_v62  ;;  %v911_v42 = vmul.f32 %v783_v13, %v3683_v2  ;;  %v3032_v24 = vpop.eup %3031  ;;  %v3728_v31 = vmul.f32 0.5, %v308_v3  ;;  %3047 = verf.f32 %v556_v23  ;;  %v2937_v1 = vld [vmem:[#allocation5 + $0x1b0] ss:$8 sps:$4 sm:$0xff]   ;;  %v2942_v13 = vld [vmem:[#allocation5 + $0x3b4] ss:$8 sps:$4 sm:$0xff]  }
  0xc9   : > { %v1011_v26 = vpack.c.bf16 %v915_v11, %v907_v12  ;;  %v796_v36 = vadd.f32 1.0, %v3032_v24  ;;  %v568_v2 = vmul.f32 0.70710677, %v312_v8  ;;  %3049 = verf.f32 %v564_v25  ;;  %v3754_v8 = vld [vmem:[%s3579_s30 + $0x368] sm:$0xff] }
  0xca   : > { %1959 = vmatpush1.bf16.msra.mxu1 %v2913_v27  ;;  %v919_v43 = vmul.f32 %v791_v18, %v3688_v16  ;;  %v2928_v27 = vld [vmem:[#allocation5 + $0x390] ss:$8 sps:$4 sm:$0xff]   ;;  %v3732_v16 = vmul.f32 0.5, %v304_v15  ;;  %3051 = verf.f32 %v560_v34  ;;  %v563_v53 = vmul.f32 0.70710677, %v307_v37 }
  0xcb   : > { %1960 = vmatprep.subr.bf16.mxu1 %v2921_v45  ;;  %2185 = vmatpush1.bf16.msra.mxu0 %v2916_v48  ;;  %v3034_v9 = vpop.eup %3033  ;;  %v924_v45 = vmul.f32 %v796_v36, %v3694_v32  ;;  %v303_v48 = vld [vmem:[%s3579_s30 + $0x2a0] sm:$0xff]  ;;  %3053 = verf.f32 %v568_v2  ;;  %v3741_v32 = vmul.f32 0.5, %v299_v35  ;;  %v567_v4 = vmul.f32 0.70710677, %v311_v49  ;;  %v2940_v18 = vld [vmem:[#allocation5 + $0x3b0] ss:$8 sps:$4 sm:$0xff]  }
  0xcc   : > { %2186 = vmatprep.subr.bf16.mxu0 %v2924_v0  ;;  %v3036_v30 = vpop.eup %3035  ;;  %1894 = vmatmul.mubr.bf16.gmra.mrb[12].mxu1 %v1011_v26  ;;  %v1015_v17 = vpack.c.bf16 %v919_v43, %v911_v42  ;;  %v804_v39 = vadd.f32 1.0, %v3034_v9  ;;  %3055 = verf.f32 %v555_v47  ;;  %v3746_v12 = vmul.f32 0.5, %v307_v37  ;;  %v2945_v34 = vld [vmem:[#allocation5 + $0x1c4] ss:$8 sps:$4 sm:$0xff]  }
  0xcd   : > { %v3038_v29 = vpop.eup %3037  ;;  %v800_v46 = vadd.f32 1.0, %v3036_v30  ;;  %3057 = verf.f32 %v563_v53  ;;  %v3750_v11 = vmul.f32 0.5, %v303_v48  ;;  %v3758_v26 = vmul.f32 0.5, %v311_v49  ;;  %v315_v2 = vld [vmem:[%s3579_s30 + $0x300] sm:$0xff] }
  0xce   : > { %1961 = vmatpush1.bf16.msra.mxu1 %v2919_v58  ;;  %2120 = vmatmul.mubr.bf16.gmra.mrb[12].mxu0 %v1015_v17  ;;  %v932_v50 = vmul.f32 %v804_v39, %v3696_v33  ;;  %v808_v52 = vadd.f32 1.0, %v3038_v29  ;;  %v3040_v55 = vpop.eup %3039  ;;  %v2934_v58 = vld [vmem:[#allocation5 + $0x3a0] ss:$8 sps:$4 sm:$0xff]   ;;  %v584_v36 = vmul.f32 0.70710677, %v3754_v8 }
  0xcf   : > { %1962 = vmatprep.subr.bf16.mxu1 %v2927_v6  ;;  %2187 = vmatpush1.bf16.msra.mxu0 %v2922_v5  ;;  %v928_v56 = vmul.f32 %v800_v46, %v3702_v22  ;;  %v3042_v61 = vpop.eup %3041  ;;  %v795_v0 = vadd.f32 1.0, %v3040_v55  ;;  %v559_v22 = vmul.f32 0.70710677, %v303_v48  ;;  %v316_v5 = vld [vmem:[%s3579_s30 + $0x308] sm:$0xff]  ;;  %v323_v17 = vld [vmem:[%s3579_s30 + $0x340] sm:$0xff] }
  0xd0   : > { %2188 = vmatprep.subr.bf16.mxu0 %v2930_v20  ;;  %v1020_v63 = vpack.c.bf16 %v932_v50, %v924_v45  ;;  %v936_v33 = vmul.f32 %v808_v52, %v3706_v51  ;;  %v3044_v41 = vpop.eup %3043  ;;  %v803_v59 = vadd.f32 1.0, %v3042_v61  ;;  %v320_v20 = vld [vmem:[%s3579_s30 + $0x328] sm:$0xff]  ;;  %v3760_v43 = vmul.f32 0.5, %v316_v5  ;;  %v319_v45 = vld [vmem:[%s3579_s30 + $0x320] sm:$0xff] }
  0xd1   : > { %v3046_v6 = vpop.eup %3045  ;;  %v923_v62 = vmul.f32 %v795_v0, %v3710_v28  ;;  %v799_v51 = vadd.f32 1.0, %v3044_v41  ;;  %3059 = verf.f32 %v559_v22  ;;  %v572_v28 = vmul.f32 0.70710677, %v316_v5  ;;  %v2946_v46 = vld [vmem:[#allocation5 + $0x3c0] ss:$8 sps:$4 sm:$0xff]  }
  0xd2   : > { %1963 = vmatpush1.bf16.msra.mxu1 %v2925_v14  ;;  %1903 = vmatprep.mubr.bf16.mxu1 %v1020_v63  ;;  %v1024_v7 = vpack.c.bf16 %v936_v33, %v928_v56  ;;  %v324_v14 = vld [vmem:[%s3579_s30 + $0x348] sm:$0xff]  ;;  %v931_v3 = vmul.f32 %v803_v59, %v3712_v40  ;;  %v807_v15 = vadd.f32 1.0, %v3046_v6  ;;  %3061 = verf.f32 %v567_v4  ;;  %v3048_v25 = vpop.eup %3047  ;;  %v327_v56 = vld [vmem:[%s3579_s30 + $0x360] sm:$0xff]  ;;  %v2951_v33 = vld [vmem:[#allocation5 + $0x1d4] ss:$8 sps:$4 sm:$0xff]  }
  0xd3   : > { %1964 = vmatprep.subr.bf16.mxu1 %v2933_v38  ;;  %2189 = vmatpush1.bf16.msra.mxu0 %v2928_v27  ;;  %v927_v42 = vmul.f32 %v799_v51, %v3716_v10  ;;  %v580_v23 = vmul.f32 0.70710677, %v324_v14  ;;  %v2943_v27 = vld [vmem:[#allocation5 + $0x1c0] ss:$8 sps:$4 sm:$0xff]   ;;  %v3050_v35 = vpop.eup %3049  ;;  %v812_v10 = vadd.f32 1.0, %v3048_v25  ;;  %3063 = verf.f32 %v572_v28 }
  0xd4   : > { %2190 = vmatprep.subr.bf16.mxu0 %v2936_v54  ;;  %2129 = vmatprep.mubr.bf16.mxu0 %v1024_v7  ;;  %v1019_v24 = vpack.c.bf16 %v931_v3, %v923_v62  ;;  %v935_v40 = vmul.f32 %v807_v15, %v3721_v19  ;;  %v576_v9 = vmul.f32 0.70710677, %v320_v20  ;;  %v3052_v37 = vpop.eup %3051  ;;  %v820_v38 = vadd.f32 1.0, %v3050_v35  ;;  %v2948_v47 = vld [vmem:[#allocation5 + $0x3c4] ss:$8 sps:$4 sm:$0xff]  }
  0xd5   : > { %v3764_v30 = vmul.f32 0.5, %v324_v14  ;;  %3065 = verf.f32 %v580_v23  ;;  %v3054_v39 = vpop.eup %3053  ;;  %v816_v29 = vadd.f32 1.0, %v3052_v37  ;;  %v571_v52 = vmul.f32 0.70710677, %v315_v2  ;;  %v2954_v41 = vld [vmem:[#allocation5 + $0x3d4] ss:$8 sps:$4 sm:$0xff]  }
  0xd6   : > { %1965 = vmatpush1.bf16.msra.mxu1 %v2931_v44  ;;  %v1023_v19 = vpack.c.bf16 %v935_v40, %v927_v42  ;;  %v940_v44 = vmul.f32 %v812_v10, %v3725_v21  ;;  %3067 = verf.f32 %v576_v9  ;;  %v3056_v48 = vpop.eup %3055  ;;  %v948_v49 = vmul.f32 %v820_v38, %v3728_v31  ;;  %v2952_v31 = vld [vmem:[#allocation5 + $0x3d0] ss:$8 sps:$4 sm:$0xff]   ;;  %v3777_v59 = vld [vmem:[%s3579_s30 + $0x388] sm:$0xff]  ;;  %v3802_v35 = vld [vmem:[%s3579_s30 + $0x380] sm:$0xff] }
  0xd7   : > { %1966 = vmatprep.subr.bf16.mxu1 %v2939_v60  ;;  %2191 = vmatpush1.bf16.msra.mxu0 %v2934_v58  ;;  %v824_v50 = vadd.f32 1.0, %v3054_v39  ;;  %3069 = verf.f32 %v584_v36  ;;  %v3058_v53 = vpop.eup %3057  ;;  %v944_v54 = vmul.f32 %v816_v29, %v3732_v16  ;;  %v811_v55 = vadd.f32 1.0, %v3056_v48  ;;  %v2949_v58 = vld [vmem:[#allocation5 + $0x1d0] ss:$8 sps:$4 sm:$0xff]   ;;  %v3788_v14 = vld [vmem:[%s3579_s30 + $0x3a8] sm:$0xff] }
  0xd8   : > { %2192 = vmatprep.subr.bf16.mxu0 %v2942_v13  ;;  %1904 = vmatmul.mubr.bf16.gmra.mrb[16].mxu1 %v1019_v24  ;;  %v579_v21 = vmul.f32 0.70710677, %v323_v17  ;;  %v1028_v60 = vpack.c.bf16 %v948_v49, %v940_v44  ;;  %v819_v63 = vadd.f32 1.0, %v3058_v53  ;;  %3071 = verf.f32 %v571_v52  ;;  %v2955_v23 = vld [vmem:[#allocation5 + $0x1e0] ss:$8 sps:$4 sm:$0xff]  }
  0xd9   : > { %2130 = vmatmul.mubr.bf16.gmra.mrb[16].mxu0 %v1023_v19  ;;  %v952_v61 = vmul.f32 %v824_v50, %v3739_v57  ;;  %v939_v0 = vmul.f32 %v811_v55, %v3741_v32  ;;  %v575_v16 = vmul.f32 0.70710677, %v319_v45  ;;  %v456_v5 = vmul.f32 0.5, %v3754_v8  ;;  %v3782_v32 = vld [vmem:[%s3579_s30 + $0x3c8] sm:$0xff]  ;;  %v2961_v50 = vld [vmem:[#allocation5 + $0x1f0] ss:$8 sps:$4 sm:$0xff]  }
  0xda   : > { %1967 = vmatpush1.bf16.msra.mxu1 %v2937_v1  ;;  %v3774_v1 = vmul.f32 0.5, %v320_v20  ;;  %3073 = verf.f32 %v579_v21  ;;  %1913 = vmatprep.mubr.bf16.mxu1 %v1028_v60  ;;  %v947_v57 = vmul.f32 %v819_v63, %v3746_v12  ;;  %v583_v6 = vmul.f32 0.70710677, %v327_v56  ;;  %v2957_v25 = vld [vmem:[#allocation5 + $0x1e4] ss:$8 sps:$4 sm:$0xff]   ;;  %v3824_v63 = vld [vmem:[%s3579_s30 + $0x18] sm:$0xff] }
  0xdb   : > { %1968 = vmatprep.subr.bf16.mxu1 %v2945_v34  ;;  %2193 = vmatpush1.bf16.msra.mxu0 %v2940_v18  ;;  %v3060_v22 = vpop.eup %3059  ;;  %v1032_v4 = vpack.c.bf16 %v952_v61, %v944_v54  ;;  %v3784_v51 = vmul.f32 0.5, %v315_v2  ;;  %3075 = verf.f32 %v575_v16  ;;  %v588_v13 = vmul.f32 0.70710677, %v3777_v59  ;;  %v3792_v18 = vld [vmem:[%s3579_s30 + $0x3e8] sm:$0xff]  ;;  %v3808_v2 = vld [vmem:[%s3579_s30 + $0x3c0] sm:$0xff]  ;;  %v3829_v16 = vld [vmem:[%s3579_s30 + $0x58] sm:$0xff] }
  0xdc   : > { %2194 = vmatprep.subr.bf16.mxu0 %v2948_v47  ;;  %v3062_v7 = vpop.eup %3061  ;;  %v815_v62 = vadd.f32 1.0, %v3060_v22  ;;  %v1027_v12 = vpack.c.bf16 %v947_v57, %v939_v0  ;;  %3077 = verf.f32 %v583_v6  ;;  %v596_v15 = vmul.f32 0.70710677, %v3782_v32  ;;  %v2960_v39 = vld [vmem:[#allocation5 + $0x3e4] ss:$8 sps:$4 sm:$0xff]  }
  0xdd   : > { %2139 = vmatprep.mubr.bf16.mxu0 %v1032_v4  ;;  %v823_v3 = vadd.f32 1.0, %v3062_v7  ;;  %v3064_v20 = vpop.eup %3063  ;;  %v3795_v42 = vmul.f32 0.5, %v323_v17  ;;  %v3797_v28 = vmul.f32 0.5, %v319_v45  ;;  %3079 = verf.f32 %v588_v13  ;;  %v2958_v17 = vld [vmem:[#allocation5 + $0x3e0] ss:$8 sps:$4 sm:$0xff]   ;;  %v3838_v13 = vld [vmem:[%s3579_s30 + $0x78] sm:$0xff] }
  0xde   : > { %1969 = vmatpush1.bf16.msra.mxu1 %v2943_v27  ;;  %v943_v8 = vmul.f32 %v815_v62, %v3750_v11  ;;  %v828_v27 = vadd.f32 1.0, %v3064_v20  ;;  %3081 = verf.f32 %v596_v15  ;;  %v592_v34 = vmul.f32 0.70710677, %v3788_v14  ;;  %v3817_v47 = vld [vmem:[%s3579_s30 + $0x3e0] sm:$0xff]  ;;  %v2963_v52 = vld [vmem:[#allocation5 + $0x1f4] ss:$8 sps:$4 sm:$0xff]  }
  0xdf   : > { %2195 = vmatpush1.bf16.msra.mxu0 %v2946_v46  ;;  %1970 = vmatprep.subr.bf16.mxu1 %v2951_v33  ;;  %v3066_v24 = vpop.eup %3065  ;;  %v951_v40 = vmul.f32 %v823_v3, %v3758_v26  ;;  %v3804_v9 = vmul.f32 0.5, %v327_v56  ;;  %v600_v36 = vmul.f32 0.70710677, %v3792_v18  ;;  %v587_v45 = vmul.f32 0.70710677, %v3802_v35  ;;  %v3814_v46 = vld [vmem:[%s3579_s30 + $0x3a0] sm:$0xff] }
  0xe0   : > { %2196 = vmatprep.subr.bf16.mxu0 %v2954_v41  ;;  %1914 = vmatmul.mubr.bf16.gmra.mrb[20].mxu1 %v1027_v12  ;;  %v3068_v11 = vpop.eup %3067  ;;  %v836_v10 = vadd.f32 1.0, %v3066_v24  ;;  %v956_v26 = vmul.f32 %v828_v27, %v3760_v43  ;;  %3083 = verf.f32 %v592_v34  ;;  %v595_v43 = vmul.f32 0.70710677, %v3808_v2  ;;  %v2964_v21 = vld [vmem:[#allocation5 + $0x3f0] ss:$8 sps:$4 sm:$0xff]  }
  0xe1   : > { %v3070_v37 = vpop.eup %3069  ;;  %v1031_v19 = vpack.c.bf16 %v951_v40, %v943_v8  ;;  %v832_v38 = vadd.f32 1.0, %v3068_v11  ;;  %3085 = verf.f32 %v600_v36  ;;  %v2966_v56 = vld [vmem:[#allocation5 + $0x3f4] ss:$8 sps:$4 sm:$0xff]   ;;  %v591_v60 = vmul.f32 0.70710677, %v3814_v46 }
  0xe2   : > { %1971 = vmatpush1.bf16.msra.mxu1 %v2949_v58  ;;  %v964_v44 = vmul.f32 %v836_v10, %v3764_v30  ;;  %v840_v29 = vadd.f32 1.0, %v3070_v37  ;;  %v3072_v48 = vpop.eup %3071  ;;  %3087 = verf.f32 %v587_v45  ;;  %v599_v61 = vmul.f32 0.70710677, %v3817_v47  ;;  %v3853_v36 = vld [vmem:[%s3579_s30 + $0x30] sm:$0xff] }
  0xe3   : > { %2197 = vmatpush1.bf16.msra.mxu0 %v2952_v31  ;;  %1972 = vmatprep.subr.bf16.mxu1 %v2957_v25  ;;  %v960_v49 = vmul.f32 %v832_v38, %v3774_v1  ;;  %v827_v55 = vadd.f32 1.0, %v3072_v48  ;;  %3089 = verf.f32 %v595_v43  ;;  %v460_v1 = vmul.f32 0.5, %v3777_v59  ;;  %v3858_v38 = vld [vmem:[%s3579_s30 + $0x70] sm:$0xff] }
  0xe4   : > { %2140 = vmatmul.mubr.bf16.gmra.mrb[20].mxu0 %v1031_v19  ;;  %2198 = vmatprep.subr.bf16.mxu0 %v2960_v39  ;;  %v3074_v53 = vpop.eup %3073  ;;  %v1036_v30 = vpack.c.bf16 %v964_v44, %v956_v26  ;;  %v968_v54 = vmul.f32 %v840_v29, %v456_v5  ;;  %v478_v41 = vmul.f32 0.70710677, %v3824_v63  ;;  %v468_v5 = vmul.f32 0.5, %v3782_v32 }
  0xe5   : > { %v835_v58 = vadd.f32 1.0, %v3074_v53  ;;  %v3076_v33 = vpop.eup %3075  ;;  %v955_v0 = vmul.f32 %v827_v55, %v3784_v51  ;;  %3091 = verf.f32 %v591_v60  ;;  %v464_v59 = vmul.f32 0.5, %v3788_v14  ;;  %v226_v51 = vld [vmem:[%s3579_s30 + $0x38] sm:$0xff] }
  0xe6   : > { %1973 = vmatpush1.bf16.msra.mxu1 %v2955_v23  ;;  %1923 = vmatprep.mubr.bf16.mxu1 %v1036_v30  ;;  %v1040_v31 = vpack.c.bf16 %v968_v54, %v960_v49  ;;  %v3078_v22 = vpop.eup %3077  ;;  %v831_v57 = vadd.f32 1.0, %v3076_v33  ;;  %3093 = verf.f32 %v599_v61  ;;  %v486_v62 = vmul.f32 0.70710677, %v3829_v16  ;;  %v3847_v23 = vld [vmem:[%s3579_s30 + $0x50] sm:$0xff]  ;;  %v3863_v49 = vld [vmem:[%s3579_s30 + $0x98] sm:$0xff] }
  0xe7   : > { %2199 = vmatpush1.bf16.msra.mxu0 %v2958_v17  ;;  %1974 = vmatprep.subr.bf16.mxu1 %v2963_v52  ;;  %v963_v4 = vmul.f32 %v835_v58, %v3795_v42  ;;  %v3080_v6 = vpop.eup %3079  ;;  %v839_v7 = vadd.f32 1.0, %v3078_v22  ;;  %3095 = verf.f32 %v478_v41  ;;  %v472_v14 = vmul.f32 0.5, %v3792_v18  ;;  %v3844_v42 = vld [vmem:[%s3579_s30 + $0x10] sm:$0xff]  ;;  %v3868_v53 = vld [vmem:[%s3579_s30 + $0xd8] sm:$0xff] }
  0xe8   : > { %2200 = vmatprep.subr.bf16.mxu0 %v2966_v56  ;;  %2149 = vmatprep.mubr.bf16.mxu0 %v1040_v31  ;;  %v3082_v12 = vpop.eup %3081  ;;  %v959_v32 = vmul.f32 %v831_v57, %v3797_v28  ;;  %v844_v15 = vadd.f32 1.0, %v3080_v6  ;;  %3097 = verf.f32 %v486_v62  ;;  %v459_v40 = vmul.f32 0.5, %v3802_v35  ;;  %v3876_v41 = vld [vmem:[%s3579_s30 + $0xf8] sm:$0xff]  ;;  %v3879_v57 = vld [vmem:[%s3579_s30 + $0x90] sm:$0xff] }
  0xe9   : > { %v1035_v3 = vpack.c.bf16 %v963_v4, %v955_v0  ;;  %v967_v20 = vmul.f32 %v839_v7, %v3804_v9  ;;  %v852_v8 = vadd.f32 1.0, %v3082_v12  ;;  %v482_v28 = vmul.f32 0.70710677, %v226_v51 }
  0xea   : > { %1975 = vmatpush1.bf16.msra.mxu1 %v2961_v50  ;;  %v3084_v25 = vpop.eup %3083  ;;  %v972_v24 = vmul.f32 %v844_v15, %v460_v1  ;;  %v490_v27 = vmul.f32 0.70710677, %v3838_v13  ;;  %v467_v18 = vmul.f32 0.5, %v3808_v2  ;;  %v477_v19 = vmul.f32 0.70710677, %v3844_v42  ;;  %v242_v1 = vld [vmem:[%s3579_s30 + $0xb8] sm:$0xff] }
  0xeb   : > { %2201 = vmatpush1.bf16.msra.mxu0 %v2964_v21  ;;  %1924 = vmatmul.mubr.bf16.gmra.mrb[24].mxu1 %v1035_v3  ;;  %v3086_v34 = vpop.eup %3085  ;;  %v1039_v11 = vpack.c.bf16 %v967_v20, %v959_v32  ;;  %v980_v10 = vmul.f32 %v852_v8, %v468_v5  ;;  %v848_v9 = vadd.f32 1.0, %v3084_v25  ;;  %3099 = verf.f32 %v482_v28  ;;  %v3890_v25 = vld [vmem:[%s3579_s30 + $0xb0] sm:$0xff] }
  0xec   : > { %v856_v37 = vadd.f32 1.0, %v3086_v34  ;;  %v485_v26 = vmul.f32 0.70710677, %v3847_v23  ;;  %v3088_v35 = vpop.eup %3087  ;;  %v463_v44 = vmul.f32 0.5, %v3814_v46  ;;  %3101 = verf.f32 %v490_v27 }
  0xed   : > { %2150 = vmatmul.mubr.bf16.gmra.mrb[24].mxu0 %v1039_v11  ;;  %v1044_v17 = vpack.c.bf16 %v980_v10, %v972_v24  ;;  %v976_v39 = vmul.f32 %v848_v9, %v464_v59  ;;  %v3090_v2 = vpop.eup %3089  ;;  %v843_v45 = vadd.f32 1.0, %v3088_v35  ;;  %v471_v48 = vmul.f32 0.5, %v3817_v47  ;;  %v3883_v59 = vld [vmem:[%s3579_s30 + $0xd0] sm:$0xff]  ;;  %v3901_v35 = vld [vmem:[%s3579_s30 + $0x118] sm:$0xff] }
  0xee   : > { %v984_v29 = vmul.f32 %v856_v37, %v472_v14  ;;  %3103 = verf.f32 %v477_v19  ;;  %v851_v43 = vadd.f32 1.0, %v3090_v2  ;;  %v481_v50 = vmul.f32 0.70710677, %v3853_v36 }
  0xef   : > { %1933 = vmatprep.mubr.bf16.mxu1 %v1044_v17  ;;  %3105 = verf.f32 %v485_v26  ;;  %v489_v52 = vmul.f32 0.70710677, %v3858_v38  ;;  %v3092_v30 = vpop.eup %3091  ;;  %v971_v54 = vmul.f32 %v843_v45, %v459_v40  ;;  %v350_v55 = vmul.f32 0.5, %v3824_v63  ;;  %v3904_v17 = vld [vmem:[%s3579_s30 + $0x158] sm:$0xff] }
  0xf0   : > { %v1048_v46 = vpack.c.bf16 %v984_v29, %v976_v39  ;;  %v358_v47 = vmul.f32 0.5, %v3829_v16  ;;  %v3094_v21 = vpop.eup %3093  ;;  %v979_v56 = vmul.f32 %v851_v43, %v467_v18  ;;  %v847_v58 = vadd.f32 1.0, %v3092_v30 }
  0xf1   : > { %3107 = verf.f32 %v481_v50  ;;  %v494_v60 = vmul.f32 0.70710677, %v3863_v49  ;;  %v3096_v61 = vpop.eup %3095  ;;  %v855_v33 = vadd.f32 1.0, %v3094_v21  ;;  %v354_v31 = vmul.f32 0.5, %v226_v51  ;;  %v3909_v50 = vld [vmem:[%s3579_s30 + $0x138] sm:$0xff] }
  0xf2   : > { %2159 = vmatprep.mubr.bf16.mxu0 %v1048_v46  ;;  %3109 = verf.f32 %v489_v52  ;;  %v502_v0 = vmul.f32 0.70710677, %v3868_v53  ;;  %v3098_v63 = vpop.eup %3097  ;;  %v1043_v16 = vpack.c.bf16 %v979_v56, %v971_v54  ;;  %v975_v22 = vmul.f32 %v847_v58, %v463_v44  ;;  %v3912_v52 = vld [vmem:[%s3579_s30 + $0x178] sm:$0xff] }
  0xf3   : > { %v734_v4 = vadd.f32 1.0, %v3096_v61  ;;  %3111 = verf.f32 %v494_v60  ;;  %v983_v5 = vmul.f32 %v855_v33, %v471_v48  ;;  %v742_v6 = vadd.f32 1.0, %v3098_v63 }
  0xf4   : > { %v362_v7 = vmul.f32 0.5, %v3838_v13  ;;  %3113 = verf.f32 %v502_v0  ;;  %1934 = vmatmul.mubr.bf16.gmra.mrb[28].mxu1 %v1043_v16  ;;  %v349_v51 = vmul.f32 0.5, %v3844_v42  ;;  %v498_v12 = vmul.f32 0.70710677, %v242_v1  ;;  %v3895_v42 = vld [vmem:[%s3579_s30 + $0xf0] sm:$0xff] }
  0xf5   : > { %v862_v62 = vmul.f32 %v734_v4, %v350_v55  ;;  %v506_v3 = vmul.f32 0.70710677, %v3876_v41  ;;  %v3100_v32 = vpop.eup %3099  ;;  %v1047_v15 = vpack.c.bf16 %v983_v5, %v975_v22  ;;  %v870_v20 = vmul.f32 %v742_v6, %v358_v47  ;;  %v3922_v0 = vld [vmem:[%s3579_s30 + $0x150] sm:$0xff] }
  0xf6   : > { %v357_v8 = vmul.f32 0.5, %v3847_v23  ;;  %v493_v14 = vmul.f32 0.70710677, %v3879_v57  ;;  %v3102_v13 = vpop.eup %3101  ;;  %v738_v24 = vadd.f32 1.0, %v3100_v32  ;;  %v353_v40 = vmul.f32 0.5, %v3853_v36  ;;  %v3928_v6 = vld [vmem:[%s3579_s30 + $0x130] sm:$0xff] }
  0xf7   : > { %3115 = verf.f32 %v498_v12  ;;  %v501_v28 = vmul.f32 0.70710677, %v3883_v59  ;;  %2160 = vmatmul.mubr.bf16.gmra.mrb[28].mxu0 %v1047_v15  ;;  %v990_v34 = vpack.c.bf16 %v870_v20, %v862_v62  ;;  %v746_v11 = vadd.f32 1.0, %v3102_v13 }
  0xf8   : > { %v3104_v27 = vpop.eup %3103  ;;  %v361_v23 = vmul.f32 0.5, %v3858_v38  ;;  %3117 = verf.f32 %v506_v3  ;;  %v866_v9 = vmul.f32 %v738_v24, %v354_v31  ;;  %v497_v36 = vmul.f32 0.70710677, %v3890_v25  ;;  %v3919_v31 = vld [vmem:[%s3579_s30 + $0x110] sm:$0xff] }
  0xf9   : > { %v3106_v10 = vpop.eup %3105  ;;  %v733_v18 = vadd.f32 1.0, %v3104_v27  ;;  %3119 = verf.f32 %v493_v14  ;;  %1976 = vmatprep.mubr.bf16.mxu1 %v990_v34  ;;  %v874_v37 = vmul.f32 %v746_v11, %v362_v7  ;;  %v505_v26 = vmul.f32 0.70710677, %v3895_v42  ;;  %v3933_v3 = vld [vmem:[%s3579_s30 + $0x170] sm:$0xff]  ;;  %v3940_v11 = vld [vmem:[%s3579_s30 + $0x198] sm:$0xff] }
  0xfa   : > { %v741_v19 = vadd.f32 1.0, %v3106_v10  ;;  %3121 = verf.f32 %v501_v28  ;;  %v366_v44 = vmul.f32 0.5, %v3863_v49  ;;  %v374_v2 = vmul.f32 0.5, %v3868_v53 }
  0xfb   : > { %v3108_v38 = vpop.eup %3107  ;;  %v861_v39 = vmul.f32 %v733_v18, %v349_v51  ;;  %3123 = verf.f32 %v497_v36  ;;  %v994_v45 = vpack.c.bf16 %v874_v37, %v866_v9  ;;  %v370_v54 = vmul.f32 0.5, %v242_v1 }
  0xfc   : > { %v3110_v29 = vpop.eup %3109  ;;  %v869_v48 = vmul.f32 %v741_v19, %v357_v8  ;;  %v737_v43 = vadd.f32 1.0, %v3108_v38  ;;  %3125 = verf.f32 %v505_v26  ;;  %v510_v55 = vmul.f32 0.70710677, %v3901_v35  ;;  %v3947_v19 = vld [vmem:[%s3579_s30 + $0x1b8] sm:$0xff] }
  0xfd   : > { %v3112_v30 = vpop.eup %3111  ;;  %v745_v46 = vadd.f32 1.0, %v3110_v29  ;;  %v518_v49 = vmul.f32 0.70710677, %v3904_v17  ;;  %2202 = vmatprep.mubr.bf16.mxu0 %v994_v45  ;;  %v378_v58 = vmul.f32 0.5, %v3876_v41  ;;  %v514_v33 = vmul.f32 0.70710677, %v3909_v50 }
  0xfe   : > { %v3114_v53 = vpop.eup %3113  ;;  %v989_v47 = vpack.c.bf16 %v869_v48, %v861_v39  ;;  %v865_v21 = vmul.f32 %v737_v43, %v353_v40  ;;  %v750_v56 = vadd.f32 1.0, %v3112_v30  ;;  %3127 = verf.f32 %v510_v55  ;;  %v3950_v26 = vld [vmem:[%s3579_s30 + $0x1f8] sm:$0xff]  ;;  %v3960_v55 = vld [vmem:[%s3579_s30 + $0x190] sm:$0xff] }
  0xff   : > { %v873_v60 = vmul.f32 %v745_v46, %v361_v23  ;;  %v758_v61 = vadd.f32 1.0, %v3114_v53  ;;  %v365_v63 = vmul.f32 0.5, %v3879_v57  ;;  %3129 = verf.f32 %v518_v49 }
 0x100   : > { %1977 = vmatmul.mubr.bf16.vlgmr.msra.gmra.mrb[0].mxu1 %v989_v47  ;;  %v878_v1 = vmul.f32 %v750_v56, %v366_v44  ;;  %v522_v16 = vmul.f32 0.70710677, %v3912_v52  ;;  %v373_v5 = vmul.f32 0.5, %v3883_v59  ;;  %3131 = verf.f32 %v514_v33 }
 0x101   : > { %v3116_v22 = vpop.eup %3115  ;;  %v993_v41 = vpack.c.bf16 %v873_v60, %v865_v21  ;;  %v886_v4 = vmul.f32 %v758_v61, %v374_v2  ;;  %v509_v51 = vmul.f32 0.70710677, %v3919_v31  ;;  %v517_v12 = vmul.f32 0.70710677, %v3922_v0 }
 0x102   : > { %v3118_v7 = vpop.eup %3117  ;;  %v754_v62 = vadd.f32 1.0, %v3116_v22  ;;  %3133 = verf.f32 %v522_v16  ;;  %v369_v59 = vmul.f32 0.5, %v3890_v25  ;;  %v377_v20 = vmul.f32 0.5, %v3895_v42  ;;  %v3943_v25 = vld [vmem:[%s3579_s30 + $0x1d8] sm:$0xff]  ;;  %v3972_v16 = vld [vmem:[%s3579_s30 + $0x1f0] sm:$0xff] }
 0x103   : > { %v3120_v57 = vpop.eup %3119  ;;  %2203 = vmatmul.mubr.bf16.vlgmr.msra.gmra.mrb[0].mxu0 %v993_v41  ;;  %v998_v32 = vpack.c.bf16 %v886_v4, %v878_v1  ;;  %v762_v15 = vadd.f32 1.0, %v3118_v7  ;;  %3135 = verf.f32 %v509_v51  ;;  %v513_v24 = vmul.f32 0.70710677, %v3928_v6 }
 0x104   : > { %v3122_v8 = vpop.eup %3121  ;;  %v882_v14 = vmul.f32 %v754_v62, %v370_v54  ;;  %v749_v13 = vadd.f32 1.0, %v3120_v57  ;;  %3137 = verf.f32 %v517_v12  ;;  %v521_v34 = vmul.f32 0.70710677, %v3933_v3  ;;  %v3978_v12 = vld [vmem:[%s3579_s30 + $0x218] sm:$0xff] }
 0x105   : > { %v3124_v40 = vpop.eup %3123  ;;  %1986 = vmatprep.mubr.bf16.mxu1 %v998_v32  ;;  %v890_v28 = vmul.f32 %v762_v15, %v378_v58  ;;  %v757_v27 = vadd.f32 1.0, %v3122_v8  ;;  %v382_v9 = vmul.f32 0.5, %v3901_v35  ;;  %3139 = verf.f32 %v513_v24 }
 0x106   : > { %v3126_v42 = vpop.eup %3125  ;;  %v877_v23 = vmul.f32 %v749_v13, %v365_v63  ;;  %v753_v10 = vadd.f32 1.0, %v3124_v40  ;;  %3141 = verf.f32 %v521_v34  ;;  %v390_v39 = vmul.f32 0.5, %v3904_v17  ;;  %v3969_v63 = vld [vmem:[%s3579_s30 + $0x1b0] sm:$0xff] }
 0x107   : > { %v1002_v18 = vpack.c.bf16 %v890_v28, %v882_v14  ;;  %v885_v36 = vmul.f32 %v757_v27, %v373_v5  ;;  %v761_v37 = vadd.f32 1.0, %v3126_v42  ;;  %v526_v44 = vmul.f32 0.70710677, %v3940_v11  ;;  %v3987_v28 = vld [vmem:[%s3579_s30 + $0x238] sm:$0xff] }
 0x108   : > { %v881_v38 = vmul.f32 %v753_v10, %v369_v59  ;;  %v534_v2 = vmul.f32 0.70710677, %v3943_v25  ;;  %v3128_v29 = vpop.eup %3127  ;;  %v386_v48 = vmul.f32 0.5, %v3909_v50  ;;  %v394_v43 = vmul.f32 0.5, %v3912_v52  ;;  %v3964_v50 = vld [vmem:[%s3579_s30 + $0x1d0] sm:$0xff]  ;;  %v3983_v59 = vld [vmem:[%s3579_s30 + $0x258] sm:$0xff] }
 0x109   : > { %2212 = vmatprep.mubr.bf16.mxu0 %v1002_v18  ;;  %v997_v35 = vpack.c.bf16 %v885_v36, %v877_v23  ;;  %v889_v45 = vmul.f32 %v761_v37, %v377_v20  ;;  %v3130_v30 = vpop.eup %3129  ;;  %v766_v46 = vadd.f32 1.0, %v3128_v29  ;;  %3143 = verf.f32 %v526_v44  ;;  %v3990_v27 = vld [vmem:[%s3579_s30 + $0x278] sm:$0xff] }
 0x10a   : > { %v530_v54 = vmul.f32 0.70710677, %v3947_v19  ;;  %v538_v17 = vmul.f32 0.70710677, %v3950_v26  ;;  %v3132_v49 = vpop.eup %3131  ;;  %v774_v47 = vadd.f32 1.0, %v3130_v30  ;;  %v381_v21 = vmul.f32 0.5, %v3919_v31 }
 0x10b   : > { %1987 = vmatmul.mubr.bf16.gmra.mrb[4].mxu1 %v997_v35  ;;  %v1001_v53 = vpack.c.bf16 %v889_v45, %v881_v38  ;;  %3145 = verf.f32 %v534_v2  ;;  %v894_v56 = vmul.f32 %v766_v46, %v382_v9  ;;  %v770_v58 = vadd.f32 1.0, %v3132_v49  ;;  %v3999_v2 = vld [vmem:[%s3579_s30 + $0x210] sm:$0xff] }
 0x10c   : > { %v3134_v52 = vpop.eup %3133  ;;  %v389_v60 = vmul.f32 0.5, %v3922_v0  ;;  %3147 = verf.f32 %v530_v54  ;;  %v902_v61 = vmul.f32 %v774_v47, %v390_v39  ;;  %v525_v1 = vmul.f32 0.70710677, %v3960_v55  ;;  %v4011_v47 = vld [vmem:[%s3579_s30 + $0x270] sm:$0xff] }
 0x10d   : > { %2213 = vmatmul.mubr.bf16.gmra.mrb[4].mxu0 %v1001_v53  ;;  %v778_v33 = vadd.f32 1.0, %v3134_v52  ;;  %3149 = verf.f32 %v538_v17  ;;  %v3136_v31 = vpop.eup %3135  ;;  %v898_v22 = vmul.f32 %v770_v58, %v386_v48  ;;  %v385_v41 = vmul.f32 0.5, %v3928_v6  ;;  %v4008_v53 = vld [vmem:[%s3579_s30 + $0x230] sm:$0xff] }
 0x10e   : > { %v393_v4 = vmul.f32 0.5, %v3933_v3  ;;  %v533_v0 = vmul.f32 0.70710677, %v3964_v50  ;;  %v3138_v5 = vpop.eup %3137  ;;  %v1006_v7 = vpack.c.bf16 %v902_v61, %v894_v56  ;;  %v765_v51 = vadd.f32 1.0, %v3136_v31 }
 0x10f   : > { %v906_v62 = vmul.f32 %v778_v33, %v394_v43  ;;  %3151 = verf.f32 %v525_v1  ;;  %v3140_v57 = vpop.eup %3139  ;;  %v773_v32 = vadd.f32 1.0, %v3138_v5  ;;  %v529_v15 = vmul.f32 0.70710677, %v3969_v63  ;;  %v4017_v1 = vld [vmem:[%s3579_s30 + $0x298] sm:$0xff] }
 0x110   : > { %3153 = verf.f32 %v533_v0  ;;  %v537_v6 = vmul.f32 0.70710677, %v3972_v16  ;;  %v3142_v3 = vpop.eup %3141  ;;  %1996 = vmatprep.mubr.bf16.mxu1 %v1006_v7  ;;  %v893_v8 = vmul.f32 %v765_v51, %v381_v21  ;;  %v769_v14 = vadd.f32 1.0, %v3140_v57 }
 0x111   : > { %v1010_v20 = vpack.c.bf16 %v906_v62, %v898_v22  ;;  %v901_v13 = vmul.f32 %v773_v32, %v389_v60  ;;  %v777_v24 = vadd.f32 1.0, %v3142_v3  ;;  %v398_v40 = vmul.f32 0.5, %v3940_v11 }
 0x112   : > { %3155 = verf.f32 %v529_v15  ;;  %v897_v34 = vmul.f32 %v769_v14, %v385_v41  ;;  %v542_v42 = vmul.f32 0.70710677, %v3978_v12  ;;  %v550_v23 = vmul.f32 0.70710677, %v3983_v59  ;;  %v4028_v15 = vld [vmem:[%s3579_s30 + $0x2b8] sm:$0xff] }
 0x113   : > { %2222 = vmatprep.mubr.bf16.mxu0 %v1010_v20  ;;  %3157 = verf.f32 %v537_v6  ;;  %v3144_v10 = vpop.eup %3143  ;;  %v1005_v9 = vpack.c.bf16 %v901_v13, %v893_v8  ;;  %v905_v18 = vmul.f32 %v777_v24, %v393_v4  ;;  %v406_v36 = vmul.f32 0.5, %v3943_v25  ;;  %v4003_v25 = vld [vmem:[%s3579_s30 + $0x250] sm:$0xff]  ;;  %v4022_v4 = vld [vmem:[%s3579_s30 + $0x2d8] sm:$0xff] }
 0x114   : > { %v402_v11 = vmul.f32 0.5, %v3947_v19  ;;  %v782_v38 = vadd.f32 1.0, %v3144_v10  ;;  %3159 = verf.f32 %v542_v42  ;;  %v546_v39 = vmul.f32 0.70710677, %v3987_v28  ;;  %v4033_v8 = vld [vmem:[%s3579_s30 + $0x2f8] sm:$0xff] }
 0x115   : > { %v3146_v37 = vpop.eup %3145  ;;  %v554_v44 = vmul.f32 0.70710677, %v3990_v27  ;;  %1997 = vmatmul.mubr.bf16.gmra.mrb[8].mxu1 %v1005_v9  ;;  %v1009_v35 = vpack.c.bf16 %v905_v18, %v897_v34  ;;  %v410_v48 = vmul.f32 0.5, %v3950_v26  ;;  %3161 = verf.f32 %v550_v23  ;;  %v4038_v23 = vld [vmem:[%s3579_s30 + $0x290] sm:$0xff] }
 0x116   : > { %v3148_v29 = vpop.eup %3147  ;;  %v790_v45 = vadd.f32 1.0, %v3146_v37  ;;  %v910_v43 = vmul.f32 %v782_v38, %v398_v40  ;;  %v397_v46 = vmul.f32 0.5, %v3960_v55  ;;  %3163 = verf.f32 %v546_v39 }
 0x117   : > { %v3150_v19 = vpop.eup %3149  ;;  %v786_v30 = vadd.f32 1.0, %v3148_v29  ;;  %2223 = vmatmul.mubr.bf16.gmra.mrb[8].mxu0 %v1009_v35  ;;  %3165 = verf.f32 %v554_v44  ;;  %v541_v49 = vmul.f32 0.70710677, %v3999_v2  ;;  %v405_v52 = vmul.f32 0.5, %v3964_v50 }
 0x118   : > { %v918_v54 = vmul.f32 %v790_v45, %v406_v36  ;;  %v794_v17 = vadd.f32 1.0, %v3150_v19  ;;  %v401_v56 = vmul.f32 0.5, %v3969_v63  ;;  %v549_v55 = vmul.f32 0.70710677, %v4003_v25  ;;  %v4044_v36 = vld [vmem:[%s3579_s30 + $0x2d0] sm:$0xff] }
 0x119   : > { %v3152_v26 = vpop.eup %3151  ;;  %v914_v21 = vmul.f32 %v786_v30, %v402_v11  ;;  %3167 = verf.f32 %v541_v49  ;;  %v545_v22 = vmul.f32 0.70710677, %v4008_v53  ;;  %v553_v41 = vmul.f32 0.70710677, %v4011_v47  ;;  %v4048_v45 = vld [vmem:[%s3579_s30 + $0x2b0] sm:$0xff] }
 0x11a   : > { %v3154_v58 = vpop.eup %3153  ;;  %v1014_v60 = vpack.c.bf16 %v918_v54, %v910_v43  ;;  %v922_v61 = vmul.f32 %v794_v17, %v410_v48  ;;  %v781_v33 = vadd.f32 1.0, %v3152_v26  ;;  %3169 = verf.f32 %v549_v55  ;;  %v4057_v26 = vld [vmem:[%s3579_s30 + $0x318] sm:$0xff] }
 0x11b   : > { %v789_v31 = vadd.f32 1.0, %v3154_v58  ;;  %v409_v5 = vmul.f32 0.5, %v3972_v16  ;;  %v414_v7 = vmul.f32 0.5, %v3978_v12  ;;  %3171 = verf.f32 %v545_v22  ;;  %v4062_v55 = vld [vmem:[%s3579_s30 + $0x358] sm:$0xff] }
 0x11c   : > { %v3156_v50 = vpop.eup %3155  ;;  %2006 = vmatprep.mubr.bf16.mxu1 %v1014_v60  ;;  %v1018_v63 = vpack.c.bf16 %v922_v61, %v914_v21  ;;  %v909_v0 = vmul.f32 %v781_v33, %v397_v46  ;;  %v558_v32 = vmul.f32 0.70710677, %v4017_v1  ;;  %v422_v3 = vmul.f32 0.5, %v3983_v59 }
 0x11d   : > { %v3158_v62 = vpop.eup %3157  ;;  %v917_v51 = vmul.f32 %v789_v31, %v405_v52  ;;  %v785_v57 = vadd.f32 1.0, %v3156_v50  ;;  %3173 = verf.f32 %v553_v41  ;;  %v566_v20 = vmul.f32 0.70710677, %v4022_v4 }
 0x11e   : > { %2232 = vmatprep.mubr.bf16.mxu0 %v1018_v63  ;;  %v793_v6 = vadd.f32 1.0, %v3158_v62  ;;  %v3160_v16 = vpop.eup %3159  ;;  %v418_v13 = vmul.f32 0.5, %v3987_v28  ;;  %3175 = verf.f32 %v558_v32  ;;  %v562_v42 = vmul.f32 0.70710677, %v4028_v15 }
 0x11f   : > { %v1013_v12 = vpack.c.bf16 %v917_v51, %v909_v0  ;;  %v913_v14 = vmul.f32 %v785_v57, %v401_v56  ;;  %v3162_v24 = vpop.eup %3161  ;;  %v798_v34 = vadd.f32 1.0, %v3160_v16  ;;  %3177 = verf.f32 %v566_v20  ;;  %v4077_v20 = vld [vmem:[%s3579_s30 + $0x310] sm:$0xff] }
 0x120   : > { %v921_v40 = vmul.f32 %v793_v6, %v409_v5  ;;  %v3164_v59 = vpop.eup %3163  ;;  %v806_v10 = vadd.f32 1.0, %v3162_v24  ;;  %v426_v9 = vmul.f32 0.5, %v3990_v27  ;;  %v413_v18 = vmul.f32 0.5, %v3999_v2  ;;  %v4051_v27 = vld [vmem:[%s3579_s30 + $0x2f0] sm:$0xff] }
 0x121   : > { %2007 = vmatmul.mubr.bf16.gmra.mrb[12].mxu1 %v1013_v12  ;;  %v570_v28 = vmul.f32 0.70710677, %v4033_v8  ;;  %v3166_v11 = vpop.eup %3165  ;;  %v926_v38 = vmul.f32 %v798_v34, %v414_v7  ;;  %v802_v39 = vadd.f32 1.0, %v3164_v59  ;;  %3179 = verf.f32 %v562_v42  ;;  %v4070_v7 = vld [vmem:[%s3579_s30 + $0x338] sm:$0xff] }
 0x122   : > { %v1017_v37 = vpack.c.bf16 %v921_v40, %v913_v14  ;;  %v934_v44 = vmul.f32 %v806_v10, %v422_v3  ;;  %v810_v29 = vadd.f32 1.0, %v3166_v11  ;;  %v557_v35 = vmul.f32 0.70710677, %v4038_v23  ;;  %v4087_v10 = vld [vmem:[%s3579_s30 + $0x330] sm:$0xff] }
 0x123   : > { %3181 = verf.f32 %v570_v28  ;;  %v3168_v2 = vpop.eup %3167  ;;  %v930_v48 = vmul.f32 %v802_v39, %v418_v13  ;;  %v421_v19 = vmul.f32 0.5, %v4003_v25  ;;  %v417_v43 = vmul.f32 0.5, %v4008_v53 }
 0x124   : > { %2233 = vmatmul.mubr.bf16.gmra.mrb[12].mxu0 %v1017_v37  ;;  %v565_v30 = vmul.f32 0.70710677, %v4044_v36  ;;  %v3170_v46 = vpop.eup %3169  ;;  %v1022_v54 = vpack.c.bf16 %v934_v44, %v926_v38  ;;  %v938_v17 = vmul.f32 %v810_v29, %v426_v9  ;;  %v797_v49 = vadd.f32 1.0, %v3168_v2  ;;  %v4097_v2 = vld [vmem:[%s3579_s30 + $0x398] sm:$0xff] }
 0x125   : > { %3183 = verf.f32 %v557_v35  ;;  %v805_v21 = vadd.f32 1.0, %v3170_v46  ;;  %v561_v52 = vmul.f32 0.70710677, %v4048_v45  ;;  %v569_v56 = vmul.f32 0.70710677, %v4051_v27  ;;  %v3172_v25 = vpop.eup %3171 }
 0x126   : > { %3185 = verf.f32 %v565_v30  ;;  %2016 = vmatprep.mubr.bf16.mxu1 %v1022_v54  ;;  %v1026_v53 = vpack.c.bf16 %v938_v17, %v930_v48  ;;  %v925_v58 = vmul.f32 %v797_v49, %v413_v18  ;;  %v425_v60 = vmul.f32 0.5, %v4011_v47  ;;  %v4073_v47 = vld [vmem:[%s3579_s30 + $0x378] sm:$0xff] }
 0x127   : > { %v430_v61 = vmul.f32 0.5, %v4017_v1  ;;  %v3174_v33 = vpop.eup %3173  ;;  %v933_v31 = vmul.f32 %v805_v21, %v421_v19  ;;  %v801_v22 = vadd.f32 1.0, %v3172_v25  ;;  %3187 = verf.f32 %v561_v52  ;;  %v4102_v30 = vld [vmem:[%s3579_s30 + $0x3d8] sm:$0xff] }
 0x128   : > { %v574_v41 = vmul.f32 0.70710677, %v4057_v26  ;;  %v3176_v50 = vpop.eup %3175  ;;  %2242 = vmatprep.mubr.bf16.mxu0 %v1026_v53  ;;  %v809_v63 = vadd.f32 1.0, %v3174_v33  ;;  %v438_v0 = vmul.f32 0.5, %v4022_v4  ;;  %3189 = verf.f32 %v569_v56  ;;  %v4080_v4 = vld [vmem:[%s3579_s30 + $0x350] sm:$0xff] }
 0x129   : > { %v582_v5 = vmul.f32 0.70710677, %v4062_v55  ;;  %v3178_v1 = vpop.eup %3177  ;;  %v1021_v62 = vpack.c.bf16 %v933_v31, %v925_v58  ;;  %v929_v51 = vmul.f32 %v801_v22, %v417_v43  ;;  %v814_v57 = vadd.f32 1.0, %v3176_v50 }
 0x12a   : > { %3191 = verf.f32 %v574_v41  ;;  %v937_v32 = vmul.f32 %v809_v63, %v425_v60  ;;  %v822_v6 = vadd.f32 1.0, %v3178_v1  ;;  %v434_v3 = vmul.f32 0.5, %v4028_v15  ;;  %v4116_v41 = vld [vmem:[%s3579_s30 + $0x390] sm:$0xff] }
 0x12b   : > { %3193 = verf.f32 %v582_v5  ;;  %v3180_v16 = vpop.eup %3179  ;;  %2017 = vmatmul.mubr.bf16.gmra.mrb[16].mxu1 %v1021_v62  ;;  %v942_v12 = vmul.f32 %v814_v57, %v430_v61  ;;  %v442_v14 = vmul.f32 0.5, %v4033_v8  ;;  %v578_v13 = vmul.f32 0.70710677, %v4070_v7  ;;  %v4092_v8 = vld [vmem:[%s3579_s30 + $0x370] sm:$0xff]  ;;  %v4110_v61 = vld [vmem:[%s3579_s30 + $0x3b8] sm:$0xff] }
 0x12c   : > { %v586_v24 = vmul.f32 0.70710677, %v4073_v47  ;;  %v1025_v34 = vpack.c.bf16 %v937_v32, %v929_v51  ;;  %v950_v42 = vmul.f32 %v822_v6, %v438_v0  ;;  %v818_v59 = vadd.f32 1.0, %v3180_v16 }
 0x12d   : > { %v3182_v40 = vpop.eup %3181  ;;  %v429_v15 = vmul.f32 0.5, %v4038_v23  ;;  %3195 = verf.f32 %v578_v13  ;;  %v573_v18 = vmul.f32 0.70710677, %v4077_v20  ;;  %v581_v28 = vmul.f32 0.70710677, %v4080_v4 }
 0x12e   : > { %v826_v9 = vadd.f32 1.0, %v3182_v40  ;;  %2243 = vmatmul.mubr.bf16.gmra.mrb[16].mxu0 %v1025_v34  ;;  %v1030_v37 = vpack.c.bf16 %v950_v42, %v942_v12  ;;  %v946_v38 = vmul.f32 %v818_v59, %v434_v3  ;;  %v437_v39 = vmul.f32 0.5, %v4044_v36 }
 0x12f   : > { %v3184_v11 = vpop.eup %3183  ;;  %3197 = verf.f32 %v586_v24  ;;  %v433_v35 = vmul.f32 0.5, %v4048_v45  ;;  %v577_v19 = vmul.f32 0.70710677, %v4087_v10  ;;  %v585_v43 = vmul.f32 0.70710677, %v4092_v8 }
 0x130   : > { %v3186_v23 = vpop.eup %3185  ;;  %v954_v44 = vmul.f32 %v826_v9, %v442_v14  ;;  %v813_v29 = vadd.f32 1.0, %v3184_v11  ;;  %3199 = verf.f32 %v573_v18  ;;  %2026 = vmatprep.mubr.bf16.mxu1 %v1030_v37  ;;  %v441_v17 = vmul.f32 0.5, %v4051_v27  ;;  %v4113_v27 = vld [vmem:[%s3579_s30 + $0x3f8] sm:$0xff] }
 0x131   : > { %v821_v48 = vadd.f32 1.0, %v3186_v23  ;;  %3201 = verf.f32 %v581_v28  ;;  %v3188_v46 = vpop.eup %3187  ;;  %v446_v45 = vmul.f32 0.5, %v4057_v26  ;;  %v590_v56 = vmul.f32 0.70710677, %v4097_v2 }
 0x132   : > { %v1034_v36 = vpack.c.bf16 %v954_v44, %v946_v38  ;;  %v941_v54 = vmul.f32 %v813_v29, %v429_v15  ;;  %v3190_v49 = vpop.eup %3189  ;;  %v817_v52 = vadd.f32 1.0, %v3188_v46  ;;  %3203 = verf.f32 %v577_v19 }
 0x133   : > { %v949_v21 = vmul.f32 %v821_v48, %v437_v39  ;;  %v825_v53 = vadd.f32 1.0, %v3190_v49  ;;  %v454_v58 = vmul.f32 0.5, %v4062_v55  ;;  %3205 = verf.f32 %v585_v43  ;;  %v4120_v55 = vld [vmem:[%s3579_s30 + $0x3d0] sm:$0xff] }
 0x134   : > { %v3192_v25 = vpop.eup %3191  ;;  %2252 = vmatprep.mubr.bf16.mxu0 %v1034_v36  ;;  %v598_v60 = vmul.f32 0.70710677, %v4102_v30  ;;  %v945_v31 = vmul.f32 %v817_v52, %v433_v35  ;;  %3207 = verf.f32 %v590_v56  ;;  %v450_v0 = vmul.f32 0.5, %v4070_v7  ;;  %v337_v7 = vld [vmem:[%s3579_s30 + $0x3b0] sm:$0xff] }
 0x135   : > { %v3194_v26 = vpop.eup %3193  ;;  %v1029_v33 = vpack.c.bf16 %v949_v21, %v941_v54  ;;  %v830_v22 = vadd.f32 1.0, %v3192_v25  ;;  %v953_v50 = vmul.f32 %v825_v53, %v441_v17  ;;  %v458_v1 = vmul.f32 0.5, %v4073_v47  ;;  %v345_v47 = vld [vmem:[%s3579_s30 + $0x3f0] sm:$0xff] }
 0x136   : > { %v838_v63 = vadd.f32 1.0, %v3194_v26  ;;  %3209 = verf.f32 %v598_v60  ;;  %v594_v62 = vmul.f32 0.70710677, %v4110_v61  ;;  %v602_v51 = vmul.f32 0.70710677, %v4113_v27 }
 0x137   : > { %2027 = vmatmul.mubr.bf16.gmra.mrb[20].mxu1 %v1029_v33  ;;  %v958_v5 = vmul.f32 %v830_v22, %v446_v45  ;;  %v3196_v57 = vpop.eup %3195  ;;  %v1033_v32 = vpack.c.bf16 %v953_v50, %v945_v31  ;;  %v445_v3 = vmul.f32 0.5, %v4077_v20  ;;  %v589_v16 = vmul.f32 0.70710677, %v4116_v41 }
 0x138   : > { %v966_v6 = vmul.f32 %v838_v63, %v454_v58  ;;  %v834_v14 = vadd.f32 1.0, %v3196_v57  ;;  %v453_v13 = vmul.f32 0.5, %v4080_v4  ;;  %3211 = verf.f32 %v594_v62 }
 0x139   : > { %v3198_v12 = vpop.eup %3197  ;;  %v597_v24 = vmul.f32 0.70710677, %v4120_v55  ;;  %2253 = vmatmul.mubr.bf16.gmra.mrb[20].mxu0 %v1033_v32  ;;  %v449_v59 = vmul.f32 0.5, %v4087_v10  ;;  %3213 = verf.f32 %v602_v51  ;;  %v593_v18 = vmul.f32 0.70710677, %v337_v7 }
 0x13a   : > { %v3200_v40 = vpop.eup %3199  ;;  %v1038_v34 = vpack.c.bf16 %v966_v6, %v958_v5  ;;  %v842_v42 = vadd.f32 1.0, %v3198_v12  ;;  %v962_v20 = vmul.f32 %v834_v14, %v450_v0  ;;  %3215 = verf.f32 %v589_v16 }
 0x13b   : > { %v3202_v15 = vpop.eup %3201  ;;  %v829_v9 = vadd.f32 1.0, %v3200_v40  ;;  %3217 = verf.f32 %v597_v24  ;;  %v601_v4 = vmul.f32 0.70710677, %v345_v47  ;;  %v457_v39 = vmul.f32 0.5, %v4092_v8  ;;  %v1179_v24 = vld [vmem:[#allocation7] sm:$0x3] }
 0x13c   : > { %2036 = vmatprep.mubr.bf16.mxu1 %v1038_v34  ;;  %v970_v28 = vmul.f32 %v842_v42, %v458_v1  ;;  %v837_v11 = vadd.f32 1.0, %v3202_v15  ;;  %v3204_v37 = vpop.eup %3203  ;;  %v462_v23 = vmul.f32 0.5, %v4097_v2  ;;  %3219 = verf.f32 %v593_v18 }
 0x13d   : > { %v957_v38 = vmul.f32 %v829_v9, %v445_v3  ;;  %v3206_v44 = vpop.eup %3205  ;;  %v833_v35 = vadd.f32 1.0, %v3204_v37  ;;  %3221 = verf.f32 %v601_v4  ;;  %v470_v43 = vmul.f32 0.5, %v4102_v30 }
 0x13e   : > { %v1042_v10 = vpack.c.bf16 %v970_v28, %v962_v20  ;;  %v965_v29 = vmul.f32 %v837_v11, %v453_v13  ;;  %v3208_v48 = vpop.eup %3207  ;;  %v841_v19 = vadd.f32 1.0, %v3206_v44  ;;  %v466_v2 = vmul.f32 0.5, %v4110_v61 }
 0x13f   : > { %v961_v54 = vmul.f32 %v833_v35, %v449_v59  ;;  %v846_v17 = vadd.f32 1.0, %v3208_v48  ;;  %v474_v25 = vmul.f32 0.5, %v4113_v27  ;;  %v461_v30 = vmul.f32 0.5, %v4116_v41 }
 0x140   : > { %v3210_v46 = vpop.eup %3209  ;;  %2262 = vmatprep.mubr.bf16.mxu0 %v1042_v10  ;;  %v1037_v36 = vpack.c.bf16 %v965_v29, %v957_v38  ;;  %v969_v45 = vmul.f32 %v841_v19, %v457_v39  ;;  %v469_v31 = vmul.f32 0.5, %v4120_v55  ;;  %v465_v0 = vmul.f32 0.5, %v337_v7 }
 0x141   : > { %v854_v49 = vadd.f32 1.0, %v3210_v46  ;;  %v974_v8 = vmul.f32 %v846_v17, %v462_v23  ;;  %v473_v62 = vmul.f32 0.5, %v345_v47  ;;  %v1181_v7 = vlaneseq }
 0x142   : > { %2037 = vmatmul.mubr.bf16.gmra.mrb[24].mxu1 %v1037_v36  ;;  %v3212_v21 = vpop.eup %3211  ;;  %v1041_v52 = vpack.c.bf16 %v969_v45, %v961_v54 }
 0x143   : > { %v982_v56 = vmul.f32 %v854_v49, %v470_v43  ;;  %v3214_v53 = vpop.eup %3213  ;;  %v850_v58 = vadd.f32 1.0, %v3212_v21  ;;  %v1182_v14 = vshrl.u32 %v1181_v7, 7 }
 0x144   : > { %v3216_v60 = vpop.eup %3215  ;;  %2263 = vmatmul.mubr.bf16.gmra.mrb[24].mxu0 %v1041_v52  ;;  %v858_v33 = vadd.f32 1.0, %v3214_v53 }
 0x145   : > { %v1046_v26 = vpack.c.bf16 %v982_v56, %v974_v8  ;;  %v3218_v22 = vpop.eup %3217  ;;  %v978_v50 = vmul.f32 %v850_v58, %v466_v2  ;;  %v845_v63 = vadd.f32 1.0, %v3216_v60  ;;  %v1183_v13 = vsub.s32 0, %v1182_v14 }
 0x146   : > { %v3220_v61 = vpop.eup %3219  ;;  %v986_v5 = vmul.f32 %v858_v33, %v474_v25  ;;  %v853_v1 = vadd.f32 1.0, %v3218_v22  ;;  %v1187_v40 = vsub.s32 1, %v1182_v14 }
 0x147   : > { %2046 = vmatprep.mubr.bf16.mxu1 %v1046_v26  ;;  %v3222_v27 = vpop.eup %3221  ;;  %v973_v51 = vmul.f32 %v845_v63, %v461_v30  ;;  %v849_v57 = vadd.f32 1.0, %v3220_v61  ;;  %v4139_v47 = vrot.slane %v1179_v24, %v1183_v13 }
 0x148   : > { %v1050_v32 = vpack.c.bf16 %v986_v5, %v978_v50  ;;  %v981_v41 = vmul.f32 %v853_v1, %v469_v31  ;;  %v857_v6 = vadd.f32 1.0, %v3222_v27  ;;  %v4141_v34 = vrot.slane %v1179_v24, %v1187_v40 }
 0x149   : > { %v977_v3 = vmul.f32 %v849_v57, %v465_v0 }
 0x14a   : > { %2272 = vmatprep.mubr.bf16.mxu0 %v1050_v32  ;;  %v1045_v16 = vpack.c.bf16 %v981_v41, %v973_v51  ;;  %v985_v55 = vmul.f32 %v857_v6, %v473_v62 }
 0x14c   : > { %2047 = vmatmul.mubr.bf16.gmra.mrb[28].mxu1 %v1045_v16  ;;  %v1049_v12 = vpack.c.bf16 %v985_v55, %v977_v3 }
 0x14e   : > { %2273 = vmatmul.mubr.bf16.gmra.mrb[28].mxu0 %v1049_v12 }
 0x1d3   : > { %v1978_v42 = vpop.f32.mrb[0].mxu1 }
 0x1d4   : > { %v2574_v59 = vadd.f32 %v1978_v42, %v4139_v47  ;;  %v1980_v15 = vpop.f32.mrb[1].mxu1 }
 0x1d5   : > { %v2576_v20 = vadd.f32 %v1980_v15, %v4141_v34  ;;  %v1982_v9 = vpop.f32.mrb[2].mxu1 }
 0x1d6   : > { %v2204_v18 = vpop.f32.mrb[0].mxu0  ;;  %v2578_v28 = vadd.f32 %v1982_v9, %v4139_v47  ;;  %v1984_v11 = vpop.f32.mrb[3].mxu1 }
 0x1d7   : > { %v2575_v4 = vadd.f32 %v2574_v59, %v2204_v18  ;;  %v2206_v37 = vpop.f32.mrb[1].mxu0  ;;  %v2580_v38 = vadd.f32 %v1984_v11, %v4141_v34 }
 0x1d8   : > { %v2577_v39 = vadd.f32 %v2576_v20, %v2206_v37  ;;  %v2208_v23 = vpop.f32.mrb[2].mxu0 }
 0x1d9   : > { %2283 = vst [vmem:[%s4148_s20] sm:$0xff] %v2575_v4  ;;  %v2579_v44 = vadd.f32 %v2578_v28, %v2208_v23  ;;  %v2210_v10 = vpop.f32.mrb[3].mxu0 }
 0x1da   : > { %2284 = vst [vmem:[%s4148_s20 + $0x8] sm:$0xff] %v2577_v39  ;;  %v2581_v29 = vadd.f32 %v2580_v38, %v2210_v10 }
 0x1db   : > { %2285 = vst [vmem:[%s4148_s20 + $0x10] sm:$0xff] %v2579_v44 }
 0x1dc   : > { %2286 = vst [vmem:[%s4148_s20 + $0x18] sm:$0xff] %v2581_v29 }
 0x1de   : > { %v1988_v35 = vpop.f32.mrb[4].mxu1 }
 0x1df   : > { %v2582_v48 = vadd.f32 %v1988_v35, %v4139_v47  ;;  %v1990_v19 = vpop.f32.mrb[5].mxu1 }
 0x1e0   : > { %v2214_v43 = vpop.f32.mrb[4].mxu0  ;;  %v2584_v46 = vadd.f32 %v1990_v19, %v4141_v34  ;;  %v1992_v36 = vpop.f32.mrb[6].mxu1 }
 0x1e1   : > { %v2583_v54 = vadd.f32 %v2582_v48, %v2214_v43  ;;  %v2216_v17 = vpop.f32.mrb[5].mxu0  ;;  %v2586_v45 = vadd.f32 %v1992_v36, %v4139_v47  ;;  %v1994_v49 = vpop.f32.mrb[7].mxu1 }
 0x1e2   : > { %v2585_v8 = vadd.f32 %v2584_v46, %v2216_v17  ;;  %v2218_v2 = vpop.f32.mrb[6].mxu0  ;;  %v2588_v21 = vadd.f32 %v1994_v49, %v4141_v34 }
 0x1e3   : > { %2287 = vst [vmem:[%s4148_s20 + $0x20] sm:$0xff] %v2583_v54  ;;  %v2587_v52 = vadd.f32 %v2586_v45, %v2218_v2  ;;  %v2220_v56 = vpop.f32.mrb[7].mxu0 }
 0x1e4   : > { %2288 = vst [vmem:[%s4148_s20 + $0x28] sm:$0xff] %v2585_v8  ;;  %v2589_v25 = vadd.f32 %v2588_v21, %v2220_v56 }
 0x1e5   : > { %2289 = vst [vmem:[%s4148_s20 + $0x30] sm:$0xff] %v2587_v52 }
 0x1e6   : > { %2290 = vst [vmem:[%s4148_s20 + $0x38] sm:$0xff] %v2589_v25 }
 0x1e8   : > { %v1998_v53 = vpop.f32.mrb[8].mxu1 }
 0x1e9   : > { %v2590_v58 = vadd.f32 %v1998_v53, %v4139_v47  ;;  %v2000_v30 = vpop.f32.mrb[9].mxu1 }
 0x1ea   : > { %v2224_v60 = vpop.f32.mrb[8].mxu0  ;;  %v2592_v26 = vadd.f32 %v2000_v30, %v4141_v34  ;;  %v2002_v33 = vpop.f32.mrb[10].mxu1 }
 0x1eb   : > { %v2591_v31 = vadd.f32 %v2590_v58, %v2224_v60  ;;  %v2226_v22 = vpop.f32.mrb[9].mxu0  ;;  %v2594_v50 = vadd.f32 %v2002_v33, %v4139_v47  ;;  %v2004_v63 = vpop.f32.mrb[11].mxu1 }
 0x1ec   : > { %v2593_v0 = vadd.f32 %v2592_v26, %v2226_v22  ;;  %v2228_v61 = vpop.f32.mrb[10].mxu0  ;;  %v2596_v5 = vadd.f32 %v2004_v63, %v4141_v34 }
 0x1ed   : > { %2291 = vst [vmem:[%s4148_s20 + $0x40] sm:$0xff] %v2591_v31  ;;  %v2595_v1 = vadd.f32 %v2594_v50, %v2228_v61  ;;  %v2230_v62 = vpop.f32.mrb[11].mxu0 }
 0x1ee   : > { %2292 = vst [vmem:[%s4148_s20 + $0x48] sm:$0xff] %v2593_v0  ;;  %v2597_v27 = vadd.f32 %v2596_v5, %v2230_v62 }
 0x1ef   : > { %2293 = vst [vmem:[%s4148_s20 + $0x50] sm:$0xff] %v2595_v1 }
 0x1f0   : > { %2294 = vst [vmem:[%s4148_s20 + $0x58] sm:$0xff] %v2597_v27 }
 0x1f4   : > { %v2008_v51 = vpop.f32.mrb[12].mxu1 }
 0x1f5   : > { %v2598_v57 = vadd.f32 %v2008_v51, %v4139_v47  ;;  %v2010_v32 = vpop.f32.mrb[13].mxu1 }
 0x1f6   : > { %v2600_v41 = vadd.f32 %v2010_v32, %v4141_v34  ;;  %v2012_v6 = vpop.f32.mrb[14].mxu1 }
 0x1f7   : > { %v2234_v3 = vpop.f32.mrb[12].mxu0  ;;  %v2602_v16 = vadd.f32 %v2012_v6, %v4139_v47  ;;  %v2014_v55 = vpop.f32.mrb[15].mxu1 }
 0x1f8   : > { %v2599_v12 = vadd.f32 %v2598_v57, %v2234_v3  ;;  %v2236_v7 = vpop.f32.mrb[13].mxu0  ;;  %v2604_v14 = vadd.f32 %v2014_v55, %v4141_v34 }
 0x1f9   : > { %v2601_v13 = vadd.f32 %v2600_v41, %v2236_v7  ;;  %v2238_v24 = vpop.f32.mrb[14].mxu0 }
 0x1fa   : > { %2295 = vst [vmem:[%s4148_s20 + $0x60] sm:$0xff] %v2599_v12  ;;  %v2603_v40 = vadd.f32 %v2602_v16, %v2238_v24  ;;  %v2240_v42 = vpop.f32.mrb[15].mxu0 }
 0x1fb   : > { %2296 = vst [vmem:[%s4148_s20 + $0x68] sm:$0xff] %v2601_v13  ;;  %v2605_v59 = vadd.f32 %v2604_v14, %v2240_v42 }
 0x1fc   : > { %2297 = vst [vmem:[%s4148_s20 + $0x70] sm:$0xff] %v2603_v40 }
 0x1fd   : > { %2298 = vst [vmem:[%s4148_s20 + $0x78] sm:$0xff] %v2605_v59 }
 0x1fe   : > { %v2018_v15 = vpop.f32.mrb[16].mxu1 }
 0x1ff   : > { %v2606_v20 = vadd.f32 %v2018_v15, %v4139_v47  ;;  %v2020_v9 = vpop.f32.mrb[17].mxu1 }
 0x200   : > { %v2608_v18 = vadd.f32 %v2020_v9, %v4141_v34  ;;  %v2022_v28 = vpop.f32.mrb[18].mxu1 }
 0x201   : > { %v2244_v11 = vpop.f32.mrb[16].mxu0  ;;  %v2610_v4 = vadd.f32 %v2022_v28, %v4139_v47  ;;  %v2024_v37 = vpop.f32.mrb[19].mxu1 }
 0x202   : > { %v2607_v38 = vadd.f32 %v2606_v20, %v2244_v11  ;;  %v2246_v39 = vpop.f32.mrb[17].mxu0  ;;  %v2612_v23 = vadd.f32 %v2024_v37, %v4141_v34 }
 0x203   : > { %v2609_v44 = vadd.f32 %v2608_v18, %v2246_v39  ;;  %v2248_v10 = vpop.f32.mrb[18].mxu0 }
 0x204   : > { %2299 = vst [vmem:[%s4148_s20 + $0x80] sm:$0xff] %v2607_v38  ;;  %v2611_v29 = vadd.f32 %v2610_v4, %v2248_v10  ;;  %v2250_v35 = vpop.f32.mrb[19].mxu0 }
 0x205   : > { %2300 = vst [vmem:[%s4148_s20 + $0x88] sm:$0xff] %v2609_v44  ;;  %v2613_v48 = vadd.f32 %v2612_v23, %v2250_v35 }
 0x206   : > { %2301 = vst [vmem:[%s4148_s20 + $0x90] sm:$0xff] %v2611_v29 }
 0x207   : > { %2302 = vst [vmem:[%s4148_s20 + $0x98] sm:$0xff] %v2613_v48 }
 0x20a   : > { %v2028_v19 = vpop.f32.mrb[20].mxu1 }
 0x20b   : > { %v2614_v43 = vadd.f32 %v2028_v19, %v4139_v47  ;;  %v2030_v46 = vpop.f32.mrb[21].mxu1 }
 0x20c   : > { %v2616_v36 = vadd.f32 %v2030_v46, %v4141_v34  ;;  %v2032_v54 = vpop.f32.mrb[22].mxu1  ;;  %v2254_v17 = vpop.f32.mrb[20].mxu0 }
 0x20d   : > { %v2618_v45 = vadd.f32 %v2032_v54, %v4139_v47  ;;  %v2034_v49 = vpop.f32.mrb[23].mxu1  ;;  %v2615_v8 = vadd.f32 %v2614_v43, %v2254_v17  ;;  %v2256_v2 = vpop.f32.mrb[21].mxu0 }
 0x20e   : > { %v2620_v21 = vadd.f32 %v2034_v49, %v4141_v34  ;;  %v2617_v52 = vadd.f32 %v2616_v36, %v2256_v2  ;;  %v2258_v56 = vpop.f32.mrb[22].mxu0 }
 0x20f   : > { %2303 = vst [vmem:[%s4148_s20 + $0xa0] sm:$0xff] %v2615_v8  ;;  %v2619_v25 = vadd.f32 %v2618_v45, %v2258_v56  ;;  %v2260_v53 = vpop.f32.mrb[23].mxu0 }
 0x210   : > { %2304 = vst [vmem:[%s4148_s20 + $0xa8] sm:$0xff] %v2617_v52  ;;  %v2621_v58 = vadd.f32 %v2620_v21, %v2260_v53 }
 0x211   : > { %2305 = vst [vmem:[%s4148_s20 + $0xb0] sm:$0xff] %v2619_v25 }
 0x212   : > { %2306 = vst [vmem:[%s4148_s20 + $0xb8] sm:$0xff] %v2621_v58 }
 0x215   : > { %v2038_v30 = vpop.f32.mrb[24].mxu1 }
 0x216   : > { %v2622_v60 = vadd.f32 %v2038_v30, %v4139_v47  ;;  %v2040_v26 = vpop.f32.mrb[25].mxu1 }
 0x217   : > { %v2624_v33 = vadd.f32 %v2040_v26, %v4141_v34  ;;  %v2042_v31 = vpop.f32.mrb[26].mxu1  ;;  %v2264_v22 = vpop.f32.mrb[24].mxu0 }
 0x218   : > { %v2626_v50 = vadd.f32 %v2042_v31, %v4139_v47  ;;  %v2044_v63 = vpop.f32.mrb[27].mxu1  ;;  %v2623_v0 = vadd.f32 %v2622_v60, %v2264_v22  ;;  %v2266_v61 = vpop.f32.mrb[25].mxu0 }
 0x219   : > { %v2628_v5 = vadd.f32 %v2044_v63, %v4141_v34  ;;  %v2625_v1 = vadd.f32 %v2624_v33, %v2266_v61  ;;  %v2268_v62 = vpop.f32.mrb[26].mxu0 }
 0x21a   : > { %2307 = vst [vmem:[%s4148_s20 + $0xc0] sm:$0xff] %v2623_v0  ;;  %v2627_v27 = vadd.f32 %v2626_v50, %v2268_v62  ;;  %v2270_v51 = vpop.f32.mrb[27].mxu0 }
 0x21b   : > { %2308 = vst [vmem:[%s4148_s20 + $0xc8] sm:$0xff] %v2625_v1  ;;  %v2629_v57 = vadd.f32 %v2628_v5, %v2270_v51 }
 0x21c   : > { %2309 = vst [vmem:[%s4148_s20 + $0xd0] sm:$0xff] %v2627_v27 }
 0x21d   : > { %2310 = vst [vmem:[%s4148_s20 + $0xd8] sm:$0xff] %v2629_v57 }
 0x21f   : > { %v2048_v32 = vpop.f32.mrb[28].mxu1 }
 0x220   : > { %v2630_v41 = vadd.f32 %v2048_v32, %v4139_v47  ;;  %v2050_v6 = vpop.f32.mrb[29].mxu1 }
 0x221   : > { %v2274_v3 = vpop.f32.mrb[28].mxu0  ;;  %v2632_v16 = vadd.f32 %v2050_v6, %v4141_v34  ;;  %v2052_v55 = vpop.f32.mrb[30].mxu1 }
 0x222   : > { %v2631_v12 = vadd.f32 %v2630_v41, %v2274_v3  ;;  %v2276_v7 = vpop.f32.mrb[29].mxu0  ;;  %v2634_v14 = vadd.f32 %v2052_v55, %v4139_v47  ;;  %v2054_v13 = vpop.f32.mrb[31].mxu1 }
 0x223   : > { %v2633_v24 = vadd.f32 %v2632_v16, %v2276_v7  ;;  %v2278_v40 = vpop.f32.mrb[30].mxu0  ;;  %v2636_v42 = vadd.f32 %v2054_v13, %v4141_v34 }
 0x224   : > { %2311 = vst [vmem:[%s4148_s20 + $0xe0] sm:$0xff] %v2631_v12  ;;  %v2635_v59 = vadd.f32 %v2634_v14, %v2278_v40  ;;  %v2280_v15 = vpop.f32.mrb[31].mxu0 }
 0x225   : > { %2312 = vst [vmem:[%s4148_s20 + $0xe8] sm:$0xff] %v2633_v24  ;;  %v2637_v47 = vadd.f32 %v2636_v42, %v2280_v15 }
 0x226   : > { %2313 = vst [vmem:[%s4148_s20 + $0xf0] sm:$0xff] %v2635_v59 }
 0x227   : > { %2314 = vst [vmem:[%s4148_s20 + $0xf8] sm:$0xff] %v2637_v47 }
 0x228   : > { %3322 = shalt.err (!%p3319_p7)
}
 0x229   : > { %s3323_s10 = scalar_lea.hbm %s4212_s16, 4096  ;;  %s3327_s22 = scalar_lea.hbm %s4263_s3, 12288 }
 0x22a   : > { %p3324_p9 = scmp.ne.s32.totalorder %s4212_s16, %s3323_s10  ;;  %p3328_p5 = scmp.lt.u32.totalorder %s4212_s16, %s4263_s3 }
 0x22b   : > { %p3329_p10 = scmp.lt.u32.totalorder %s3327_s22, %s3323_s10  ;;  %p3331_p1 = scmp.lt.u32.totalorder %s3323_s10, %s4212_s16 }
 0x22c   : > { %p3325_p12 = pnand %p3324_p9, %p3523_p4 }
 0x22d   : > { %p3330_p11 = por %p3329_p10, %p3328_p5 }
 0x22e   : > { %p3326_p0 = pneg %p3325_p12 }
 0x22f   : > { %p3332_p2 = por %p3331_p1, %p3330_p11 }
 0x231   : > { %p3333_p6 = pnand %p3332_p2, %p3326_p0 }
 0x233   : > { %3336 = shalt.err (!%p3333_p6)
}
 0x234   : > { %s3389_s18 = smov 256   ;;  %s3390_s20 = smov 16  }
 0x235   : > { %2712 = dma.vmem_to_hbm [thread:$0]  (%p3523_p4), %s4214_s24, 4096, %s4212_s16, %s2316_s23, %s3389_s18, %s3389_s18, %s3390_s20  }
 0x236 PF: > { %p2734_p8 = scmp.ge.s32.totalorder %s3379_s15, 2  ;;  %s2345_s17 = sand.u32 1, %s3367_s12  }
 0x237   : > { %p4278_p13 = scmp.ne.s32.totalorder %s4268_s19, 0  ;;  %s2346_s26 = scalar_lea.sflag [#allocation4], %s2345_s17 }
 0x239   : > { %p2726_p3 = pnand %p2734_p8, %p4278_p13 }
 0x23b   : > { %3362 = dma.done.wait (!%p2726_p3), %s2346_s26, 4096  }
 0x23c   : > { %3364 = vsyncadd (!%p2726_p3), %s2346_s26, 4294963200  ;;  %p17_p7 = scmp.ge.s32.totalorder %s3513_s4, 5   ;;  %s4279_s12 = smov %s3371_s13 }
 0x23d   : > { %s4280_s13 = smov %s3375_s14  ;;  %s4281_s14 = smov %s3529_s7 }
 0x23e   : > { %s4282_s15 = smov %s3513_s4  ;;  %19 = sbr.rel (!%p17_p7) target bundleno = 6 (0x6), region = 85 }
 0x245   :  { %2351 = vsyncpa [#allocation3], 1 }
 0x246   :  { %2353 = vsyncpa [#allocation3 + $0x1], 1 }
 0x247   :  { %2354 = vsyncpa [#allocation6], 1 }
 0x248   :  { %2355 = vsyncpa [#allocation4], 1 }
 0x249   :  { %2357 = vsyncpa [#allocation4 + $0x1], 1 }

// kernel: _gelu_linear_impl.1
= control target key start
LH: loop header
LB: loop body
LE: loop exit
PB: predicated region body
PF: predicated region fallthrough
CT: control target
= control target key end

     0   :  { %8 = vsyncpa [#allocation3], 0  ;;  %s4260_s0 = inlined_call_operand.hbm [shape: f32[384,1024], index: 0, kind: input, shape index: {}]   ;;  %s4261_s1 = inlined_call_operand.hbm [shape: bf16[1024,256], index: 1, kind: input, shape index: {}]   ;;  %s4262_s2 = inlined_call_operand.hbm [shape: f32[1,256], index: 2, kind: input, shape index: {}]   ;;  %s4263_s3 = inlined_call_operand.hbm [shape: f32[384,256], index: 3, kind: output, shape index: {}]  }
   0x1   :  { %10 = vsyncpa [#allocation3 + $0x1], 0 }
   0x2   :  { %11 = vsyncpa [#allocation6], 0 }
   0x3   :  { %12 = vsyncpa [#allocation4], 0 }
   0x4   :  { %14 = vsyncpa [#allocation4 + $0x1], 0  ;;  %s3411_s12 = smov 0   ;;  %s3413_s13 = smov 0  }
   0x5   :  { %s3415_s14 = smov 0   ;;  %s3417_s15 = smov 0  }
   0x6 LB: > { %s3432_s16 = sadd.s32 4294967295, %s3379_s15   ;;  %s2422_s17 = sadd.s32 4294967294, %s3379_s15   ;;  %s3379_s15 = sphi %s3417_s15, %s4282_s15   ;;  %s3375_s14 = sphi %s3415_s14, %s4281_s14   ;;  %s3371_s13 = sphi %s3413_s13, %s4280_s13   ;;  %s3367_s12 = sphi %s3411_s12, %s4279_s12  }
   0x7   : > { %p40_p0 = scmp.ne.s32.totalorder %s3371_s13, %s3367_s12  ;;  %p4264_p1 = scmp.eq.s32.totalorder %s3432_s16, 0 }
   0x8   : > { %p112_p3 = scmp.eq.s32.totalorder %s2422_s17, 2  ;;  %p2423_p5 = scmp.ge.s32.totalorder %s3379_s15, 1 }
   0x9   : > { %p3441_p4 = por %p4264_p1, %p40_p0  ;;  %p119_p7 = scmp.lt.s32.totalorder %s3379_s15, 4 }
   0xa   : > { %p3446_p6 = por %p112_p3, %p40_p0  ;;  %s3381_s21 = smov [#allocation5]  }
   0xb   : > { %s4267_s18 = scalar_select %p3441_p4, 1, 0 }
   0xc   : > { %s4268_s19 = scalar_select %p3446_p6, 1, 0 }
   0xd   : > { %p3451_p8 = pnand %p2423_p5, %p119_p7  ;;  %s131_s22 = sshll.u32 %s3381_s21, 4  ;;  %s132_s22 = int_to_ptr.vmem [resolvable:$true] %s131_s22 }
   0xe   : > { %s3382_s24 = smov [#allocation7]   ;;  %s3223_s28 = scalar_lea.hbm %s4261_s1, 16384 }
   0xf   : > { %s4269_s20 = scalar_select %p3451_p8, 1, 0 }
  0x10   : > { %p2714_p9 = pneg %p3451_p8  ;;  %s145_s25 = sshll.u32 %s3382_s24, 4  ;;  %s3463_s25 = int_to_ptr.vmem [resolvable:$true] %s145_s25 }
  0x11   : > { %p3224_p11 = scmp.ne.s32.totalorder %s4261_s1, %s3223_s28  ;;  %p3230_p3 = scmp.lt.u32.totalorder %s3223_s28, %s4261_s1 }
  0x12   : > { %p3459_p10 = pnand %p2714_p9, %p4264_p1 }
  0x14   : > { %p3225_p12 = pneg %p3459_p10 }
  0x16   : > { %p3226_p13 = pnand %p3225_p12, %p3224_p11 }
  0x18   : > { %p3227_p0 = pneg %p3226_p13 }
  0x1a   : > { %p3232_p5 = pnand %p3230_p3, %p3227_p0 }
  0x1c   : > { %3235 = shalt.err (!%p3232_p5)
}
  0x1d   : > { %s3236_s6 = scalar_lea.vmem %s132_s22, 16384  ;;  %p3244_p2 = scmp.lt.s32.totalorder %s132_s22, %s132_s22 }
  0x1e   : > { %p3237_p7 = scmp.ne.s32.totalorder %s132_s22, %s3236_s6  ;;  %p3245_p6 = scmp.lt.s32.totalorder %s3236_s6, %s3236_s6 }
  0x20   : > { %p3239_p9 = pnand %p3237_p7, %p3225_p12  ;;  %p3246_p4 = por %p3245_p6, %p3244_p2 }
  0x22   : > { %p3240_p1 = pneg %p3239_p9 }
  0x24   : > { %p3247_p8 = pnand %p3246_p4, %p3240_p1 }
  0x26   : > { %3250 = shalt.err (!%p3247_p8)
}
  0x27   : > { %s3383_s7 = smov 128   ;;  %s3384_s8 = smov 8  }
  0x28   : > { %2717 = dma.hbm_to_vmem [thread:$0]  (!%p3459_p10), %s4261_s1, 16384, %s132_s22, [#allocation6], %s3383_s7, %s3383_s7, %s3384_s8  }
  0x29   : > { %s3251_s21 = scalar_lea.hbm %s4262_s2, 32 }
  0x2a   : > { %p3252_p11 = scmp.ne.s32.totalorder %s4262_s2, %s3251_s21  ;;  %p3258_p4 = scmp.lt.u32.totalorder %s3251_s21, %s4262_s2 }
  0x2c   : > { %p3254_p1 = pnand %p3252_p11, %p3225_p12 }
  0x2e   : > { %p3255_p2 = pneg %p3254_p1 }
  0x30   : > { %p3260_p6 = pnand %p3258_p4, %p3255_p2 }
  0x32   : > { %3263 = shalt.err (!%p3260_p6)
}
  0x33   : > { %s3264_s22 = scalar_lea.vmem %s3463_s25, 32  ;;  %p3272_p3 = scmp.lt.s32.totalorder %s3463_s25, %s3463_s25 }
  0x34   : > { %p3265_p8 = scmp.ne.s32.totalorder %s3463_s25, %s3264_s22  ;;  %p3273_p5 = scmp.lt.s32.totalorder %s3264_s22, %s3264_s22 }
  0x36   : > { %p3267_p13 = pnand %p3265_p8, %p3225_p12  ;;  %p3274_p7 = por %p3273_p5, %p3272_p3 }
  0x38   : > { %p3268_p0 = pneg %p3267_p13 }
  0x3a   : > { %p3275_p9 = pnand %p3274_p7, %p3268_p0 }
  0x3c   : > { %3278 = shalt.err (!%p3275_p9)
}
  0x3d   : > { %2720 = dma.hbm_to_vmem [thread:$0]  (!%p3459_p10), %s4262_s2, 32, %s3463_s25, [#allocation6]  }
  0x3e   : > { %s3513_s4 = sadd.s32 1, %s3379_s15   ;;  %s27_s23 = sadd.s32 1, %s3375_s14 }
  0x3f   : > { %s24_s5 = ssub.s32 %s3379_s15, %s3513_s4  ;;  %p34_p12 = scmp.ne.s32.totalorder %s3375_s14, %s3371_s13 }
  0x40   : > { %p25_p11 = scmp.eq.s32.totalorder %s24_s5, 0  ;;  %p35_p1 = scmp.eq.s32.totalorder %s3379_s15, 0 }
  0x41   : > { %p4271_p2 = scmp.eq.s32.totalorder %s3432_s16, 2  ;;  %p2731_p6 = scmp.lt.s32.totalorder %s3379_s15, 3 }
  0x42   : > { %s3529_s7 = scalar_select %p25_p11, %s3375_s14, %s27_s23  }
  0x43   : > { %p3523_p4 = por %p4271_p2, %p34_p12  ;;  %p36_p8 = por %p35_p1, %p34_p12 }
  0x44   : > { %s156_s8 = sand.u32 1, %s3375_s14   ;;  %s2571_s25 = sshll.u32 %s3379_s15, 14 }
  0x45   : > { %s2427_s9 = sshll.u32 %s156_s8, 10  ;;  %s3536_s17 = scalar_lea.hbm %s4260_s0, %s2571_s25 }
  0x46   : > { %s160_s21 = scalar_lea.vmem [#allocation2], %s2427_s9  ;;  %p3540_p10 = pnand %p2731_p6, %p36_p8 }
  0x47   : > { %s168_s24 = sshll.u32 %s160_s21, 4  ;;  %s3544_s27 = scalar_lea.sflag [#allocation3], %s156_s8  ;;  %s3538_s24 = int_to_ptr.vmem [resolvable:$true] %s168_s24 }
  0x48   : > { %s3279_s28 = scalar_lea.hbm %s3536_s17, 16384  ;;  %p3281_p0 = pneg %p3540_p10 }
  0x49   : > { %p3280_p13 = scmp.ne.s32.totalorder %s3536_s17, %s3279_s28  ;;  %s3284_s30 = scalar_lea.hbm %s4260_s0, 49152 }
  0x4a   : > { %p3285_p7 = scmp.lt.u32.totalorder %s3536_s17, %s4260_s0  ;;  %p3286_p9 = scmp.lt.u32.totalorder %s3284_s30, %s3279_s28 }
  0x4b   : > { %p3282_p3 = pnand %p3281_p0, %p3280_p13  ;;  %p3288_p11 = scmp.lt.u32.totalorder %s3279_s28, %s3536_s17 }
  0x4c   : > { %p3287_p12 = por %p3286_p9, %p3285_p7 }
  0x4d   : > { %p3283_p5 = pneg %p3282_p3 }
  0x4e   : > { %p3289_p1 = por %p3288_p11, %p3287_p12 }
  0x50   : > { %p3290_p2 = pnand %p3289_p1, %p3283_p5 }
  0x52   : > { %3293 = shalt.err (!%p3290_p2)
}
  0x53   : > { %s3294_s8 = scalar_lea.vmem %s3538_s24, 16384  ;;  %s3385_s9 = smov [#allocation2]  }
  0x54   : > { %p3295_p6 = scmp.ne.s32.totalorder %s3538_s24, %s3294_s8  ;;  %s3299_s25 = sshll.u32 %s3385_s9, 4  ;;  %s3300_s25 = int_to_ptr.vmem [resolvable:$false] %s3299_s25 }
  0x55   : > { %s3301_s10 = scalar_lea.vmem %s3300_s25, 32768  ;;  %p3302_p3 = scmp.lt.s32.totalorder %s3538_s24, %s3300_s25 }
  0x56   : > { %p3297_p8 = pnand %p3295_p6, %p3281_p0  ;;  %p3303_p7 = scmp.lt.s32.totalorder %s3301_s10, %s3294_s8 }
  0x58   : > { %p3298_p13 = pneg %p3297_p8  ;;  %p3304_p9 = por %p3303_p7, %p3302_p3 }
  0x5a   : > { %p3305_p12 = pnand %p3304_p9, %p3298_p13 }
  0x5c   : > { %3308 = shalt.err (!%p3305_p12)
}
  0x5d   : > { %s3386_s11 = smov 1024   ;;  %s3387_s21 = smov 64  }
  0x5e   : > { %2724 = dma.hbm_to_vmem [thread:$0]  (!%p3540_p10), %s3536_s17, 16384, %s3538_s24, %s3544_s27, %s3386_s11, %s3386_s11, %s3387_s21  }
  0x5f   : > { %p4274_p0 = scmp.ne.s32.totalorder %s4269_s20, 0 }
  0x60   : > { %s3575_s28 = sand.u32 (!%p4274_p0), 1, %s3371_s13   ;;  %p4275_p5 = scmp.ne.s32.totalorder (!%p4274_p0), %s4267_s18, 0 }
  0x61   : > { %180 = sbr.rel (%p4274_p0) target bundleno = 566 (0x236), region = 32  ;;  %s2432_s22 = sshll.u32 (!%p4274_p0), %s3575_s28, 10 }
  0x62   : > { %s183_s29 = scalar_lea.sflag (!%p4274_p0), [#allocation3], %s3575_s28  ;;  %s3579_s30 = scalar_lea.vmem (!%p4274_p0), [#allocation2], %s2432_s22 }
  0x68   : > { %3354 = dma.done.wait (%p4275_p5), %s183_s29, 16384  }
  0x69   : > { %3356 = vsyncadd (%p4275_p5), %s183_s29, 4294950912  ;;  %p4276_p10 = scmp.eq.s32.totalorder %s3432_s16, 0 }
  0x6b   : > { %3358 = dma.done.wait (%p4276_p10), [#allocation6], 16416   ;;  %p4277_p11 = pmov %p4276_p10 }
  0x6c   : > { %v2775_v0 = vld [vmem:[#allocation5 + $0x4] ss:$8 sps:$4 sm:$0xff]   ;;  %v2779_v2 = vld [vmem:[#allocation5] ss:$8 sps:$4 sm:$0xff]   ;;  %v2781_v4 = vld [vmem:[#allocation5 + $0x14] ss:$8 sps:$4 sm:$0xff]  }
  0x6d   : > { %3360 = vsyncadd (%p4277_p11), [#allocation6], 4294950880  ;;  %v2777_v1 = vld [vmem:[#allocation5 + $0x204] ss:$8 sps:$4 sm:$0xff]   ;;  %1831 = vmatprep.subr.bf16.mxu1 %v2775_v0  ;;  %v2780_v3 = vld [vmem:[#allocation5 + $0x200] ss:$8 sps:$4 sm:$0xff]  }
  0x6e   : > { %2057 = vmatprep.subr.bf16.mxu0 %v2777_v1  ;;  %1832 = vmatpush1.bf16.msra.mxu1 %v2779_v2  ;;  %v2783_v5 = vld [vmem:[#allocation5 + $0x214] ss:$8 sps:$4 sm:$0xff]   ;;  %v2785_v6 = vld [vmem:[#allocation5 + $0x10] ss:$8 sps:$4 sm:$0xff]   ;;  %v2787_v8 = vld [vmem:[#allocation5 + $0x24] ss:$8 sps:$4 sm:$0xff]  }
  0x6f   : > { %2058 = vmatpush1.bf16.msra.mxu0 %v2780_v3  ;;  %1833 = vmatprep.subr.bf16.mxu1 %v2781_v4  ;;  %v2786_v7 = vld [vmem:[#allocation5 + $0x210] ss:$8 sps:$4 sm:$0xff]   ;;  %v2789_v9 = vld [vmem:[#allocation5 + $0x224] ss:$8 sps:$4 sm:$0xff]   ;;  %v2791_v10 = vld [vmem:[#allocation5 + $0x20] ss:$8 sps:$4 sm:$0xff]  }
  0x70   : > { %2059 = vmatprep.subr.bf16.mxu0 %v2783_v5  ;;  %v2792_v11 = vld [vmem:[#allocation5 + $0x220] ss:$8 sps:$4 sm:$0xff]   ;;  %v2793_v12 = vld [vmem:[#allocation5 + $0x34] ss:$8 sps:$4 sm:$0xff]   ;;  %v2797_v14 = vld [vmem:[#allocation5 + $0x30] ss:$8 sps:$4 sm:$0xff]  }
  0x71   : > { %v2795_v13 = vld [vmem:[#allocation5 + $0x234] ss:$8 sps:$4 sm:$0xff]   ;;  %v2798_v15 = vld [vmem:[#allocation5 + $0x230] ss:$8 sps:$4 sm:$0xff]   ;;  %v2799_v16 = vld [vmem:[#allocation5 + $0x44] ss:$8 sps:$4 sm:$0xff]  }
  0x72   : > { %1834 = vmatpush1.bf16.msra.mxu1 %v2785_v6  ;;  %v2801_v17 = vld [vmem:[#allocation5 + $0x244] ss:$8 sps:$4 sm:$0xff]   ;;  %v2803_v18 = vld [vmem:[#allocation5 + $0x40] ss:$8 sps:$4 sm:$0xff]   ;;  %v2805_v20 = vld [vmem:[#allocation5 + $0x54] ss:$8 sps:$4 sm:$0xff]  }
  0x73   : > { %2060 = vmatpush1.bf16.msra.mxu0 %v2786_v7  ;;  %1835 = vmatprep.subr.bf16.mxu1 %v2787_v8  ;;  %v2804_v19 = vld [vmem:[#allocation5 + $0x240] ss:$8 sps:$4 sm:$0xff]   ;;  %v2807_v21 = vld [vmem:[#allocation5 + $0x254] ss:$8 sps:$4 sm:$0xff]   ;;  %v2809_v22 = vld [vmem:[#allocation5 + $0x50] ss:$8 sps:$4 sm:$0xff]  }
  0x74   : > { %2061 = vmatprep.subr.bf16.mxu0 %v2789_v9  ;;  %v2810_v23 = vld [vmem:[#allocation5 + $0x250] ss:$8 sps:$4 sm:$0xff]   ;;  %v2811_v24 = vld [vmem:[#allocation5 + $0x64] ss:$8 sps:$4 sm:$0xff]   ;;  %v2815_v26 = vld [vmem:[#allocation5 + $0x60] ss:$8 sps:$4 sm:$0xff]  }
  0x75   : > { %v2813_v25 = vld [vmem:[#allocation5 + $0x264] ss:$8 sps:$4 sm:$0xff]   ;;  %v2816_v27 = vld [vmem:[#allocation5 + $0x260] ss:$8 sps:$4 sm:$0xff]   ;;  %v2817_v28 = vld [vmem:[#allocation5 + $0x74] ss:$8 sps:$4 sm:$0xff]  }
  0x76   : > { %1836 = vmatpush1.bf16.msra.mxu1 %v2791_v10  ;;  %v2819_v29 = vld [vmem:[#allocation5 + $0x274] ss:$8 sps:$4 sm:$0xff]   ;;  %v2821_v30 = vld [vmem:[#allocation5 + $0x70] ss:$8 sps:$4 sm:$0xff]   ;;  %v2823_v32 = vld [vmem:[#allocation5 + $0x84] ss:$8 sps:$4 sm:$0xff]  }
  0x77   : > { %2062 = vmatpush1.bf16.msra.mxu0 %v2792_v11  ;;  %1837 = vmatprep.subr.bf16.mxu1 %v2793_v12  ;;  %v2822_v31 = vld [vmem:[#allocation5 + $0x270] ss:$8 sps:$4 sm:$0xff]   ;;  %v2825_v33 = vld [vmem:[#allocation5 + $0x284] ss:$8 sps:$4 sm:$0xff]   ;;  %v2827_v34 = vld [vmem:[#allocation5 + $0x80] ss:$8 sps:$4 sm:$0xff]  }
  0x78   : > { %2063 = vmatprep.subr.bf16.mxu0 %v2795_v13  ;;  %v2828_v35 = vld [vmem:[#allocation5 + $0x280] ss:$8 sps:$4 sm:$0xff]   ;;  %v2829_v36 = vld [vmem:[#allocation5 + $0x94] ss:$8 sps:$4 sm:$0xff]   ;;  %v2833_v38 = vld [vmem:[#allocation5 + $0x90] ss:$8 sps:$4 sm:$0xff]  }
  0x79   : > { %v2831_v37 = vld [vmem:[#allocation5 + $0x294] ss:$8 sps:$4 sm:$0xff]   ;;  %v2834_v39 = vld [vmem:[#allocation5 + $0x290] ss:$8 sps:$4 sm:$0xff]   ;;  %v2835_v40 = vld [vmem:[#allocation5 + $0xa4] ss:$8 sps:$4 sm:$0xff]  }
  0x7a   : > { %1838 = vmatpush1.bf16.msra.mxu1 %v2797_v14  ;;  %v2837_v41 = vld [vmem:[#allocation5 + $0x2a4] ss:$8 sps:$4 sm:$0xff]   ;;  %v2839_v42 = vld [vmem:[#allocation5 + $0xa0] ss:$8 sps:$4 sm:$0xff]   ;;  %v2841_v44 = vld [vmem:[#allocation5 + $0xb4] ss:$8 sps:$4 sm:$0xff]  }
  0x7b   : > { %2064 = vmatpush1.bf16.msra.mxu0 %v2798_v15  ;;  %1839 = vmatprep.subr.bf16.mxu1 %v2799_v16  ;;  %v2840_v43 = vld [vmem:[#allocation5 + $0x2a0] ss:$8 sps:$4 sm:$0xff]   ;;  %v2843_v45 = vld [vmem:[#allocation5 + $0x2b4] ss:$8 sps:$4 sm:$0xff]   ;;  %v2845_v46 = vld [vmem:[#allocation5 + $0xb0] ss:$8 sps:$4 sm:$0xff]  }
  0x7c   : > { %2065 = vmatprep.subr.bf16.mxu0 %v2801_v17  ;;  %v2846_v47 = vld [vmem:[#allocation5 + $0x2b0] ss:$8 sps:$4 sm:$0xff]   ;;  %v220_v48 = vld [vmem:[%s3579_s30 + $0x8] sm:$0xff]  ;;  %v219_v56 = vld [vmem:[%s3579_s30] sm:$0xff]  ;;  %s2435_s18 = sshll.u32 %s3575_s28, 8  ;;  %s2573_s17 = sshll.u32 %s3432_s16, 12 }
  0x7d   : > { %v2847_v49 = vld [vmem:[#allocation5 + $0xc4] ss:$8 sps:$4 sm:$0xff]   ;;  %v476_v51 = vmul.f32 0.70710677, %v220_v48  ;;  %v2851_v60 = vld [vmem:[#allocation5 + $0xc0] ss:$8 sps:$4 sm:$0xff]   ;;  %s4212_s16 = scalar_lea.hbm %s4263_s3, %s2573_s17 }
  0x7e   : > { %1840 = vmatpush1.bf16.msra.mxu1 %v2803_v18  ;;  %v228_v50 = vld [vmem:[%s3579_s30 + $0x48] sm:$0xff]  ;;  %v227_v59 = vld [vmem:[%s3579_s30 + $0x40] sm:$0xff]  ;;  %v475_v61 = vmul.f32 0.70710677, %v219_v56  ;;  %v2853_v0 = vld [vmem:[#allocation5 + $0xd4] ss:$8 sps:$4 sm:$0xff]  }
  0x7f   : > { %2066 = vmatpush1.bf16.msra.mxu0 %v2804_v19  ;;  %1841 = vmatprep.subr.bf16.mxu1 %v2805_v20  ;;  %v224_v52 = vld [vmem:[%s3579_s30 + $0x28] sm:$0xff]  ;;  %v484_v55 = vmul.f32 0.70710677, %v228_v50  ;;  %2967 = verf.f32 %v476_v51  ;;  %v483_v62 = vmul.f32 0.70710677, %v227_v59  ;;  %v223_v1 = vld [vmem:[%s3579_s30 + $0x20] sm:$0xff] }
  0x80   : > { %2067 = vmatprep.subr.bf16.mxu0 %v2807_v21  ;;  %v232_v53 = vld [vmem:[%s3579_s30 + $0x68] sm:$0xff]  ;;  %v480_v57 = vmul.f32 0.70710677, %v224_v52  ;;  %v231_v2 = vld [vmem:[%s3579_s30 + $0x60] sm:$0xff]  ;;  %v2855_v3 = vld [vmem:[#allocation5 + $0x2d4] ss:$8 sps:$4 sm:$0xff]  }
  0x81   : > { %v2849_v54 = vld [vmem:[#allocation5 + $0x2c4] ss:$8 sps:$4 sm:$0xff]   ;;  %v488_v58 = vmul.f32 0.70710677, %v232_v53  ;;  %2969 = verf.f32 %v484_v55  ;;  %v2852_v63 = vld [vmem:[#allocation5 + $0x2c0] ss:$8 sps:$4 sm:$0xff]  }
  0x82   : > { %1842 = vmatpush1.bf16.msra.mxu1 %v2809_v22  ;;  %2971 = verf.f32 %v480_v57  ;;  %v479_v4 = vmul.f32 0.70710677, %v223_v1  ;;  %v487_v5 = vmul.f32 0.70710677, %v231_v2  ;;  %v2857_v6 = vld [vmem:[#allocation5 + $0xd0] ss:$8 sps:$4 sm:$0xff]  }
  0x83   : > { %2068 = vmatpush1.bf16.msra.mxu0 %v2810_v23  ;;  %1843 = vmatprep.subr.bf16.mxu1 %v2811_v24  ;;  %2973 = verf.f32 %v488_v58  ;;  %v2858_v7 = vld [vmem:[#allocation5 + $0x2d0] ss:$8 sps:$4 sm:$0xff]   ;;  %v2859_v8 = vld [vmem:[#allocation5 + $0xe4] ss:$8 sps:$4 sm:$0xff]   ;;  %v2863_v12 = vld [vmem:[#allocation5 + $0xe0] ss:$8 sps:$4 sm:$0xff]  }
  0x84   : > { %2069 = vmatprep.subr.bf16.mxu0 %v2813_v25  ;;  %2975 = verf.f32 %v475_v61  ;;  %v2861_v9 = vld [vmem:[#allocation5 + $0x2e4] ss:$8 sps:$4 sm:$0xff]   ;;  %v2864_v13 = vld [vmem:[#allocation5 + $0x2e0] ss:$8 sps:$4 sm:$0xff]   ;;  %v348_v14 = vmul.f32 0.5, %v220_v48  ;;  %v356_v20 = vmul.f32 0.5, %v228_v50 }
  0x85   : > { %2977 = verf.f32 %v483_v62  ;;  %v3598_v10 = vld [vmem:[%s3579_s30 + $0x88] sm:$0xff]  ;;  %v2865_v18 = vld [vmem:[#allocation5 + $0xf4] ss:$8 sps:$4 sm:$0xff]   ;;  %v352_v21 = vmul.f32 0.5, %v224_v52  ;;  %v360_v22 = vmul.f32 0.5, %v232_v53  ;;  %v239_v51 = vld [vmem:[%s3579_s30 + $0xa0] sm:$0xff] }
  0x86   : > { %1844 = vmatpush1.bf16.msra.mxu1 %v2815_v26  ;;  %2979 = verf.f32 %v479_v4  ;;  %v3601_v11 = vld [vmem:[%s3579_s30 + $0xc8] sm:$0xff]  ;;  %v492_v15 = vmul.f32 0.70710677, %v3598_v10  ;;  %v2867_v19 = vld [vmem:[#allocation5 + $0x2f4] ss:$8 sps:$4 sm:$0xff]   ;;  %s4148_s20 = scalar_lea.vmem [#allocation8], %s2435_s18 }
  0x87   : > { %2070 = vmatpush1.bf16.msra.mxu0 %v2816_v27  ;;  %1845 = vmatprep.subr.bf16.mxu1 %v2817_v28  ;;  %2981 = verf.f32 %v487_v5  ;;  %v500_v16 = vmul.f32 0.70710677, %v3601_v11  ;;  %v3606_v23 = vld [vmem:[%s3579_s30 + $0xa8] sm:$0xff]  ;;  %v347_v27 = vmul.f32 0.5, %v219_v56  ;;  %v355_v28 = vmul.f32 0.5, %v227_v59  ;;  %v247_v56 = vld [vmem:[%s3579_s30 + $0xe0] sm:$0xff] }
  0x88   : > { %2071 = vmatprep.subr.bf16.mxu0 %v2819_v29  ;;  %v3609_v24 = vld [vmem:[%s3579_s30 + $0xe8] sm:$0xff]  ;;  %2983 = verf.f32 %v492_v15  ;;  %v3612_v29 = vld [vmem:[%s3579_s30 + $0x80] sm:$0xff]  ;;  %v372_v5 = vmul.f32 0.5, %v3601_v11  ;;  %s2330_s24 = sshll.u32 %s4148_s20, 4  ;;  %s2316_s23 = scalar_lea.sflag [#allocation4], %s3575_s28  ;;  %s4214_s24 = int_to_ptr.vmem [resolvable:$true] %s2330_s24 }
  0x89   : > { %v2968_v17 = vpop.eup %2967  ;;  %2985 = verf.f32 %v500_v16  ;;  %v2871_v59 = vld [vmem:[#allocation5 + $0x100] ss:$8 sps:$4 sm:$0xff]   ;;  %v2876_v61 = vld [vmem:[#allocation5 + $0x304] ss:$8 sps:$4 sm:$0xff]   ;;  %v363_v11 = vmul.f32 0.5, %v3612_v29  ;;  %s3309_s5 = scalar_lea.vmem %s4214_s24, 4096 }
  0x8a   : > { %1846 = vmatpush1.bf16.msra.mxu1 %v2821_v30  ;;  %v732_v26 = vadd.f32 1.0, %v2968_v17  ;;  %v2874_v4 = vld [vmem:[#allocation5 + $0x300] ss:$8 sps:$4 sm:$0xff]   ;;  %v2877_v17 = vld [vmem:[#allocation5 + $0x110] ss:$8 sps:$4 sm:$0xff]   ;;  %p3310_p1 = scmp.ne.s32.totalorder %s4214_s24, %s3309_s5  ;;  %s3388_s8 = smov [#allocation8]  }
  0x8b   : > { %2072 = vmatpush1.bf16.msra.mxu0 %v2822_v31  ;;  %1847 = vmatprep.subr.bf16.mxu1 %v2823_v32  ;;  %v2970_v25 = vpop.eup %2969  ;;  %v496_v32 = vmul.f32 0.70710677, %v3606_v23  ;;  %v260_v15 = vld [vmem:[%s3579_s30 + $0x148] sm:$0xff]  ;;  %s3313_s9 = sshll.u32 %s3388_s8, 4  ;;  %s3314_s9 = int_to_ptr.vmem [resolvable:$false] %s3313_s9 }
  0x8c   : > { %2073 = vmatprep.subr.bf16.mxu0 %v2825_v33  ;;  %v2972_v30 = vpop.eup %2971  ;;  %v740_v31 = vadd.f32 1.0, %v2970_v25  ;;  %v504_v33 = vmul.f32 0.70710677, %v3609_v24  ;;  %p3311_p2 = pnand %p3310_p1, %p3523_p4  ;;  %s3315_s25 = scalar_lea.vmem %s3314_s9, 8192 }
  0x8d   : > { %2987 = verf.f32 %v496_v32  ;;  %v259_v32 = vld [vmem:[%s3579_s30 + $0x140] sm:$0xff]  ;;  %p3316_p8 = scmp.lt.s32.totalorder %s4214_s24, %s3314_s9  ;;  %p3317_p13 = scmp.lt.s32.totalorder %s3315_s25, %s3309_s5 }
  0x8e   : > { %1848 = vmatpush1.bf16.msra.mxu1 %v2827_v34  ;;  %v243_v34 = vld [vmem:[%s3579_s30 + $0xc0] sm:$0xff]  ;;  %2989 = verf.f32 %v504_v33  ;;  %p3312_p6 = pneg %p3311_p2 }
  0x8f   : > { %2074 = vmatpush1.bf16.msra.mxu0 %v2828_v35  ;;  %1849 = vmatprep.subr.bf16.mxu1 %v2829_v36  ;;  %v2974_v35 = vpop.eup %2973  ;;  %v2869_v36 = vld [vmem:[#allocation5 + $0xf0] ss:$8 sps:$4 sm:$0xff]   ;;  %v499_v50 = vmul.f32 0.70710677, %v243_v34  ;;  %p3318_p3 = por %p3317_p13, %p3316_p8 }
  0x90   : > { %2075 = vmatprep.subr.bf16.mxu0 %v2831_v37  ;;  %v2870_v37 = vld [vmem:[#allocation5 + $0x2f0] ss:$8 sps:$4 sm:$0xff]  }
  0x91   : > { %p3319_p7 = pnand %p3318_p3, %p3312_p6 }
  0x92   : > { %1850 = vmatpush1.bf16.msra.mxu1 %v2833_v38  ;;  %v860_v38 = vmul.f32 %v732_v26, %v348_v14  ;;  %v252_v14 = vld [vmem:[%s3579_s30 + $0x108] sm:$0xff]  ;;  %v516_v26 = vmul.f32 0.70710677, %v260_v15 }
  0x93   : > { %2076 = vmatpush1.bf16.msra.mxu0 %v2834_v39  ;;  %1851 = vmatprep.subr.bf16.mxu1 %v2835_v40  ;;  %v736_v39 = vadd.f32 1.0, %v2972_v30  ;;  %v351_v40 = vmul.f32 0.5, %v223_v1  ;;  %v2879_v1 = vld [vmem:[#allocation5 + $0x114] ss:$8 sps:$4 sm:$0xff]   ;;  %v3631_v30 = vmul.f32 0.5, %v239_v51 }
  0x94   : > { %2077 = vmatprep.subr.bf16.mxu0 %v2837_v41  ;;  %v359_v41 = vmul.f32 0.5, %v231_v2  ;;  %v364_v2 = vmul.f32 0.5, %v3598_v10  ;;  %v376_v10 = vmul.f32 0.5, %v3609_v24  ;;  %v2885_v24 = vld [vmem:[#allocation5 + $0x124] ss:$8 sps:$4 sm:$0xff]  }
  0x95   : > { %v864_v48 = vmul.f32 %v736_v39, %v352_v21  ;;  %v264_v21 = vld [vmem:[%s3579_s30 + $0x168] sm:$0xff] }
  0x96   : > { %1852 = vmatpush1.bf16.msra.mxu1 %v2839_v42  ;;  %v2976_v42 = vpop.eup %2975 }
  0x97   : > { %2078 = vmatpush1.bf16.msra.mxu0 %v2840_v43  ;;  %1853 = vmatprep.subr.bf16.mxu1 %v2841_v44  ;;  %v868_v43 = vmul.f32 %v740_v31, %v356_v20  ;;  %v744_v44 = vadd.f32 1.0, %v2974_v35  ;;  %v256_v20 = vld [vmem:[%s3579_s30 + $0x128] sm:$0xff]  ;;  %v251_v31 = vld [vmem:[%s3579_s30 + $0x100] sm:$0xff] }
  0x98   : > { %2079 = vmatprep.subr.bf16.mxu0 %v2843_v45  ;;  %v2873_v45 = vld [vmem:[#allocation5 + $0x104] ss:$8 sps:$4 sm:$0xff]  }
  0x99   : > { %v988_v53 = vpack.c.bf16 %v868_v43, %v860_v38  ;;  %v2888_v35 = vld [vmem:[#allocation5 + $0x324] ss:$8 sps:$4 sm:$0xff]   ;;  %v3639_v43 = vmul.f32 0.5, %v260_v15 }
  0x9a   : > { %1854 = vmatpush1.bf16.msra.mxu1 %v2845_v46  ;;  %v491_v46 = vmul.f32 0.70710677, %v3612_v29  ;;  %v3633_v29 = vmul.f32 0.5, %v247_v56 }
  0x9b   : > { %2080 = vmatpush1.bf16.msra.mxu0 %v2846_v47  ;;  %1855 = vmatprep.subr.bf16.mxu1 %v2847_v49  ;;  %v2978_v47 = vpop.eup %2977  ;;  %v731_v49 = vadd.f32 1.0, %v2976_v42  ;;  %v3637_v42 = vmul.f32 0.5, %v252_v14 }
  0x9c   : > { %2081 = vmatprep.subr.bf16.mxu0 %v2849_v54  ;;  %v2980_v52 = vpop.eup %2979  ;;  %v872_v54 = vmul.f32 %v744_v44, %v360_v22  ;;  %v739_v55 = vadd.f32 1.0, %v2978_v47  ;;  %2991 = verf.f32 %v491_v46  ;;  %1863 = vmatprep.mubr.bf16.mxu1 %v988_v53  ;;  %v255_v44 = vld [vmem:[%s3579_s30 + $0x120] sm:$0xff]  ;;  %v507_v47 = vmul.f32 0.70710677, %v251_v31 }
  0x9d   : > { %v2982_v57 = vpop.eup %2981  ;;  %v859_v58 = vmul.f32 %v731_v49, %v347_v27  ;;  %2993 = verf.f32 %v499_v50  ;;  %v2880_v27 = vld [vmem:[#allocation5 + $0x310] ss:$8 sps:$4 sm:$0xff]   ;;  %v2886_v53 = vld [vmem:[#allocation5 + $0x320] ss:$8 sps:$4 sm:$0xff]  }
  0x9e   : > { %1856 = vmatpush1.bf16.msra.mxu1 %v2851_v60  ;;  %v735_v60 = vadd.f32 1.0, %v2980_v52  ;;  %v992_v62 = vpack.c.bf16 %v872_v54, %v864_v48  ;;  %v2984_v16 = vpop.eup %2983  ;;  %v515_v48 = vmul.f32 0.70710677, %v259_v32  ;;  %v263_v54 = vld [vmem:[%s3579_s30 + $0x160] sm:$0xff] }
  0x9f   : > { %2082 = vmatpush1.bf16.msra.mxu0 %v2852_v63  ;;  %1857 = vmatprep.subr.bf16.mxu1 %v2853_v0  ;;  %v867_v63 = vmul.f32 %v739_v55, %v355_v28  ;;  %v743_v0 = vadd.f32 1.0, %v2982_v57  ;;  %v2986_v22 = vpop.eup %2985  ;;  %v748_v25 = vadd.f32 1.0, %v2984_v16  ;;  %v2891_v57 = vld [vmem:[#allocation5 + $0x134] ss:$8 sps:$4 sm:$0xff]  }
  0xa0   : > { %2083 = vmatprep.subr.bf16.mxu0 %v2855_v3  ;;  %v863_v3 = vmul.f32 %v735_v60, %v351_v40  ;;  %2089 = vmatprep.mubr.bf16.mxu0 %v992_v62  ;;  %v756_v28 = vadd.f32 1.0, %v2986_v22  ;;  %v2988_v33 = vpop.eup %2987  ;;  %v3645_v62 = vmul.f32 0.5, %v264_v21 }
  0xa1   : > { %v2990_v38 = vpop.eup %2989  ;;  %v752_v40 = vadd.f32 1.0, %v2988_v33 }
  0xa2   : > { %1858 = vmatpush1.bf16.msra.mxu1 %v2857_v6  ;;  %v495_v6 = vmul.f32 0.70710677, %v239_v51  ;;  %v884_v39 = vmul.f32 %v756_v28, %v372_v5  ;;  %v760_v46 = vadd.f32 1.0, %v2990_v38  ;;  %v519_v5 = vmul.f32 0.70710677, %v263_v54 }
  0xa3   : > { %2084 = vmatpush1.bf16.msra.mxu0 %v2858_v7  ;;  %1859 = vmatprep.subr.bf16.mxu1 %v2859_v8  ;;  %v503_v7 = vmul.f32 0.70710677, %v247_v56  ;;  %v987_v8 = vpack.c.bf16 %v867_v63, %v859_v58  ;;  %v2894_v58 = vld [vmem:[#allocation5 + $0x334] ss:$8 sps:$4 sm:$0xff]   ;;  %v511_v63 = vmul.f32 0.70710677, %v255_v44 }
  0xa4   : > { %2085 = vmatprep.subr.bf16.mxu0 %v2861_v9  ;;  %v871_v9 = vmul.f32 %v743_v0, %v359_v41  ;;  %2995 = verf.f32 %v495_v6  ;;  %v2883_v41 = vld [vmem:[#allocation5 + $0x120] ss:$8 sps:$4 sm:$0xff]   ;;  %v888_v55 = vmul.f32 %v760_v46, %v376_v10 }
  0xa5   : > { %2997 = verf.f32 %v503_v7  ;;  %v268_v0 = vld [vmem:[%s3579_s30 + $0x188] sm:$0xff]  ;;  %v2892_v7 = vld [vmem:[#allocation5 + $0x330] ss:$8 sps:$4 sm:$0xff]  }
  0xa6   : > { %1860 = vmatpush1.bf16.msra.mxu1 %v2863_v12  ;;  %v2882_v12 = vld [vmem:[#allocation5 + $0x314] ss:$8 sps:$4 sm:$0xff]   ;;  %v272_v10 = vld [vmem:[%s3579_s30 + $0x1a8] sm:$0xff]  ;;  %v3660_v22 = vmul.f32 0.5, %v268_v0 }
  0xa7   : > { %2086 = vmatpush1.bf16.msra.mxu0 %v2864_v13  ;;  %1861 = vmatprep.subr.bf16.mxu1 %v2865_v18  ;;  %v368_v13 = vmul.f32 0.5, %v3606_v23  ;;  %v3627_v18 = vmul.f32 0.5, %v243_v34  ;;  %v991_v23 = vpack.c.bf16 %v871_v9, %v863_v3  ;;  %v876_v34 = vmul.f32 %v748_v25, %v364_v2 }
  0xa8   : > { %2087 = vmatprep.subr.bf16.mxu0 %v2867_v19  ;;  %v508_v19 = vmul.f32 0.70710677, %v252_v14  ;;  %v3649_v3 = vmul.f32 0.5, %v251_v31  ;;  %v3653_v9 = vmul.f32 0.5, %v255_v44  ;;  %v528_v31 = vmul.f32 0.70710677, %v272_v10 }
  0xa9   : > { %v996_v50 = vpack.c.bf16 %v884_v39, %v876_v34  ;;  %v880_v51 = vmul.f32 %v752_v40, %v368_v13  ;;  %v524_v13 = vmul.f32 0.70710677, %v268_v0  ;;  %v2898_v34 = vld [vmem:[#allocation5 + $0x340] ss:$8 sps:$4 sm:$0xff]   ;;  %v2906_v39 = vld [vmem:[#allocation5 + $0x354] ss:$8 sps:$4 sm:$0xff]  }
  0xaa   : > { %1862 = vmatpush1.bf16.msra.mxu1 %v2869_v36  ;;  %2999 = verf.f32 %v508_v19  ;;  %v512_v36 = vmul.f32 0.70710677, %v256_v20  ;;  %v3669_v40 = vmul.f32 0.5, %v272_v10  ;;  %v271_v44 = vld [vmem:[%s3579_s30 + $0x1a0] sm:$0xff] }
  0xab   : > { %2088 = vmatpush1.bf16.msra.mxu0 %v2870_v37  ;;  %1944 = vmatprep.subr.bf16.mxu1 %v2873_v45  ;;  %3001 = verf.f32 %v516_v26  ;;  %v520_v37 = vmul.f32 0.70710677, %v264_v21  ;;  %v2992_v45 = vpop.eup %2991  ;;  %v2895_v21 = vld [vmem:[#allocation5 + $0x140] ss:$8 sps:$4 sm:$0xff]   ;;  %v2912_v10 = vld [vmem:[#allocation5 + $0x364] ss:$8 sps:$4 sm:$0xff]  }
  0xac   : > { %2170 = vmatprep.subr.bf16.mxu0 %v2876_v61  ;;  %3003 = verf.f32 %v512_v36  ;;  %v2994_v49 = vpop.eup %2993  ;;  %v747_v52 = vadd.f32 1.0, %v2992_v45  ;;  %v2889_v61 = vld [vmem:[#allocation5 + $0x130] ss:$8 sps:$4 sm:$0xff]   ;;  %v267_v36 = vld [vmem:[%s3579_s30 + $0x180] sm:$0xff] }
  0xad   : > { %1864 = vmatmul.mubr.bf16.vlgmr.msra.gmra.mrb[0].mxu1 %v987_v8  ;;  %3005 = verf.f32 %v520_v37  ;;  %v755_v56 = vadd.f32 1.0, %v2994_v49  ;;  %v3651_v8 = vmul.f32 0.5, %v259_v32  ;;  %v275_v37 = vld [vmem:[%s3579_s30 + $0x1c0] sm:$0xff] }
  0xae   : > { %1945 = vmatpush1.bf16.msra.mxu1 %v2871_v59  ;;  %2090 = vmatmul.mubr.bf16.vlgmr.msra.gmra.mrb[0].mxu0 %v991_v23  ;;  %v3643_v59 = vmul.f32 0.5, %v256_v20  ;;  %3007 = verf.f32 %v507_v47  ;;  %v875_v60 = vmul.f32 %v747_v52, %v363_v11  ;;  %v2996_v6 = vpop.eup %2995  ;;  %v2900_v11 = vld [vmem:[#allocation5 + $0x344] ss:$8 sps:$4 sm:$0xff]   ;;  %v531_v52 = vmul.f32 0.70710677, %v275_v37 }
  0xaf   : > { %1946 = vmatprep.subr.bf16.mxu1 %v2879_v1  ;;  %2171 = vmatpush1.bf16.msra.mxu0 %v2874_v4  ;;  %3009 = verf.f32 %v515_v48  ;;  %v1000_v1 = vpack.c.bf16 %v888_v55, %v880_v51  ;;  %v883_v2 = vmul.f32 %v755_v56, %v3627_v18  ;;  %v2897_v4 = vld [vmem:[#allocation5 + $0x144] ss:$8 sps:$4 sm:$0xff]   ;;  %v2998_v14 = vpop.eup %2997  ;;  %v751_v16 = vadd.f32 1.0, %v2996_v6 }
  0xb0   : > { %2172 = vmatprep.subr.bf16.mxu0 %v2882_v12  ;;  %1873 = vmatprep.mubr.bf16.mxu1 %v996_v50  ;;  %3011 = verf.f32 %v511_v63  ;;  %v276_v12 = vld [vmem:[%s3579_s30 + $0x1c8] sm:$0xff]  ;;  %v759_v20 = vadd.f32 1.0, %v2998_v14  ;;  %v279_v48 = vld [vmem:[%s3579_s30 + $0x1e0] sm:$0xff]  ;;  %v523_v51 = vmul.f32 0.70710677, %v267_v36 }
  0xb1   : > { %2099 = vmatprep.mubr.bf16.mxu0 %v1000_v1  ;;  %v995_v15 = vpack.c.bf16 %v883_v2, %v875_v60  ;;  %3013 = verf.f32 %v519_v5  ;;  %v280_v18 = vld [vmem:[%s3579_s30 + $0x1e8] sm:$0xff]  ;;  %v532_v23 = vmul.f32 0.70710677, %v276_v12  ;;  %v3663_v28 = vmul.f32 0.5, %v276_v12 }
  0xb2   : > { %1947 = vmatpush1.bf16.msra.mxu1 %v2877_v17  ;;  %v3657_v17 = vmul.f32 0.5, %v263_v54  ;;  %3015 = verf.f32 %v524_v13  ;;  %v887_v32 = vmul.f32 %v759_v20, %v3633_v29  ;;  %v527_v63 = vmul.f32 0.70710677, %v271_v44  ;;  %v284_v5 = vld [vmem:[%s3579_s30 + $0x208] sm:$0xff] }
  0xb3   : > { %1948 = vmatprep.subr.bf16.mxu1 %v2885_v24  ;;  %2173 = vmatpush1.bf16.msra.mxu0 %v2880_v27  ;;  %v879_v24 = vmul.f32 %v751_v16, %v3631_v30  ;;  %v2903_v27 = vld [vmem:[#allocation5 + $0x154] ss:$8 sps:$4 sm:$0xff]   ;;  %3017 = verf.f32 %v532_v23  ;;  %v3683_v2 = vmul.f32 0.5, %v271_v44  ;;  %v2907_v13 = vld [vmem:[#allocation5 + $0x160] ss:$8 sps:$4 sm:$0xff]   ;;  %v3688_v16 = vmul.f32 0.5, %v279_v48 }
  0xb4   : > { %2174 = vmatprep.subr.bf16.mxu0 %v2888_v35  ;;  %v3000_v19 = vpop.eup %2999  ;;  %v536_v35 = vmul.f32 0.70710677, %v280_v18  ;;  %3019 = verf.f32 %v528_v31  ;;  %v292_v14 = vld [vmem:[%s3579_s30 + $0x248] sm:$0xff]  ;;  %v540_v23 = vmul.f32 0.70710677, %v284_v5 }
  0xb5   : > { %v3002_v25 = vpop.eup %3001  ;;  %1874 = vmatmul.mubr.bf16.gmra.mrb[4].mxu1 %v995_v15  ;;  %v764_v26 = vadd.f32 1.0, %v3000_v19  ;;  %v999_v45 = vpack.c.bf16 %v887_v32, %v879_v24  ;;  %v2918_v31 = vld [vmem:[#allocation5 + $0x374] ss:$8 sps:$4 sm:$0xff]   ;;  %v3694_v32 = vmul.f32 0.5, %v284_v5  ;;  %v2922_v5 = vld [vmem:[#allocation5 + $0x380] ss:$8 sps:$4 sm:$0xff]  }
  0xb6   : > { %1949 = vmatpush1.bf16.msra.mxu1 %v2883_v41  ;;  %v772_v33 = vadd.f32 1.0, %v3002_v25  ;;  %v3004_v38 = vpop.eup %3003  ;;  %v3671_v41 = vmul.f32 0.5, %v280_v18  ;;  %3021 = verf.f32 %v536_v35  ;;  %v288_v18 = vld [vmem:[%s3579_s30 + $0x228] sm:$0xff] }
  0xb7   : > { %1950 = vmatprep.subr.bf16.mxu1 %v2891_v57  ;;  %2175 = vmatpush1.bf16.msra.mxu0 %v2886_v53  ;;  %v892_v30 = vmul.f32 %v764_v26, %v3637_v42  ;;  %v3006_v29 = vpop.eup %3005  ;;  %v768_v47 = vadd.f32 1.0, %v3004_v38  ;;  %v3676_v42 = vmul.f32 0.5, %v267_v36  ;;  %v2901_v57 = vld [vmem:[#allocation5 + $0x150] ss:$8 sps:$4 sm:$0xff]   ;;  %3023 = verf.f32 %v523_v51  ;;  %v296_v25 = vld [vmem:[%s3579_s30 + $0x268] sm:$0xff]  ;;  %v283_v38 = vld [vmem:[%s3579_s30 + $0x200] sm:$0xff] }
  0xb8   : > { %2176 = vmatprep.subr.bf16.mxu0 %v2894_v58  ;;  %v900_v46 = vmul.f32 %v772_v33, %v3639_v43  ;;  %v3008_v49 = vpop.eup %3007  ;;  %v776_v50 = vadd.f32 1.0, %v3006_v29  ;;  %2100 = vmatmul.mubr.bf16.gmra.mrb[4].mxu0 %v999_v45  ;;  %v3679_v43 = vmul.f32 0.5, %v275_v37  ;;  %v2909_v58 = vld [vmem:[#allocation5 + $0x164] ss:$8 sps:$4 sm:$0xff]   ;;  %3025 = verf.f32 %v531_v52 }
  0xb9   : > { %v3010_v53 = vpop.eup %3009  ;;  %v896_v55 = vmul.f32 %v768_v47, %v3643_v59  ;;  %v763_v56 = vadd.f32 1.0, %v3008_v49  ;;  %v2904_v59 = vld [vmem:[#allocation5 + $0x350] ss:$8 sps:$4 sm:$0xff]   ;;  %3027 = verf.f32 %v527_v63  ;;  %v3696_v33 = vmul.f32 0.5, %v292_v14  ;;  %v2921_v45 = vld [vmem:[#allocation5 + $0x184] ss:$8 sps:$4 sm:$0xff]  }
  0xba   : > { %1951 = vmatpush1.bf16.msra.mxu1 %v2889_v61  ;;  %v1004_v54 = vpack.c.bf16 %v900_v46, %v892_v30  ;;  %v904_v60 = vmul.f32 %v776_v50, %v3645_v62  ;;  %v771_v61 = vadd.f32 1.0, %v3010_v53  ;;  %v3012_v0 = vpop.eup %3011  ;;  %v544_v37 = vmul.f32 0.70710677, %v288_v18  ;;  %v291_v30 = vld [vmem:[%s3579_s30 + $0x240] sm:$0xff] }
  0xbb   : > { %1952 = vmatprep.subr.bf16.mxu1 %v2897_v4  ;;  %2177 = vmatpush1.bf16.msra.mxu0 %v2892_v7  ;;  %v891_v1 = vmul.f32 %v763_v56, %v3649_v3  ;;  %v535_v4 = vmul.f32 0.70710677, %v279_v48  ;;  %v3014_v6 = vpop.eup %3013  ;;  %v767_v12 = vadd.f32 1.0, %v3012_v0  ;;  %v552_v29 = vmul.f32 0.70710677, %v296_v25  ;;  %v287_v49 = vld [vmem:[%s3579_s30 + $0x220] sm:$0xff] }
  0xbc   : > { %2178 = vmatprep.subr.bf16.mxu0 %v2900_v11  ;;  %1883 = vmatprep.mubr.bf16.mxu1 %v1004_v54  ;;  %v1008_v7 = vpack.c.bf16 %v904_v60, %v896_v55  ;;  %v899_v62 = vmul.f32 %v771_v61, %v3651_v8  ;;  %v3016_v3 = vpop.eup %3015  ;;  %v775_v15 = vadd.f32 1.0, %v3014_v6  ;;  %v2915_v11 = vld [vmem:[#allocation5 + $0x174] ss:$8 sps:$4 sm:$0xff]   ;;  %v2916_v48 = vld [vmem:[#allocation5 + $0x370] ss:$8 sps:$4 sm:$0xff]   ;;  %v3706_v51 = vmul.f32 0.5, %v296_v25 }
  0xbd   : > { %3029 = verf.f32 %v535_v4  ;;  %v895_v20 = vmul.f32 %v767_v12, %v3653_v9  ;;  %v780_v8 = vadd.f32 1.0, %v3016_v3  ;;  %v3018_v24 = vpop.eup %3017  ;;  %v539_v52 = vmul.f32 0.70710677, %v283_v38  ;;  %v295_v53 = vld [vmem:[%s3579_s30 + $0x260] sm:$0xff]  ;;  %v2927_v6 = vld [vmem:[#allocation5 + $0x194] ss:$8 sps:$4 sm:$0xff]  }
  0xbe   : > { %1953 = vmatpush1.bf16.msra.mxu1 %v2895_v21  ;;  %2109 = vmatprep.mubr.bf16.mxu0 %v1008_v7  ;;  %v1003_v19 = vpack.c.bf16 %v899_v62, %v891_v1  ;;  %v2910_v21 = vld [vmem:[#allocation5 + $0x360] ss:$8 sps:$4 sm:$0xff]   ;;  %v903_v26 = vmul.f32 %v775_v15, %v3657_v17  ;;  %v3020_v35 = vpop.eup %3019  ;;  %v788_v9 = vadd.f32 1.0, %v3018_v24  ;;  %3031 = verf.f32 %v540_v23  ;;  %v2924_v0 = vld [vmem:[#allocation5 + $0x384] ss:$8 sps:$4 sm:$0xff]  }
  0xbf   : > { %1954 = vmatprep.subr.bf16.mxu1 %v2903_v27  ;;  %2179 = vmatpush1.bf16.msra.mxu0 %v2898_v34  ;;  %v2913_v27 = vld [vmem:[#allocation5 + $0x170] ss:$8 sps:$4 sm:$0xff]   ;;  %v548_v34 = vmul.f32 0.70710677, %v292_v14  ;;  %v908_v36 = vmul.f32 %v780_v8, %v3660_v22  ;;  %v784_v44 = vadd.f32 1.0, %v3020_v35  ;;  %v3702_v22 = vmul.f32 0.5, %v288_v18 }
  0xc0   : > { %2180 = vmatprep.subr.bf16.mxu0 %v2906_v39  ;;  %1884 = vmatmul.mubr.bf16.gmra.mrb[8].mxu1 %v1003_v19  ;;  %v3022_v17 = vpop.eup %3021  ;;  %v1007_v39 = vpack.c.bf16 %v903_v26, %v895_v20  ;;  %v916_v46 = vmul.f32 %v788_v9, %v3663_v28  ;;  %v3710_v28 = vmul.f32 0.5, %v283_v38  ;;  %v543_v63 = vmul.f32 0.70710677, %v287_v49  ;;  %v300_v7 = vld [vmem:[%s3579_s30 + $0x288] sm:$0xff]  ;;  %v2925_v14 = vld [vmem:[#allocation5 + $0x190] ss:$8 sps:$4 sm:$0xff]  }
  0xc1   : > { %3033 = verf.f32 %v548_v34  ;;  %v792_v47 = vadd.f32 1.0, %v3022_v17  ;;  %v912_v50 = vmul.f32 %v784_v44, %v3669_v40  ;;  %v3024_v54 = vpop.eup %3023  ;;  %v3712_v40 = vmul.f32 0.5, %v291_v30  ;;  %v308_v3 = vld [vmem:[%s3579_s30 + $0x2c8] sm:$0xff]  ;;  %v2930_v20 = vld [vmem:[#allocation5 + $0x394] ss:$8 sps:$4 sm:$0xff]   ;;  %v299_v35 = vld [vmem:[%s3579_s30 + $0x280] sm:$0xff] }
  0xc2   : > { %1955 = vmatpush1.bf16.msra.mxu1 %v2901_v57  ;;  %3035 = verf.f32 %v544_v37  ;;  %2110 = vmatmul.mubr.bf16.gmra.mrb[8].mxu0 %v1007_v39  ;;  %v1012_v55 = vpack.c.bf16 %v916_v46, %v908_v36  ;;  %v547_v57 = vmul.f32 0.70710677, %v291_v30  ;;  %v3026_v60 = vpop.eup %3025  ;;  %v779_v61 = vadd.f32 1.0, %v3024_v54  ;;  %v304_v15 = vld [vmem:[%s3579_s30 + $0x2a8] sm:$0xff]  ;;  %v307_v37 = vld [vmem:[%s3579_s30 + $0x2c0] sm:$0xff] }
  0xc3   : > { %1956 = vmatprep.subr.bf16.mxu1 %v2909_v58  ;;  %2181 = vmatpush1.bf16.msra.mxu0 %v2904_v59  ;;  %3037 = verf.f32 %v552_v29  ;;  %v920_v56 = vmul.f32 %v792_v47, %v3671_v41  ;;  %v2919_v58 = vld [vmem:[#allocation5 + $0x180] ss:$8 sps:$4 sm:$0xff]   ;;  %v3028_v1 = vpop.eup %3027  ;;  %v787_v59 = vadd.f32 1.0, %v3026_v60  ;;  %v551_v4 = vmul.f32 0.70710677, %v295_v53 }
  0xc4   : > { %2182 = vmatprep.subr.bf16.mxu0 %v2912_v10  ;;  %3039 = verf.f32 %v539_v52  ;;  %1893 = vmatprep.mubr.bf16.mxu1 %v1012_v55  ;;  %v907_v12 = vmul.f32 %v779_v61, %v3676_v42  ;;  %v3716_v10 = vmul.f32 0.5, %v287_v49  ;;  %v3721_v19 = vmul.f32 0.5, %v295_v53  ;;  %v312_v8 = vld [vmem:[%s3579_s30 + $0x2e8] sm:$0xff]  ;;  %v311_v49 = vld [vmem:[%s3579_s30 + $0x2e0] sm:$0xff]  ;;  %v2939_v60 = vld [vmem:[#allocation5 + $0x1b4] ss:$8 sps:$4 sm:$0xff]  }
  0xc5   : > { %v1016_v41 = vpack.c.bf16 %v920_v56, %v912_v50  ;;  %3041 = verf.f32 %v547_v57  ;;  %v556_v23 = vmul.f32 0.70710677, %v300_v7  ;;  %v564_v25 = vmul.f32 0.70710677, %v308_v3  ;;  %v2933_v38 = vld [vmem:[#allocation5 + $0x1a4] ss:$8 sps:$4 sm:$0xff]  }
  0xc6   : > { %1957 = vmatpush1.bf16.msra.mxu1 %v2907_v13  ;;  %v783_v13 = vadd.f32 1.0, %v3028_v1  ;;  %3043 = verf.f32 %v543_v63  ;;  %v560_v34 = vmul.f32 0.70710677, %v304_v15  ;;  %v2931_v44 = vld [vmem:[#allocation5 + $0x1a0] ss:$8 sps:$4 sm:$0xff]   ;;  %v3739_v57 = vmul.f32 0.5, %v312_v8 }
  0xc7   : > { %1958 = vmatprep.subr.bf16.mxu1 %v2915_v11  ;;  %2183 = vmatpush1.bf16.msra.mxu0 %v2910_v21  ;;  %v3030_v62 = vpop.eup %3029  ;;  %v915_v11 = vmul.f32 %v787_v59, %v3679_v43  ;;  %3045 = verf.f32 %v551_v4  ;;  %v3725_v21 = vmul.f32 0.5, %v300_v7  ;;  %v555_v47 = vmul.f32 0.70710677, %v299_v35  ;;  %v2936_v54 = vld [vmem:[#allocation5 + $0x3a4] ss:$8 sps:$4 sm:$0xff]  }
  0xc8   : > { %2184 = vmatprep.subr.bf16.mxu0 %v2918_v31  ;;  %2119 = vmatprep.mubr.bf16.mxu0 %v1016_v41  ;;  %v791_v18 = vadd.f32 1.0, %v3030_v62  ;;  %v911_v42 = vmul.f32 %v783_v13, %v3683_v2  ;;  %v3032_v24 = vpop.eup %3031  ;;  %v3728_v31 = vmul.f32 0.5, %v308_v3  ;;  %3047 = verf.f32 %v556_v23  ;;  %v2937_v1 = vld [vmem:[#allocation5 + $0x1b0] ss:$8 sps:$4 sm:$0xff]   ;;  %v2942_v13 = vld [vmem:[#allocation5 + $0x3b4] ss:$8 sps:$4 sm:$0xff]  }
  0xc9   : > { %v1011_v26 = vpack.c.bf16 %v915_v11, %v907_v12  ;;  %v796_v36 = vadd.f32 1.0, %v3032_v24  ;;  %v568_v2 = vmul.f32 0.70710677, %v312_v8  ;;  %3049 = verf.f32 %v564_v25  ;;  %v3754_v8 = vld [vmem:[%s3579_s30 + $0x368] sm:$0xff] }
  0xca   : > { %1959 = vmatpush1.bf16.msra.mxu1 %v2913_v27  ;;  %v919_v43 = vmul.f32 %v791_v18, %v3688_v16  ;;  %v2928_v27 = vld [vmem:[#allocation5 + $0x390] ss:$8 sps:$4 sm:$0xff]   ;;  %v3732_v16 = vmul.f32 0.5, %v304_v15  ;;  %3051 = verf.f32 %v560_v34  ;;  %v563_v53 = vmul.f32 0.70710677, %v307_v37 }
  0xcb   : > { %1960 = vmatprep.subr.bf16.mxu1 %v2921_v45  ;;  %2185 = vmatpush1.bf16.msra.mxu0 %v2916_v48  ;;  %v3034_v9 = vpop.eup %3033  ;;  %v924_v45 = vmul.f32 %v796_v36, %v3694_v32  ;;  %v303_v48 = vld [vmem:[%s3579_s30 + $0x2a0] sm:$0xff]  ;;  %3053 = verf.f32 %v568_v2  ;;  %v3741_v32 = vmul.f32 0.5, %v299_v35  ;;  %v567_v4 = vmul.f32 0.70710677, %v311_v49  ;;  %v2940_v18 = vld [vmem:[#allocation5 + $0x3b0] ss:$8 sps:$4 sm:$0xff]  }
  0xcc   : > { %2186 = vmatprep.subr.bf16.mxu0 %v2924_v0  ;;  %v3036_v30 = vpop.eup %3035  ;;  %1894 = vmatmul.mubr.bf16.gmra.mrb[12].mxu1 %v1011_v26  ;;  %v1015_v17 = vpack.c.bf16 %v919_v43, %v911_v42  ;;  %v804_v39 = vadd.f32 1.0, %v3034_v9  ;;  %3055 = verf.f32 %v555_v47  ;;  %v3746_v12 = vmul.f32 0.5, %v307_v37  ;;  %v2945_v34 = vld [vmem:[#allocation5 + $0x1c4] ss:$8 sps:$4 sm:$0xff]  }
  0xcd   : > { %v3038_v29 = vpop.eup %3037  ;;  %v800_v46 = vadd.f32 1.0, %v3036_v30  ;;  %3057 = verf.f32 %v563_v53  ;;  %v3750_v11 = vmul.f32 0.5, %v303_v48  ;;  %v3758_v26 = vmul.f32 0.5, %v311_v49  ;;  %v315_v2 = vld [vmem:[%s3579_s30 + $0x300] sm:$0xff] }
  0xce   : > { %1961 = vmatpush1.bf16.msra.mxu1 %v2919_v58  ;;  %2120 = vmatmul.mubr.bf16.gmra.mrb[12].mxu0 %v1015_v17  ;;  %v932_v50 = vmul.f32 %v804_v39, %v3696_v33  ;;  %v808_v52 = vadd.f32 1.0, %v3038_v29  ;;  %v3040_v55 = vpop.eup %3039  ;;  %v2934_v58 = vld [vmem:[#allocation5 + $0x3a0] ss:$8 sps:$4 sm:$0xff]   ;;  %v584_v36 = vmul.f32 0.70710677, %v3754_v8 }
  0xcf   : > { %1962 = vmatprep.subr.bf16.mxu1 %v2927_v6  ;;  %2187 = vmatpush1.bf16.msra.mxu0 %v2922_v5  ;;  %v928_v56 = vmul.f32 %v800_v46, %v3702_v22  ;;  %v3042_v61 = vpop.eup %3041  ;;  %v795_v0 = vadd.f32 1.0, %v3040_v55  ;;  %v559_v22 = vmul.f32 0.70710677, %v303_v48  ;;  %v316_v5 = vld [vmem:[%s3579_s30 + $0x308] sm:$0xff]  ;;  %v323_v17 = vld [vmem:[%s3579_s30 + $0x340] sm:$0xff] }
  0xd0   : > { %2188 = vmatprep.subr.bf16.mxu0 %v2930_v20  ;;  %v1020_v63 = vpack.c.bf16 %v932_v50, %v924_v45  ;;  %v936_v33 = vmul.f32 %v808_v52, %v3706_v51  ;;  %v3044_v41 = vpop.eup %3043  ;;  %v803_v59 = vadd.f32 1.0, %v3042_v61  ;;  %v320_v20 = vld [vmem:[%s3579_s30 + $0x328] sm:$0xff]  ;;  %v3760_v43 = vmul.f32 0.5, %v316_v5  ;;  %v319_v45 = vld [vmem:[%s3579_s30 + $0x320] sm:$0xff] }
  0xd1   : > { %v3046_v6 = vpop.eup %3045  ;;  %v923_v62 = vmul.f32 %v795_v0, %v3710_v28  ;;  %v799_v51 = vadd.f32 1.0, %v3044_v41  ;;  %3059 = verf.f32 %v559_v22  ;;  %v572_v28 = vmul.f32 0.70710677, %v316_v5  ;;  %v2946_v46 = vld [vmem:[#allocation5 + $0x3c0] ss:$8 sps:$4 sm:$0xff]  }
  0xd2   : > { %1963 = vmatpush1.bf16.msra.mxu1 %v2925_v14  ;;  %1903 = vmatprep.mubr.bf16.mxu1 %v1020_v63  ;;  %v1024_v7 = vpack.c.bf16 %v936_v33, %v928_v56  ;;  %v324_v14 = vld [vmem:[%s3579_s30 + $0x348] sm:$0xff]  ;;  %v931_v3 = vmul.f32 %v803_v59, %v3712_v40  ;;  %v807_v15 = vadd.f32 1.0, %v3046_v6  ;;  %3061 = verf.f32 %v567_v4  ;;  %v3048_v25 = vpop.eup %3047  ;;  %v327_v56 = vld [vmem:[%s3579_s30 + $0x360] sm:$0xff]  ;;  %v2951_v33 = vld [vmem:[#allocation5 + $0x1d4] ss:$8 sps:$4 sm:$0xff]  }
  0xd3   : > { %1964 = vmatprep.subr.bf16.mxu1 %v2933_v38  ;;  %2189 = vmatpush1.bf16.msra.mxu0 %v2928_v27  ;;  %v927_v42 = vmul.f32 %v799_v51, %v3716_v10  ;;  %v580_v23 = vmul.f32 0.70710677, %v324_v14  ;;  %v2943_v27 = vld [vmem:[#allocation5 + $0x1c0] ss:$8 sps:$4 sm:$0xff]   ;;  %v3050_v35 = vpop.eup %3049  ;;  %v812_v10 = vadd.f32 1.0, %v3048_v25  ;;  %3063 = verf.f32 %v572_v28 }
  0xd4   : > { %2190 = vmatprep.subr.bf16.mxu0 %v2936_v54  ;;  %2129 = vmatprep.mubr.bf16.mxu0 %v1024_v7  ;;  %v1019_v24 = vpack.c.bf16 %v931_v3, %v923_v62  ;;  %v935_v40 = vmul.f32 %v807_v15, %v3721_v19  ;;  %v576_v9 = vmul.f32 0.70710677, %v320_v20  ;;  %v3052_v37 = vpop.eup %3051  ;;  %v820_v38 = vadd.f32 1.0, %v3050_v35  ;;  %v2948_v47 = vld [vmem:[#allocation5 + $0x3c4] ss:$8 sps:$4 sm:$0xff]  }
  0xd5   : > { %v3764_v30 = vmul.f32 0.5, %v324_v14  ;;  %3065 = verf.f32 %v580_v23  ;;  %v3054_v39 = vpop.eup %3053  ;;  %v816_v29 = vadd.f32 1.0, %v3052_v37  ;;  %v571_v52 = vmul.f32 0.70710677, %v315_v2  ;;  %v2954_v41 = vld [vmem:[#allocation5 + $0x3d4] ss:$8 sps:$4 sm:$0xff]  }
  0xd6   : > { %1965 = vmatpush1.bf16.msra.mxu1 %v2931_v44  ;;  %v1023_v19 = vpack.c.bf16 %v935_v40, %v927_v42  ;;  %v940_v44 = vmul.f32 %v812_v10, %v3725_v21  ;;  %3067 = verf.f32 %v576_v9  ;;  %v3056_v48 = vpop.eup %3055  ;;  %v948_v49 = vmul.f32 %v820_v38, %v3728_v31  ;;  %v2952_v31 = vld [vmem:[#allocation5 + $0x3d0] ss:$8 sps:$4 sm:$0xff]   ;;  %v3777_v59 = vld [vmem:[%s3579_s30 + $0x388] sm:$0xff]  ;;  %v3802_v35 = vld [vmem:[%s3579_s30 + $0x380] sm:$0xff] }
  0xd7   : > { %1966 = vmatprep.subr.bf16.mxu1 %v2939_v60  ;;  %2191 = vmatpush1.bf16.msra.mxu0 %v2934_v58  ;;  %v824_v50 = vadd.f32 1.0, %v3054_v39  ;;  %3069 = verf.f32 %v584_v36  ;;  %v3058_v53 = vpop.eup %3057  ;;  %v944_v54 = vmul.f32 %v816_v29, %v3732_v16  ;;  %v811_v55 = vadd.f32 1.0, %v3056_v48  ;;  %v2949_v58 = vld [vmem:[#allocation5 + $0x1d0] ss:$8 sps:$4 sm:$0xff]   ;;  %v3788_v14 = vld [vmem:[%s3579_s30 + $0x3a8] sm:$0xff] }
  0xd8   : > { %2192 = vmatprep.subr.bf16.mxu0 %v2942_v13  ;;  %1904 = vmatmul.mubr.bf16.gmra.mrb[16].mxu1 %v1019_v24  ;;  %v579_v21 = vmul.f32 0.70710677, %v323_v17  ;;  %v1028_v60 = vpack.c.bf16 %v948_v49, %v940_v44  ;;  %v819_v63 = vadd.f32 1.0, %v3058_v53  ;;  %3071 = verf.f32 %v571_v52  ;;  %v2955_v23 = vld [vmem:[#allocation5 + $0x1e0] ss:$8 sps:$4 sm:$0xff]  }
  0xd9   : > { %2130 = vmatmul.mubr.bf16.gmra.mrb[16].mxu0 %v1023_v19  ;;  %v952_v61 = vmul.f32 %v824_v50, %v3739_v57  ;;  %v939_v0 = vmul.f32 %v811_v55, %v3741_v32  ;;  %v575_v16 = vmul.f32 0.70710677, %v319_v45  ;;  %v456_v5 = vmul.f32 0.5, %v3754_v8  ;;  %v3782_v32 = vld [vmem:[%s3579_s30 + $0x3c8] sm:$0xff]  ;;  %v2961_v50 = vld [vmem:[#allocation5 + $0x1f0] ss:$8 sps:$4 sm:$0xff]  }
  0xda   : > { %1967 = vmatpush1.bf16.msra.mxu1 %v2937_v1  ;;  %v3774_v1 = vmul.f32 0.5, %v320_v20  ;;  %3073 = verf.f32 %v579_v21  ;;  %1913 = vmatprep.mubr.bf16.mxu1 %v1028_v60  ;;  %v947_v57 = vmul.f32 %v819_v63, %v3746_v12  ;;  %v583_v6 = vmul.f32 0.70710677, %v327_v56  ;;  %v2957_v25 = vld [vmem:[#allocation5 + $0x1e4] ss:$8 sps:$4 sm:$0xff]   ;;  %v3824_v63 = vld [vmem:[%s3579_s30 + $0x18] sm:$0xff] }
  0xdb   : > { %1968 = vmatprep.subr.bf16.mxu1 %v2945_v34  ;;  %2193 = vmatpush1.bf16.msra.mxu0 %v2940_v18  ;;  %v3060_v22 = vpop.eup %3059  ;;  %v1032_v4 = vpack.c.bf16 %v952_v61, %v944_v54  ;;  %v3784_v51 = vmul.f32 0.5, %v315_v2  ;;  %3075 = verf.f32 %v575_v16  ;;  %v588_v13 = vmul.f32 0.70710677, %v3777_v59  ;;  %v3792_v18 = vld [vmem:[%s3579_s30 + $0x3e8] sm:$0xff]  ;;  %v3808_v2 = vld [vmem:[%s3579_s30 + $0x3c0] sm:$0xff]  ;;  %v3829_v16 = vld [vmem:[%s3579_s30 + $0x58] sm:$0xff] }
  0xdc   : > { %2194 = vmatprep.subr.bf16.mxu0 %v2948_v47  ;;  %v3062_v7 = vpop.eup %3061  ;;  %v815_v62 = vadd.f32 1.0, %v3060_v22  ;;  %v1027_v12 = vpack.c.bf16 %v947_v57, %v939_v0  ;;  %3077 = verf.f32 %v583_v6  ;;  %v596_v15 = vmul.f32 0.70710677, %v3782_v32  ;;  %v2960_v39 = vld [vmem:[#allocation5 + $0x3e4] ss:$8 sps:$4 sm:$0xff]  }
  0xdd   : > { %2139 = vmatprep.mubr.bf16.mxu0 %v1032_v4  ;;  %v823_v3 = vadd.f32 1.0, %v3062_v7  ;;  %v3064_v20 = vpop.eup %3063  ;;  %v3795_v42 = vmul.f32 0.5, %v323_v17  ;;  %v3797_v28 = vmul.f32 0.5, %v319_v45  ;;  %3079 = verf.f32 %v588_v13  ;;  %v2958_v17 = vld [vmem:[#allocation5 + $0x3e0] ss:$8 sps:$4 sm:$0xff]   ;;  %v3838_v13 = vld [vmem:[%s3579_s30 + $0x78] sm:$0xff] }
  0xde   : > { %1969 = vmatpush1.bf16.msra.mxu1 %v2943_v27  ;;  %v943_v8 = vmul.f32 %v815_v62, %v3750_v11  ;;  %v828_v27 = vadd.f32 1.0, %v3064_v20  ;;  %3081 = verf.f32 %v596_v15  ;;  %v592_v34 = vmul.f32 0.70710677, %v3788_v14  ;;  %v3817_v47 = vld [vmem:[%s3579_s30 + $0x3e0] sm:$0xff]  ;;  %v2963_v52 = vld [vmem:[#allocation5 + $0x1f4] ss:$8 sps:$4 sm:$0xff]  }
  0xdf   : > { %2195 = vmatpush1.bf16.msra.mxu0 %v2946_v46  ;;  %1970 = vmatprep.subr.bf16.mxu1 %v2951_v33  ;;  %v3066_v24 = vpop.eup %3065  ;;  %v951_v40 = vmul.f32 %v823_v3, %v3758_v26  ;;  %v3804_v9 = vmul.f32 0.5, %v327_v56  ;;  %v600_v36 = vmul.f32 0.70710677, %v3792_v18  ;;  %v587_v45 = vmul.f32 0.70710677, %v3802_v35  ;;  %v3814_v46 = vld [vmem:[%s3579_s30 + $0x3a0] sm:$0xff] }
  0xe0   : > { %2196 = vmatprep.subr.bf16.mxu0 %v2954_v41  ;;  %1914 = vmatmul.mubr.bf16.gmra.mrb[20].mxu1 %v1027_v12  ;;  %v3068_v11 = vpop.eup %3067  ;;  %v836_v10 = vadd.f32 1.0, %v3066_v24  ;;  %v956_v26 = vmul.f32 %v828_v27, %v3760_v43  ;;  %3083 = verf.f32 %v592_v34  ;;  %v595_v43 = vmul.f32 0.70710677, %v3808_v2  ;;  %v2964_v21 = vld [vmem:[#allocation5 + $0x3f0] ss:$8 sps:$4 sm:$0xff]  }
  0xe1   : > { %v3070_v37 = vpop.eup %3069  ;;  %v1031_v19 = vpack.c.bf16 %v951_v40, %v943_v8  ;;  %v832_v38 = vadd.f32 1.0, %v3068_v11  ;;  %3085 = verf.f32 %v600_v36  ;;  %v2966_v56 = vld [vmem:[#allocation5 + $0x3f4] ss:$8 sps:$4 sm:$0xff]   ;;  %v591_v60 = vmul.f32 0.70710677, %v3814_v46 }
  0xe2   : > { %1971 = vmatpush1.bf16.msra.mxu1 %v2949_v58  ;;  %v964_v44 = vmul.f32 %v836_v10, %v3764_v30  ;;  %v840_v29 = vadd.f32 1.0, %v3070_v37  ;;  %v3072_v48 = vpop.eup %3071  ;;  %3087 = verf.f32 %v587_v45  ;;  %v599_v61 = vmul.f32 0.70710677, %v3817_v47  ;;  %v3853_v36 = vld [vmem:[%s3579_s30 + $0x30] sm:$0xff] }
  0xe3   : > { %2197 = vmatpush1.bf16.msra.mxu0 %v2952_v31  ;;  %1972 = vmatprep.subr.bf16.mxu1 %v2957_v25  ;;  %v960_v49 = vmul.f32 %v832_v38, %v3774_v1  ;;  %v827_v55 = vadd.f32 1.0, %v3072_v48  ;;  %3089 = verf.f32 %v595_v43  ;;  %v460_v1 = vmul.f32 0.5, %v3777_v59  ;;  %v3858_v38 = vld [vmem:[%s3579_s30 + $0x70] sm:$0xff] }
  0xe4   : > { %2140 = vmatmul.mubr.bf16.gmra.mrb[20].mxu0 %v1031_v19  ;;  %2198 = vmatprep.subr.bf16.mxu0 %v2960_v39  ;;  %v3074_v53 = vpop.eup %3073  ;;  %v1036_v30 = vpack.c.bf16 %v964_v44, %v956_v26  ;;  %v968_v54 = vmul.f32 %v840_v29, %v456_v5  ;;  %v478_v41 = vmul.f32 0.70710677, %v3824_v63  ;;  %v468_v5 = vmul.f32 0.5, %v3782_v32 }
  0xe5   : > { %v835_v58 = vadd.f32 1.0, %v3074_v53  ;;  %v3076_v33 = vpop.eup %3075  ;;  %v955_v0 = vmul.f32 %v827_v55, %v3784_v51  ;;  %3091 = verf.f32 %v591_v60  ;;  %v464_v59 = vmul.f32 0.5, %v3788_v14  ;;  %v226_v51 = vld [vmem:[%s3579_s30 + $0x38] sm:$0xff] }
  0xe6   : > { %1973 = vmatpush1.bf16.msra.mxu1 %v2955_v23  ;;  %1923 = vmatprep.mubr.bf16.mxu1 %v1036_v30  ;;  %v1040_v31 = vpack.c.bf16 %v968_v54, %v960_v49  ;;  %v3078_v22 = vpop.eup %3077  ;;  %v831_v57 = vadd.f32 1.0, %v3076_v33  ;;  %3093 = verf.f32 %v599_v61  ;;  %v486_v62 = vmul.f32 0.70710677, %v3829_v16  ;;  %v3847_v23 = vld [vmem:[%s3579_s30 + $0x50] sm:$0xff]  ;;  %v3863_v49 = vld [vmem:[%s3579_s30 + $0x98] sm:$0xff] }
  0xe7   : > { %2199 = vmatpush1.bf16.msra.mxu0 %v2958_v17  ;;  %1974 = vmatprep.subr.bf16.mxu1 %v2963_v52  ;;  %v963_v4 = vmul.f32 %v835_v58, %v3795_v42  ;;  %v3080_v6 = vpop.eup %3079  ;;  %v839_v7 = vadd.f32 1.0, %v3078_v22  ;;  %3095 = verf.f32 %v478_v41  ;;  %v472_v14 = vmul.f32 0.5, %v3792_v18  ;;  %v3844_v42 = vld [vmem:[%s3579_s30 + $0x10] sm:$0xff]  ;;  %v3868_v53 = vld [vmem:[%s3579_s30 + $0xd8] sm:$0xff] }
  0xe8   : > { %2200 = vmatprep.subr.bf16.mxu0 %v2966_v56  ;;  %2149 = vmatprep.mubr.bf16.mxu0 %v1040_v31  ;;  %v3082_v12 = vpop.eup %3081  ;;  %v959_v32 = vmul.f32 %v831_v57, %v3797_v28  ;;  %v844_v15 = vadd.f32 1.0, %v3080_v6  ;;  %3097 = verf.f32 %v486_v62  ;;  %v459_v40 = vmul.f32 0.5, %v3802_v35  ;;  %v3876_v41 = vld [vmem:[%s3579_s30 + $0xf8] sm:$0xff]  ;;  %v3879_v57 = vld [vmem:[%s3579_s30 + $0x90] sm:$0xff] }
  0xe9   : > { %v1035_v3 = vpack.c.bf16 %v963_v4, %v955_v0  ;;  %v967_v20 = vmul.f32 %v839_v7, %v3804_v9  ;;  %v852_v8 = vadd.f32 1.0, %v3082_v12  ;;  %v482_v28 = vmul.f32 0.70710677, %v226_v51 }
  0xea   : > { %1975 = vmatpush1.bf16.msra.mxu1 %v2961_v50  ;;  %v3084_v25 = vpop.eup %3083  ;;  %v972_v24 = vmul.f32 %v844_v15, %v460_v1  ;;  %v490_v27 = vmul.f32 0.70710677, %v3838_v13  ;;  %v467_v18 = vmul.f32 0.5, %v3808_v2  ;;  %v477_v19 = vmul.f32 0.70710677, %v3844_v42  ;;  %v242_v1 = vld [vmem:[%s3579_s30 + $0xb8] sm:$0xff] }
  0xeb   : > { %2201 = vmatpush1.bf16.msra.mxu0 %v2964_v21  ;;  %1924 = vmatmul.mubr.bf16.gmra.mrb[24].mxu1 %v1035_v3  ;;  %v3086_v34 = vpop.eup %3085  ;;  %v1039_v11 = vpack.c.bf16 %v967_v20, %v959_v32  ;;  %v980_v10 = vmul.f32 %v852_v8, %v468_v5  ;;  %v848_v9 = vadd.f32 1.0, %v3084_v25  ;;  %3099 = verf.f32 %v482_v28  ;;  %v3890_v25 = vld [vmem:[%s3579_s30 + $0xb0] sm:$0xff] }
  0xec   : > { %v856_v37 = vadd.f32 1.0, %v3086_v34  ;;  %v485_v26 = vmul.f32 0.70710677, %v3847_v23  ;;  %v3088_v35 = vpop.eup %3087  ;;  %v463_v44 = vmul.f32 0.5, %v3814_v46  ;;  %3101 = verf.f32 %v490_v27 }
  0xed   : > { %2150 = vmatmul.mubr.bf16.gmra.mrb[24].mxu0 %v1039_v11  ;;  %v1044_v17 = vpack.c.bf16 %v980_v10, %v972_v24  ;;  %v976_v39 = vmul.f32 %v848_v9, %v464_v59  ;;  %v3090_v2 = vpop.eup %3089  ;;  %v843_v45 = vadd.f32 1.0, %v3088_v35  ;;  %v471_v48 = vmul.f32 0.5, %v3817_v47  ;;  %v3883_v59 = vld [vmem:[%s3579_s30 + $0xd0] sm:$0xff]  ;;  %v3901_v35 = vld [vmem:[%s3579_s30 + $0x118] sm:$0xff] }
  0xee   : > { %v984_v29 = vmul.f32 %v856_v37, %v472_v14  ;;  %3103 = verf.f32 %v477_v19  ;;  %v851_v43 = vadd.f32 1.0, %v3090_v2  ;;  %v481_v50 = vmul.f32 0.70710677, %v3853_v36 }
  0xef   : > { %1933 = vmatprep.mubr.bf16.mxu1 %v1044_v17  ;;  %3105 = verf.f32 %v485_v26  ;;  %v489_v52 = vmul.f32 0.70710677, %v3858_v38  ;;  %v3092_v30 = vpop.eup %3091  ;;  %v971_v54 = vmul.f32 %v843_v45, %v459_v40  ;;  %v350_v55 = vmul.f32 0.5, %v3824_v63  ;;  %v3904_v17 = vld [vmem:[%s3579_s30 + $0x158] sm:$0xff] }
  0xf0   : > { %v1048_v46 = vpack.c.bf16 %v984_v29, %v976_v39  ;;  %v358_v47 = vmul.f32 0.5, %v3829_v16  ;;  %v3094_v21 = vpop.eup %3093  ;;  %v979_v56 = vmul.f32 %v851_v43, %v467_v18  ;;  %v847_v58 = vadd.f32 1.0, %v3092_v30 }
  0xf1   : > { %3107 = verf.f32 %v481_v50  ;;  %v494_v60 = vmul.f32 0.70710677, %v3863_v49  ;;  %v3096_v61 = vpop.eup %3095  ;;  %v855_v33 = vadd.f32 1.0, %v3094_v21  ;;  %v354_v31 = vmul.f32 0.5, %v226_v51  ;;  %v3909_v50 = vld [vmem:[%s3579_s30 + $0x138] sm:$0xff] }
  0xf2   : > { %2159 = vmatprep.mubr.bf16.mxu0 %v1048_v46  ;;  %3109 = verf.f32 %v489_v52  ;;  %v502_v0 = vmul.f32 0.70710677, %v3868_v53  ;;  %v3098_v63 = vpop.eup %3097  ;;  %v1043_v16 = vpack.c.bf16 %v979_v56, %v971_v54  ;;  %v975_v22 = vmul.f32 %v847_v58, %v463_v44  ;;  %v3912_v52 = vld [vmem:[%s3579_s30 + $0x178] sm:$0xff] }
  0xf3   : > { %v734_v4 = vadd.f32 1.0, %v3096_v61  ;;  %3111 = verf.f32 %v494_v60  ;;  %v983_v5 = vmul.f32 %v855_v33, %v471_v48  ;;  %v742_v6 = vadd.f32 1.0, %v3098_v63 }
  0xf4   : > { %v362_v7 = vmul.f32 0.5, %v3838_v13  ;;  %3113 = verf.f32 %v502_v0  ;;  %1934 = vmatmul.mubr.bf16.gmra.mrb[28].mxu1 %v1043_v16  ;;  %v349_v51 = vmul.f32 0.5, %v3844_v42  ;;  %v498_v12 = vmul.f32 0.70710677, %v242_v1  ;;  %v3895_v42 = vld [vmem:[%s3579_s30 + $0xf0] sm:$0xff] }
  0xf5   : > { %v862_v62 = vmul.f32 %v734_v4, %v350_v55  ;;  %v506_v3 = vmul.f32 0.70710677, %v3876_v41  ;;  %v3100_v32 = vpop.eup %3099  ;;  %v1047_v15 = vpack.c.bf16 %v983_v5, %v975_v22  ;;  %v870_v20 = vmul.f32 %v742_v6, %v358_v47  ;;  %v3922_v0 = vld [vmem:[%s3579_s30 + $0x150] sm:$0xff] }
  0xf6   : > { %v357_v8 = vmul.f32 0.5, %v3847_v23  ;;  %v493_v14 = vmul.f32 0.70710677, %v3879_v57  ;;  %v3102_v13 = vpop.eup %3101  ;;  %v738_v24 = vadd.f32 1.0, %v3100_v32  ;;  %v353_v40 = vmul.f32 0.5, %v3853_v36  ;;  %v3928_v6 = vld [vmem:[%s3579_s30 + $0x130] sm:$0xff] }
  0xf7   : > { %3115 = verf.f32 %v498_v12  ;;  %v501_v28 = vmul.f32 0.70710677, %v3883_v59  ;;  %2160 = vmatmul.mubr.bf16.gmra.mrb[28].mxu0 %v1047_v15  ;;  %v990_v34 = vpack.c.bf16 %v870_v20, %v862_v62  ;;  %v746_v11 = vadd.f32 1.0, %v3102_v13 }
  0xf8   : > { %v3104_v27 = vpop.eup %3103  ;;  %v361_v23 = vmul.f32 0.5, %v3858_v38  ;;  %3117 = verf.f32 %v506_v3  ;;  %v866_v9 = vmul.f32 %v738_v24, %v354_v31  ;;  %v497_v36 = vmul.f32 0.70710677, %v3890_v25  ;;  %v3919_v31 = vld [vmem:[%s3579_s30 + $0x110] sm:$0xff] }
  0xf9   : > { %v3106_v10 = vpop.eup %3105  ;;  %v733_v18 = vadd.f32 1.0, %v3104_v27  ;;  %3119 = verf.f32 %v493_v14  ;;  %1976 = vmatprep.mubr.bf16.mxu1 %v990_v34  ;;  %v874_v37 = vmul.f32 %v746_v11, %v362_v7  ;;  %v505_v26 = vmul.f32 0.70710677, %v3895_v42  ;;  %v3933_v3 = vld [vmem:[%s3579_s30 + $0x170] sm:$0xff]  ;;  %v3940_v11 = vld [vmem:[%s3579_s30 + $0x198] sm:$0xff] }
  0xfa   : > { %v741_v19 = vadd.f32 1.0, %v3106_v10  ;;  %3121 = verf.f32 %v501_v28  ;;  %v366_v44 = vmul.f32 0.5, %v3863_v49  ;;  %v374_v2 = vmul.f32 0.5, %v3868_v53 }
  0xfb   : > { %v3108_v38 = vpop.eup %3107  ;;  %v861_v39 = vmul.f32 %v733_v18, %v349_v51  ;;  %3123 = verf.f32 %v497_v36  ;;  %v994_v45 = vpack.c.bf16 %v874_v37, %v866_v9  ;;  %v370_v54 = vmul.f32 0.5, %v242_v1 }
  0xfc   : > { %v3110_v29 = vpop.eup %3109  ;;  %v869_v48 = vmul.f32 %v741_v19, %v357_v8  ;;  %v737_v43 = vadd.f32 1.0, %v3108_v38  ;;  %3125 = verf.f32 %v505_v26  ;;  %v510_v55 = vmul.f32 0.70710677, %v3901_v35  ;;  %v3947_v19 = vld [vmem:[%s3579_s30 + $0x1b8] sm:$0xff] }
  0xfd   : > { %v3112_v30 = vpop.eup %3111  ;;  %v745_v46 = vadd.f32 1.0, %v3110_v29  ;;  %v518_v49 = vmul.f32 0.70710677, %v3904_v17  ;;  %2202 = vmatprep.mubr.bf16.mxu0 %v994_v45  ;;  %v378_v58 = vmul.f32 0.5, %v3876_v41  ;;  %v514_v33 = vmul.f32 0.70710677, %v3909_v50 }
  0xfe   : > { %v3114_v53 = vpop.eup %3113  ;;  %v989_v47 = vpack.c.bf16 %v869_v48, %v861_v39  ;;  %v865_v21 = vmul.f32 %v737_v43, %v353_v40  ;;  %v750_v56 = vadd.f32 1.0, %v3112_v30  ;;  %3127 = verf.f32 %v510_v55  ;;  %v3950_v26 = vld [vmem:[%s3579_s30 + $0x1f8] sm:$0xff]  ;;  %v3960_v55 = vld [vmem:[%s3579_s30 + $0x190] sm:$0xff] }
  0xff   : > { %v873_v60 = vmul.f32 %v745_v46, %v361_v23  ;;  %v758_v61 = vadd.f32 1.0, %v3114_v53  ;;  %v365_v63 = vmul.f32 0.5, %v3879_v57  ;;  %3129 = verf.f32 %v518_v49 }
 0x100   : > { %1977 = vmatmul.mubr.bf16.vlgmr.msra.gmra.mrb[0].mxu1 %v989_v47  ;;  %v878_v1 = vmul.f32 %v750_v56, %v366_v44  ;;  %v522_v16 = vmul.f32 0.70710677, %v3912_v52  ;;  %v373_v5 = vmul.f32 0.5, %v3883_v59  ;;  %3131 = verf.f32 %v514_v33 }
 0x101   : > { %v3116_v22 = vpop.eup %3115  ;;  %v993_v41 = vpack.c.bf16 %v873_v60, %v865_v21  ;;  %v886_v4 = vmul.f32 %v758_v61, %v374_v2  ;;  %v509_v51 = vmul.f32 0.70710677, %v3919_v31  ;;  %v517_v12 = vmul.f32 0.70710677, %v3922_v0 }
 0x102   : > { %v3118_v7 = vpop.eup %3117  ;;  %v754_v62 = vadd.f32 1.0, %v3116_v22  ;;  %3133 = verf.f32 %v522_v16  ;;  %v369_v59 = vmul.f32 0.5, %v3890_v25  ;;  %v377_v20 = vmul.f32 0.5, %v3895_v42  ;;  %v3943_v25 = vld [vmem:[%s3579_s30 + $0x1d8] sm:$0xff]  ;;  %v3972_v16 = vld [vmem:[%s3579_s30 + $0x1f0] sm:$0xff] }
 0x103   : > { %v3120_v57 = vpop.eup %3119  ;;  %2203 = vmatmul.mubr.bf16.vlgmr.msra.gmra.mrb[0].mxu0 %v993_v41  ;;  %v998_v32 = vpack.c.bf16 %v886_v4, %v878_v1  ;;  %v762_v15 = vadd.f32 1.0, %v3118_v7  ;;  %3135 = verf.f32 %v509_v51  ;;  %v513_v24 = vmul.f32 0.70710677, %v3928_v6 }
 0x104   : > { %v3122_v8 = vpop.eup %3121  ;;  %v882_v14 = vmul.f32 %v754_v62, %v370_v54  ;;  %v749_v13 = vadd.f32 1.0, %v3120_v57  ;;  %3137 = verf.f32 %v517_v12  ;;  %v521_v34 = vmul.f32 0.70710677, %v3933_v3  ;;  %v3978_v12 = vld [vmem:[%s3579_s30 + $0x218] sm:$0xff] }
 0x105   : > { %v3124_v40 = vpop.eup %3123  ;;  %1986 = vmatprep.mubr.bf16.mxu1 %v998_v32  ;;  %v890_v28 = vmul.f32 %v762_v15, %v378_v58  ;;  %v757_v27 = vadd.f32 1.0, %v3122_v8  ;;  %v382_v9 = vmul.f32 0.5, %v3901_v35  ;;  %3139 = verf.f32 %v513_v24 }
 0x106   : > { %v3126_v42 = vpop.eup %3125  ;;  %v877_v23 = vmul.f32 %v749_v13, %v365_v63  ;;  %v753_v10 = vadd.f32 1.0, %v3124_v40  ;;  %3141 = verf.f32 %v521_v34  ;;  %v390_v39 = vmul.f32 0.5, %v3904_v17  ;;  %v3969_v63 = vld [vmem:[%s3579_s30 + $0x1b0] sm:$0xff] }
 0x107   : > { %v1002_v18 = vpack.c.bf16 %v890_v28, %v882_v14  ;;  %v885_v36 = vmul.f32 %v757_v27, %v373_v5  ;;  %v761_v37 = vadd.f32 1.0, %v3126_v42  ;;  %v526_v44 = vmul.f32 0.70710677, %v3940_v11  ;;  %v3987_v28 = vld [vmem:[%s3579_s30 + $0x238] sm:$0xff] }
 0x108   : > { %v881_v38 = vmul.f32 %v753_v10, %v369_v59  ;;  %v534_v2 = vmul.f32 0.70710677, %v3943_v25  ;;  %v3128_v29 = vpop.eup %3127  ;;  %v386_v48 = vmul.f32 0.5, %v3909_v50  ;;  %v394_v43 = vmul.f32 0.5, %v3912_v52  ;;  %v3964_v50 = vld [vmem:[%s3579_s30 + $0x1d0] sm:$0xff]  ;;  %v3983_v59 = vld [vmem:[%s3579_s30 + $0x258] sm:$0xff] }
 0x109   : > { %2212 = vmatprep.mubr.bf16.mxu0 %v1002_v18  ;;  %v997_v35 = vpack.c.bf16 %v885_v36, %v877_v23  ;;  %v889_v45 = vmul.f32 %v761_v37, %v377_v20  ;;  %v3130_v30 = vpop.eup %3129  ;;  %v766_v46 = vadd.f32 1.0, %v3128_v29  ;;  %3143 = verf.f32 %v526_v44  ;;  %v3990_v27 = vld [vmem:[%s3579_s30 + $0x278] sm:$0xff] }
 0x10a   : > { %v530_v54 = vmul.f32 0.70710677, %v3947_v19  ;;  %v538_v17 = vmul.f32 0.70710677, %v3950_v26  ;;  %v3132_v49 = vpop.eup %3131  ;;  %v774_v47 = vadd.f32 1.0, %v3130_v30  ;;  %v381_v21 = vmul.f32 0.5, %v3919_v31 }
 0x10b   : > { %1987 = vmatmul.mubr.bf16.gmra.mrb[4].mxu1 %v997_v35  ;;  %v1001_v53 = vpack.c.bf16 %v889_v45, %v881_v38  ;;  %3145 = verf.f32 %v534_v2  ;;  %v894_v56 = vmul.f32 %v766_v46, %v382_v9  ;;  %v770_v58 = vadd.f32 1.0, %v3132_v49  ;;  %v3999_v2 = vld [vmem:[%s3579_s30 + $0x210] sm:$0xff] }
 0x10c   : > { %v3134_v52 = vpop.eup %3133  ;;  %v389_v60 = vmul.f32 0.5, %v3922_v0  ;;  %3147 = verf.f32 %v530_v54  ;;  %v902_v61 = vmul.f32 %v774_v47, %v390_v39  ;;  %v525_v1 = vmul.f32 0.70710677, %v3960_v55  ;;  %v4011_v47 = vld [vmem:[%s3579_s30 + $0x270] sm:$0xff] }
 0x10d   : > { %2213 = vmatmul.mubr.bf16.gmra.mrb[4].mxu0 %v1001_v53  ;;  %v778_v33 = vadd.f32 1.0, %v3134_v52  ;;  %3149 = verf.f32 %v538_v17  ;;  %v3136_v31 = vpop.eup %3135  ;;  %v898_v22 = vmul.f32 %v770_v58, %v386_v48  ;;  %v385_v41 = vmul.f32 0.5, %v3928_v6  ;;  %v4008_v53 = vld [vmem:[%s3579_s30 + $0x230] sm:$0xff] }
 0x10e   : > { %v393_v4 = vmul.f32 0.5, %v3933_v3  ;;  %v533_v0 = vmul.f32 0.70710677, %v3964_v50  ;;  %v3138_v5 = vpop.eup %3137  ;;  %v1006_v7 = vpack.c.bf16 %v902_v61, %v894_v56  ;;  %v765_v51 = vadd.f32 1.0, %v3136_v31 }
 0x10f   : > { %v906_v62 = vmul.f32 %v778_v33, %v394_v43  ;;  %3151 = verf.f32 %v525_v1  ;;  %v3140_v57 = vpop.eup %3139  ;;  %v773_v32 = vadd.f32 1.0, %v3138_v5  ;;  %v529_v15 = vmul.f32 0.70710677, %v3969_v63  ;;  %v4017_v1 = vld [vmem:[%s3579_s30 + $0x298] sm:$0xff] }
 0x110   : > { %3153 = verf.f32 %v533_v0  ;;  %v537_v6 = vmul.f32 0.70710677, %v3972_v16  ;;  %v3142_v3 = vpop.eup %3141  ;;  %1996 = vmatprep.mubr.bf16.mxu1 %v1006_v7  ;;  %v893_v8 = vmul.f32 %v765_v51, %v381_v21  ;;  %v769_v14 = vadd.f32 1.0, %v3140_v57 }
 0x111   : > { %v1010_v20 = vpack.c.bf16 %v906_v62, %v898_v22  ;;  %v901_v13 = vmul.f32 %v773_v32, %v389_v60  ;;  %v777_v24 = vadd.f32 1.0, %v3142_v3  ;;  %v398_v40 = vmul.f32 0.5, %v3940_v11 }
 0x112   : > { %3155 = verf.f32 %v529_v15  ;;  %v897_v34 = vmul.f32 %v769_v14, %v385_v41  ;;  %v542_v42 = vmul.f32 0.70710677, %v3978_v12  ;;  %v550_v23 = vmul.f32 0.70710677, %v3983_v59  ;;  %v4028_v15 = vld [vmem:[%s3579_s30 + $0x2b8] sm:$0xff] }
 0x113   : > { %2222 = vmatprep.mubr.bf16.mxu0 %v1010_v20  ;;  %3157 = verf.f32 %v537_v6  ;;  %v3144_v10 = vpop.eup %3143  ;;  %v1005_v9 = vpack.c.bf16 %v901_v13, %v893_v8  ;;  %v905_v18 = vmul.f32 %v777_v24, %v393_v4  ;;  %v406_v36 = vmul.f32 0.5, %v3943_v25  ;;  %v4003_v25 = vld [vmem:[%s3579_s30 + $0x250] sm:$0xff]  ;;  %v4022_v4 = vld [vmem:[%s3579_s30 + $0x2d8] sm:$0xff] }
 0x114   : > { %v402_v11 = vmul.f32 0.5, %v3947_v19  ;;  %v782_v38 = vadd.f32 1.0, %v3144_v10  ;;  %3159 = verf.f32 %v542_v42  ;;  %v546_v39 = vmul.f32 0.70710677, %v3987_v28  ;;  %v4033_v8 = vld [vmem:[%s3579_s30 + $0x2f8] sm:$0xff] }
 0x115   : > { %v3146_v37 = vpop.eup %3145  ;;  %v554_v44 = vmul.f32 0.70710677, %v3990_v27  ;;  %1997 = vmatmul.mubr.bf16.gmra.mrb[8].mxu1 %v1005_v9  ;;  %v1009_v35 = vpack.c.bf16 %v905_v18, %v897_v34  ;;  %v410_v48 = vmul.f32 0.5, %v3950_v26  ;;  %3161 = verf.f32 %v550_v23  ;;  %v4038_v23 = vld [vmem:[%s3579_s30 + $0x290] sm:$0xff] }
 0x116   : > { %v3148_v29 = vpop.eup %3147  ;;  %v790_v45 = vadd.f32 1.0, %v3146_v37  ;;  %v910_v43 = vmul.f32 %v782_v38, %v398_v40  ;;  %v397_v46 = vmul.f32 0.5, %v3960_v55  ;;  %3163 = verf.f32 %v546_v39 }
 0x117   : > { %v3150_v19 = vpop.eup %3149  ;;  %v786_v30 = vadd.f32 1.0, %v3148_v29  ;;  %2223 = vmatmul.mubr.bf16.gmra.mrb[8].mxu0 %v1009_v35  ;;  %3165 = verf.f32 %v554_v44  ;;  %v541_v49 = vmul.f32 0.70710677, %v3999_v2  ;;  %v405_v52 = vmul.f32 0.5, %v3964_v50 }
 0x118   : > { %v918_v54 = vmul.f32 %v790_v45, %v406_v36  ;;  %v794_v17 = vadd.f32 1.0, %v3150_v19  ;;  %v401_v56 = vmul.f32 0.5, %v3969_v63  ;;  %v549_v55 = vmul.f32 0.70710677, %v4003_v25  ;;  %v4044_v36 = vld [vmem:[%s3579_s30 + $0x2d0] sm:$0xff] }
 0x119   : > { %v3152_v26 = vpop.eup %3151  ;;  %v914_v21 = vmul.f32 %v786_v30, %v402_v11  ;;  %3167 = verf.f32 %v541_v49  ;;  %v545_v22 = vmul.f32 0.70710677, %v4008_v53  ;;  %v553_v41 = vmul.f32 0.70710677, %v4011_v47  ;;  %v4048_v45 = vld [vmem:[%s3579_s30 + $0x2b0] sm:$0xff] }
 0x11a   : > { %v3154_v58 = vpop.eup %3153  ;;  %v1014_v60 = vpack.c.bf16 %v918_v54, %v910_v43  ;;  %v922_v61 = vmul.f32 %v794_v17, %v410_v48  ;;  %v781_v33 = vadd.f32 1.0, %v3152_v26  ;;  %3169 = verf.f32 %v549_v55  ;;  %v4057_v26 = vld [vmem:[%s3579_s30 + $0x318] sm:$0xff] }
 0x11b   : > { %v789_v31 = vadd.f32 1.0, %v3154_v58  ;;  %v409_v5 = vmul.f32 0.5, %v3972_v16  ;;  %v414_v7 = vmul.f32 0.5, %v3978_v12  ;;  %3171 = verf.f32 %v545_v22  ;;  %v4062_v55 = vld [vmem:[%s3579_s30 + $0x358] sm:$0xff] }
 0x11c   : > { %v3156_v50 = vpop.eup %3155  ;;  %2006 = vmatprep.mubr.bf16.mxu1 %v1014_v60  ;;  %v1018_v63 = vpack.c.bf16 %v922_v61, %v914_v21  ;;  %v909_v0 = vmul.f32 %v781_v33, %v397_v46  ;;  %v558_v32 = vmul.f32 0.70710677, %v4017_v1  ;;  %v422_v3 = vmul.f32 0.5, %v3983_v59 }
 0x11d   : > { %v3158_v62 = vpop.eup %3157  ;;  %v917_v51 = vmul.f32 %v789_v31, %v405_v52  ;;  %v785_v57 = vadd.f32 1.0, %v3156_v50  ;;  %3173 = verf.f32 %v553_v41  ;;  %v566_v20 = vmul.f32 0.70710677, %v4022_v4 }
 0x11e   : > { %2232 = vmatprep.mubr.bf16.mxu0 %v1018_v63  ;;  %v793_v6 = vadd.f32 1.0, %v3158_v62  ;;  %v3160_v16 = vpop.eup %3159  ;;  %v418_v13 = vmul.f32 0.5, %v3987_v28  ;;  %3175 = verf.f32 %v558_v32  ;;  %v562_v42 = vmul.f32 0.70710677, %v4028_v15 }
 0x11f   : > { %v1013_v12 = vpack.c.bf16 %v917_v51, %v909_v0  ;;  %v913_v14 = vmul.f32 %v785_v57, %v401_v56  ;;  %v3162_v24 = vpop.eup %3161  ;;  %v798_v34 = vadd.f32 1.0, %v3160_v16  ;;  %3177 = verf.f32 %v566_v20  ;;  %v4077_v20 = vld [vmem:[%s3579_s30 + $0x310] sm:$0xff] }
 0x120   : > { %v921_v40 = vmul.f32 %v793_v6, %v409_v5  ;;  %v3164_v59 = vpop.eup %3163  ;;  %v806_v10 = vadd.f32 1.0, %v3162_v24  ;;  %v426_v9 = vmul.f32 0.5, %v3990_v27  ;;  %v413_v18 = vmul.f32 0.5, %v3999_v2  ;;  %v4051_v27 = vld [vmem:[%s3579_s30 + $0x2f0] sm:$0xff] }
 0x121   : > { %2007 = vmatmul.mubr.bf16.gmra.mrb[12].mxu1 %v1013_v12  ;;  %v570_v28 = vmul.f32 0.70710677, %v4033_v8  ;;  %v3166_v11 = vpop.eup %3165  ;;  %v926_v38 = vmul.f32 %v798_v34, %v414_v7  ;;  %v802_v39 = vadd.f32 1.0, %v3164_v59  ;;  %3179 = verf.f32 %v562_v42  ;;  %v4070_v7 = vld [vmem:[%s3579_s30 + $0x338] sm:$0xff] }
 0x122   : > { %v1017_v37 = vpack.c.bf16 %v921_v40, %v913_v14  ;;  %v934_v44 = vmul.f32 %v806_v10, %v422_v3  ;;  %v810_v29 = vadd.f32 1.0, %v3166_v11  ;;  %v557_v35 = vmul.f32 0.70710677, %v4038_v23  ;;  %v4087_v10 = vld [vmem:[%s3579_s30 + $0x330] sm:$0xff] }
 0x123   : > { %3181 = verf.f32 %v570_v28  ;;  %v3168_v2 = vpop.eup %3167  ;;  %v930_v48 = vmul.f32 %v802_v39, %v418_v13  ;;  %v421_v19 = vmul.f32 0.5, %v4003_v25  ;;  %v417_v43 = vmul.f32 0.5, %v4008_v53 }
 0x124   : > { %2233 = vmatmul.mubr.bf16.gmra.mrb[12].mxu0 %v1017_v37  ;;  %v565_v30 = vmul.f32 0.70710677, %v4044_v36  ;;  %v3170_v46 = vpop.eup %3169  ;;  %v1022_v54 = vpack.c.bf16 %v934_v44, %v926_v38  ;;  %v938_v17 = vmul.f32 %v810_v29, %v426_v9  ;;  %v797_v49 = vadd.f32 1.0, %v3168_v2  ;;  %v4097_v2 = vld [vmem:[%s3579_s30 + $0x398] sm:$0xff] }
 0x125   : > { %3183 = verf.f32 %v557_v35  ;;  %v805_v21 = vadd.f32 1.0, %v3170_v46  ;;  %v561_v52 = vmul.f32 0.70710677, %v4048_v45  ;;  %v569_v56 = vmul.f32 0.70710677, %v4051_v27  ;;  %v3172_v25 = vpop.eup %3171 }
 0x126   : > { %3185 = verf.f32 %v565_v30  ;;  %2016 = vmatprep.mubr.bf16.mxu1 %v1022_v54  ;;  %v1026_v53 = vpack.c.bf16 %v938_v17, %v930_v48  ;;  %v925_v58 = vmul.f32 %v797_v49, %v413_v18  ;;  %v425_v60 = vmul.f32 0.5, %v4011_v47  ;;  %v4073_v47 = vld [vmem:[%s3579_s30 + $0x378] sm:$0xff] }
 0x127   : > { %v430_v61 = vmul.f32 0.5, %v4017_v1  ;;  %v3174_v33 = vpop.eup %3173  ;;  %v933_v31 = vmul.f32 %v805_v21, %v421_v19  ;;  %v801_v22 = vadd.f32 1.0, %v3172_v25  ;;  %3187 = verf.f32 %v561_v52  ;;  %v4102_v30 = vld [vmem:[%s3579_s30 + $0x3d8] sm:$0xff] }
 0x128   : > { %v574_v41 = vmul.f32 0.70710677, %v4057_v26  ;;  %v3176_v50 = vpop.eup %3175  ;;  %2242 = vmatprep.mubr.bf16.mxu0 %v1026_v53  ;;  %v809_v63 = vadd.f32 1.0, %v3174_v33  ;;  %v438_v0 = vmul.f32 0.5, %v4022_v4  ;;  %3189 = verf.f32 %v569_v56  ;;  %v4080_v4 = vld [vmem:[%s3579_s30 + $0x350] sm:$0xff] }
 0x129   : > { %v582_v5 = vmul.f32 0.70710677, %v4062_v55  ;;  %v3178_v1 = vpop.eup %3177  ;;  %v1021_v62 = vpack.c.bf16 %v933_v31, %v925_v58  ;;  %v929_v51 = vmul.f32 %v801_v22, %v417_v43  ;;  %v814_v57 = vadd.f32 1.0, %v3176_v50 }
 0x12a   : > { %3191 = verf.f32 %v574_v41  ;;  %v937_v32 = vmul.f32 %v809_v63, %v425_v60  ;;  %v822_v6 = vadd.f32 1.0, %v3178_v1  ;;  %v434_v3 = vmul.f32 0.5, %v4028_v15  ;;  %v4116_v41 = vld [vmem:[%s3579_s30 + $0x390] sm:$0xff] }
 0x12b   : > { %3193 = verf.f32 %v582_v5  ;;  %v3180_v16 = vpop.eup %3179  ;;  %2017 = vmatmul.mubr.bf16.gmra.mrb[16].mxu1 %v1021_v62  ;;  %v942_v12 = vmul.f32 %v814_v57, %v430_v61  ;;  %v442_v14 = vmul.f32 0.5, %v4033_v8  ;;  %v578_v13 = vmul.f32 0.70710677, %v4070_v7  ;;  %v4092_v8 = vld [vmem:[%s3579_s30 + $0x370] sm:$0xff]  ;;  %v4110_v61 = vld [vmem:[%s3579_s30 + $0x3b8] sm:$0xff] }
 0x12c   : > { %v586_v24 = vmul.f32 0.70710677, %v4073_v47  ;;  %v1025_v34 = vpack.c.bf16 %v937_v32, %v929_v51  ;;  %v950_v42 = vmul.f32 %v822_v6, %v438_v0  ;;  %v818_v59 = vadd.f32 1.0, %v3180_v16 }
 0x12d   : > { %v3182_v40 = vpop.eup %3181  ;;  %v429_v15 = vmul.f32 0.5, %v4038_v23  ;;  %3195 = verf.f32 %v578_v13  ;;  %v573_v18 = vmul.f32 0.70710677, %v4077_v20  ;;  %v581_v28 = vmul.f32 0.70710677, %v4080_v4 }
 0x12e   : > { %v826_v9 = vadd.f32 1.0, %v3182_v40  ;;  %2243 = vmatmul.mubr.bf16.gmra.mrb[16].mxu0 %v1025_v34  ;;  %v1030_v37 = vpack.c.bf16 %v950_v42, %v942_v12  ;;  %v946_v38 = vmul.f32 %v818_v59, %v434_v3  ;;  %v437_v39 = vmul.f32 0.5, %v4044_v36 }
 0x12f   : > { %v3184_v11 = vpop.eup %3183  ;;  %3197 = verf.f32 %v586_v24  ;;  %v433_v35 = vmul.f32 0.5, %v4048_v45  ;;  %v577_v19 = vmul.f32 0.70710677, %v4087_v10  ;;  %v585_v43 = vmul.f32 0.70710677, %v4092_v8 }
 0x130   : > { %v3186_v23 = vpop.eup %3185  ;;  %v954_v44 = vmul.f32 %v826_v9, %v442_v14  ;;  %v813_v29 = vadd.f32 1.0, %v3184_v11  ;;  %3199 = verf.f32 %v573_v18  ;;  %2026 = vmatprep.mubr.bf16.mxu1 %v1030_v37  ;;  %v441_v17 = vmul.f32 0.5, %v4051_v27  ;;  %v4113_v27 = vld [vmem:[%s3579_s30 + $0x3f8] sm:$0xff] }
 0x131   : > { %v821_v48 = vadd.f32 1.0, %v3186_v23  ;;  %3201 = verf.f32 %v581_v28  ;;  %v3188_v46 = vpop.eup %3187  ;;  %v446_v45 = vmul.f32 0.5, %v4057_v26  ;;  %v590_v56 = vmul.f32 0.70710677, %v4097_v2 }
 0x132   : > { %v1034_v36 = vpack.c.bf16 %v954_v44, %v946_v38  ;;  %v941_v54 = vmul.f32 %v813_v29, %v429_v15  ;;  %v3190_v49 = vpop.eup %3189  ;;  %v817_v52 = vadd.f32 1.0, %v3188_v46  ;;  %3203 = verf.f32 %v577_v19 }
 0x133   : > { %v949_v21 = vmul.f32 %v821_v48, %v437_v39  ;;  %v825_v53 = vadd.f32 1.0, %v3190_v49  ;;  %v454_v58 = vmul.f32 0.5, %v4062_v55  ;;  %3205 = verf.f32 %v585_v43  ;;  %v4120_v55 = vld [vmem:[%s3579_s30 + $0x3d0] sm:$0xff] }
 0x134   : > { %v3192_v25 = vpop.eup %3191  ;;  %2252 = vmatprep.mubr.bf16.mxu0 %v1034_v36  ;;  %v598_v60 = vmul.f32 0.70710677, %v4102_v30  ;;  %v945_v31 = vmul.f32 %v817_v52, %v433_v35  ;;  %3207 = verf.f32 %v590_v56  ;;  %v450_v0 = vmul.f32 0.5, %v4070_v7  ;;  %v337_v7 = vld [vmem:[%s3579_s30 + $0x3b0] sm:$0xff] }
 0x135   : > { %v3194_v26 = vpop.eup %3193  ;;  %v1029_v33 = vpack.c.bf16 %v949_v21, %v941_v54  ;;  %v830_v22 = vadd.f32 1.0, %v3192_v25  ;;  %v953_v50 = vmul.f32 %v825_v53, %v441_v17  ;;  %v458_v1 = vmul.f32 0.5, %v4073_v47  ;;  %v345_v47 = vld [vmem:[%s3579_s30 + $0x3f0] sm:$0xff] }
 0x136   : > { %v838_v63 = vadd.f32 1.0, %v3194_v26  ;;  %3209 = verf.f32 %v598_v60  ;;  %v594_v62 = vmul.f32 0.70710677, %v4110_v61  ;;  %v602_v51 = vmul.f32 0.70710677, %v4113_v27 }
 0x137   : > { %2027 = vmatmul.mubr.bf16.gmra.mrb[20].mxu1 %v1029_v33  ;;  %v958_v5 = vmul.f32 %v830_v22, %v446_v45  ;;  %v3196_v57 = vpop.eup %3195  ;;  %v1033_v32 = vpack.c.bf16 %v953_v50, %v945_v31  ;;  %v445_v3 = vmul.f32 0.5, %v4077_v20  ;;  %v589_v16 = vmul.f32 0.70710677, %v4116_v41 }
 0x138   : > { %v966_v6 = vmul.f32 %v838_v63, %v454_v58  ;;  %v834_v14 = vadd.f32 1.0, %v3196_v57  ;;  %v453_v13 = vmul.f32 0.5, %v4080_v4  ;;  %3211 = verf.f32 %v594_v62 }
 0x139   : > { %v3198_v12 = vpop.eup %3197  ;;  %v597_v24 = vmul.f32 0.70710677, %v4120_v55  ;;  %2253 = vmatmul.mubr.bf16.gmra.mrb[20].mxu0 %v1033_v32  ;;  %v449_v59 = vmul.f32 0.5, %v4087_v10  ;;  %3213 = verf.f32 %v602_v51  ;;  %v593_v18 = vmul.f32 0.70710677, %v337_v7 }
 0x13a   : > { %v3200_v40 = vpop.eup %3199  ;;  %v1038_v34 = vpack.c.bf16 %v966_v6, %v958_v5  ;;  %v842_v42 = vadd.f32 1.0, %v3198_v12  ;;  %v962_v20 = vmul.f32 %v834_v14, %v450_v0  ;;  %3215 = verf.f32 %v589_v16 }
 0x13b   : > { %v3202_v15 = vpop.eup %3201  ;;  %v829_v9 = vadd.f32 1.0, %v3200_v40  ;;  %3217 = verf.f32 %v597_v24  ;;  %v601_v4 = vmul.f32 0.70710677, %v345_v47  ;;  %v457_v39 = vmul.f32 0.5, %v4092_v8  ;;  %v1179_v24 = vld [vmem:[#allocation7] sm:$0x3] }
 0x13c   : > { %2036 = vmatprep.mubr.bf16.mxu1 %v1038_v34  ;;  %v970_v28 = vmul.f32 %v842_v42, %v458_v1  ;;  %v837_v11 = vadd.f32 1.0, %v3202_v15  ;;  %v3204_v37 = vpop.eup %3203  ;;  %v462_v23 = vmul.f32 0.5, %v4097_v2  ;;  %3219 = verf.f32 %v593_v18 }
 0x13d   : > { %v957_v38 = vmul.f32 %v829_v9, %v445_v3  ;;  %v3206_v44 = vpop.eup %3205  ;;  %v833_v35 = vadd.f32 1.0, %v3204_v37  ;;  %3221 = verf.f32 %v601_v4  ;;  %v470_v43 = vmul.f32 0.5, %v4102_v30 }
 0x13e   : > { %v1042_v10 = vpack.c.bf16 %v970_v28, %v962_v20  ;;  %v965_v29 = vmul.f32 %v837_v11, %v453_v13  ;;  %v3208_v48 = vpop.eup %3207  ;;  %v841_v19 = vadd.f32 1.0, %v3206_v44  ;;  %v466_v2 = vmul.f32 0.5, %v4110_v61 }
 0x13f   : > { %v961_v54 = vmul.f32 %v833_v35, %v449_v59  ;;  %v846_v17 = vadd.f32 1.0, %v3208_v48  ;;  %v474_v25 = vmul.f32 0.5, %v4113_v27  ;;  %v461_v30 = vmul.f32 0.5, %v4116_v41 }
 0x140   : > { %v3210_v46 = vpop.eup %3209  ;;  %2262 = vmatprep.mubr.bf16.mxu0 %v1042_v10  ;;  %v1037_v36 = vpack.c.bf16 %v965_v29, %v957_v38  ;;  %v969_v45 = vmul.f32 %v841_v19, %v457_v39  ;;  %v469_v31 = vmul.f32 0.5, %v4120_v55  ;;  %v465_v0 = vmul.f32 0.5, %v337_v7 }
 0x141   : > { %v854_v49 = vadd.f32 1.0, %v3210_v46  ;;  %v974_v8 = vmul.f32 %v846_v17, %v462_v23  ;;  %v473_v62 = vmul.f32 0.5, %v345_v47  ;;  %v1181_v7 = vlaneseq }
 0x142   : > { %2037 = vmatmul.mubr.bf16.gmra.mrb[24].mxu1 %v1037_v36  ;;  %v3212_v21 = vpop.eup %3211  ;;  %v1041_v52 = vpack.c.bf16 %v969_v45, %v961_v54 }
 0x143   : > { %v982_v56 = vmul.f32 %v854_v49, %v470_v43  ;;  %v3214_v53 = vpop.eup %3213  ;;  %v850_v58 = vadd.f32 1.0, %v3212_v21  ;;  %v1182_v14 = vshrl.u32 %v1181_v7, 7 }
 0x144   : > { %v3216_v60 = vpop.eup %3215  ;;  %2263 = vmatmul.mubr.bf16.gmra.mrb[24].mxu0 %v1041_v52  ;;  %v858_v33 = vadd.f32 1.0, %v3214_v53 }
 0x145   : > { %v1046_v26 = vpack.c.bf16 %v982_v56, %v974_v8  ;;  %v3218_v22 = vpop.eup %3217  ;;  %v978_v50 = vmul.f32 %v850_v58, %v466_v2  ;;  %v845_v63 = vadd.f32 1.0, %v3216_v60  ;;  %v1183_v13 = vsub.s32 0, %v1182_v14 }
 0x146   : > { %v3220_v61 = vpop.eup %3219  ;;  %v986_v5 = vmul.f32 %v858_v33, %v474_v25  ;;  %v853_v1 = vadd.f32 1.0, %v3218_v22  ;;  %v1187_v40 = vsub.s32 1, %v1182_v14 }
 0x147   : > { %2046 = vmatprep.mubr.bf16.mxu1 %v1046_v26  ;;  %v3222_v27 = vpop.eup %3221  ;;  %v973_v51 = vmul.f32 %v845_v63, %v461_v30  ;;  %v849_v57 = vadd.f32 1.0, %v3220_v61  ;;  %v4139_v47 = vrot.slane %v1179_v24, %v1183_v13 }
 0x148   : > { %v1050_v32 = vpack.c.bf16 %v986_v5, %v978_v50  ;;  %v981_v41 = vmul.f32 %v853_v1, %v469_v31  ;;  %v857_v6 = vadd.f32 1.0, %v3222_v27  ;;  %v4141_v34 = vrot.slane %v1179_v24, %v1187_v40 }
 0x149   : > { %v977_v3 = vmul.f32 %v849_v57, %v465_v0 }
 0x14a   : > { %2272 = vmatprep.mubr.bf16.mxu0 %v1050_v32  ;;  %v1045_v16 = vpack.c.bf16 %v981_v41, %v973_v51  ;;  %v985_v55 = vmul.f32 %v857_v6, %v473_v62 }
 0x14c   : > { %2047 = vmatmul.mubr.bf16.gmra.mrb[28].mxu1 %v1045_v16  ;;  %v1049_v12 = vpack.c.bf16 %v985_v55, %v977_v3 }
 0x14e   : > { %2273 = vmatmul.mubr.bf16.gmra.mrb[28].mxu0 %v1049_v12 }
 0x1d3   : > { %v1978_v42 = vpop.f32.mrb[0].mxu1 }
 0x1d4   : > { %v2574_v59 = vadd.f32 %v1978_v42, %v4139_v47  ;;  %v1980_v15 = vpop.f32.mrb[1].mxu1 }
 0x1d5   : > { %v2576_v20 = vadd.f32 %v1980_v15, %v4141_v34  ;;  %v1982_v9 = vpop.f32.mrb[2].mxu1 }
 0x1d6   : > { %v2204_v18 = vpop.f32.mrb[0].mxu0  ;;  %v2578_v28 = vadd.f32 %v1982_v9, %v4139_v47  ;;  %v1984_v11 = vpop.f32.mrb[3].mxu1 }
 0x1d7   : > { %v2575_v4 = vadd.f32 %v2574_v59, %v2204_v18  ;;  %v2206_v37 = vpop.f32.mrb[1].mxu0  ;;  %v2580_v38 = vadd.f32 %v1984_v11, %v4141_v34 }
 0x1d8   : > { %v2577_v39 = vadd.f32 %v2576_v20, %v2206_v37  ;;  %v2208_v23 = vpop.f32.mrb[2].mxu0 }
 0x1d9   : > { %2283 = vst [vmem:[%s4148_s20] sm:$0xff] %v2575_v4  ;;  %v2579_v44 = vadd.f32 %v2578_v28, %v2208_v23  ;;  %v2210_v10 = vpop.f32.mrb[3].mxu0 }
 0x1da   : > { %2284 = vst [vmem:[%s4148_s20 + $0x8] sm:$0xff] %v2577_v39  ;;  %v2581_v29 = vadd.f32 %v2580_v38, %v2210_v10 }
 0x1db   : > { %2285 = vst [vmem:[%s4148_s20 + $0x10] sm:$0xff] %v2579_v44 }
 0x1dc   : > { %2286 = vst [vmem:[%s4148_s20 + $0x18] sm:$0xff] %v2581_v29 }
 0x1de   : > { %v1988_v35 = vpop.f32.mrb[4].mxu1 }
 0x1df   : > { %v2582_v48 = vadd.f32 %v1988_v35, %v4139_v47  ;;  %v1990_v19 = vpop.f32.mrb[5].mxu1 }
 0x1e0   : > { %v2214_v43 = vpop.f32.mrb[4].mxu0  ;;  %v2584_v46 = vadd.f32 %v1990_v19, %v4141_v34  ;;  %v1992_v36 = vpop.f32.mrb[6].mxu1 }
 0x1e1   : > { %v2583_v54 = vadd.f32 %v2582_v48, %v2214_v43  ;;  %v2216_v17 = vpop.f32.mrb[5].mxu0  ;;  %v2586_v45 = vadd.f32 %v1992_v36, %v4139_v47  ;;  %v1994_v49 = vpop.f32.mrb[7].mxu1 }
 0x1e2   : > { %v2585_v8 = vadd.f32 %v2584_v46, %v2216_v17  ;;  %v2218_v2 = vpop.f32.mrb[6].mxu0  ;;  %v2588_v21 = vadd.f32 %v1994_v49, %v4141_v34 }
 0x1e3   : > { %2287 = vst [vmem:[%s4148_s20 + $0x20] sm:$0xff] %v2583_v54  ;;  %v2587_v52 = vadd.f32 %v2586_v45, %v2218_v2  ;;  %v2220_v56 = vpop.f32.mrb[7].mxu0 }
 0x1e4   : > { %2288 = vst [vmem:[%s4148_s20 + $0x28] sm:$0xff] %v2585_v8  ;;  %v2589_v25 = vadd.f32 %v2588_v21, %v2220_v56 }
 0x1e5   : > { %2289 = vst [vmem:[%s4148_s20 + $0x30] sm:$0xff] %v2587_v52 }
 0x1e6   : > { %2290 = vst [vmem:[%s4148_s20 + $0x38] sm:$0xff] %v2589_v25 }
 0x1e8   : > { %v1998_v53 = vpop.f32.mrb[8].mxu1 }
 0x1e9   : > { %v2590_v58 = vadd.f32 %v1998_v53, %v4139_v47  ;;  %v2000_v30 = vpop.f32.mrb[9].mxu1 }
 0x1ea   : > { %v2224_v60 = vpop.f32.mrb[8].mxu0  ;;  %v2592_v26 = vadd.f32 %v2000_v30, %v4141_v34  ;;  %v2002_v33 = vpop.f32.mrb[10].mxu1 }
 0x1eb   : > { %v2591_v31 = vadd.f32 %v2590_v58, %v2224_v60  ;;  %v2226_v22 = vpop.f32.mrb[9].mxu0  ;;  %v2594_v50 = vadd.f32 %v2002_v33, %v4139_v47  ;;  %v2004_v63 = vpop.f32.mrb[11].mxu1 }
 0x1ec   : > { %v2593_v0 = vadd.f32 %v2592_v26, %v2226_v22  ;;  %v2228_v61 = vpop.f32.mrb[10].mxu0  ;;  %v2596_v5 = vadd.f32 %v2004_v63, %v4141_v34 }
 0x1ed   : > { %2291 = vst [vmem:[%s4148_s20 + $0x40] sm:$0xff] %v2591_v31  ;;  %v2595_v1 = vadd.f32 %v2594_v50, %v2228_v61  ;;  %v2230_v62 = vpop.f32.mrb[11].mxu0 }
 0x1ee   : > { %2292 = vst [vmem:[%s4148_s20 + $0x48] sm:$0xff] %v2593_v0  ;;  %v2597_v27 = vadd.f32 %v2596_v5, %v2230_v62 }
 0x1ef   : > { %2293 = vst [vmem:[%s4148_s20 + $0x50] sm:$0xff] %v2595_v1 }
 0x1f0   : > { %2294 = vst [vmem:[%s4148_s20 + $0x58] sm:$0xff] %v2597_v27 }
 0x1f4   : > { %v2008_v51 = vpop.f32.mrb[12].mxu1 }
 0x1f5   : > { %v2598_v57 = vadd.f32 %v2008_v51, %v4139_v47  ;;  %v2010_v32 = vpop.f32.mrb[13].mxu1 }
 0x1f6   : > { %v2600_v41 = vadd.f32 %v2010_v32, %v4141_v34  ;;  %v2012_v6 = vpop.f32.mrb[14].mxu1 }
 0x1f7   : > { %v2234_v3 = vpop.f32.mrb[12].mxu0  ;;  %v2602_v16 = vadd.f32 %v2012_v6, %v4139_v47  ;;  %v2014_v55 = vpop.f32.mrb[15].mxu1 }
 0x1f8   : > { %v2599_v12 = vadd.f32 %v2598_v57, %v2234_v3  ;;  %v2236_v7 = vpop.f32.mrb[13].mxu0  ;;  %v2604_v14 = vadd.f32 %v2014_v55, %v4141_v34 }
 0x1f9   : > { %v2601_v13 = vadd.f32 %v2600_v41, %v2236_v7  ;;  %v2238_v24 = vpop.f32.mrb[14].mxu0 }
 0x1fa   : > { %2295 = vst [vmem:[%s4148_s20 + $0x60] sm:$0xff] %v2599_v12  ;;  %v2603_v40 = vadd.f32 %v2602_v16, %v2238_v24  ;;  %v2240_v42 = vpop.f32.mrb[15].mxu0 }
 0x1fb   : > { %2296 = vst [vmem:[%s4148_s20 + $0x68] sm:$0xff] %v2601_v13  ;;  %v2605_v59 = vadd.f32 %v2604_v14, %v2240_v42 }
 0x1fc   : > { %2297 = vst [vmem:[%s4148_s20 + $0x70] sm:$0xff] %v2603_v40 }
 0x1fd   : > { %2298 = vst [vmem:[%s4148_s20 + $0x78] sm:$0xff] %v2605_v59 }
 0x1fe   : > { %v2018_v15 = vpop.f32.mrb[16].mxu1 }
 0x1ff   : > { %v2606_v20 = vadd.f32 %v2018_v15, %v4139_v47  ;;  %v2020_v9 = vpop.f32.mrb[17].mxu1 }
 0x200   : > { %v2608_v18 = vadd.f32 %v2020_v9, %v4141_v34  ;;  %v2022_v28 = vpop.f32.mrb[18].mxu1 }
 0x201   : > { %v2244_v11 = vpop.f32.mrb[16].mxu0  ;;  %v2610_v4 = vadd.f32 %v2022_v28, %v4139_v47  ;;  %v2024_v37 = vpop.f32.mrb[19].mxu1 }
 0x202   : > { %v2607_v38 = vadd.f32 %v2606_v20, %v2244_v11  ;;  %v2246_v39 = vpop.f32.mrb[17].mxu0  ;;  %v2612_v23 = vadd.f32 %v2024_v37, %v4141_v34 }
 0x203   : > { %v2609_v44 = vadd.f32 %v2608_v18, %v2246_v39  ;;  %v2248_v10 = vpop.f32.mrb[18].mxu0 }
 0x204   : > { %2299 = vst [vmem:[%s4148_s20 + $0x80] sm:$0xff] %v2607_v38  ;;  %v2611_v29 = vadd.f32 %v2610_v4, %v2248_v10  ;;  %v2250_v35 = vpop.f32.mrb[19].mxu0 }
 0x205   : > { %2300 = vst [vmem:[%s4148_s20 + $0x88] sm:$0xff] %v2609_v44  ;;  %v2613_v48 = vadd.f32 %v2612_v23, %v2250_v35 }
 0x206   : > { %2301 = vst [vmem:[%s4148_s20 + $0x90] sm:$0xff] %v2611_v29 }
 0x207   : > { %2302 = vst [vmem:[%s4148_s20 + $0x98] sm:$0xff] %v2613_v48 }
 0x20a   : > { %v2028_v19 = vpop.f32.mrb[20].mxu1 }
 0x20b   : > { %v2614_v43 = vadd.f32 %v2028_v19, %v4139_v47  ;;  %v2030_v46 = vpop.f32.mrb[21].mxu1 }
 0x20c   : > { %v2616_v36 = vadd.f32 %v2030_v46, %v4141_v34  ;;  %v2032_v54 = vpop.f32.mrb[22].mxu1  ;;  %v2254_v17 = vpop.f32.mrb[20].mxu0 }
 0x20d   : > { %v2618_v45 = vadd.f32 %v2032_v54, %v4139_v47  ;;  %v2034_v49 = vpop.f32.mrb[23].mxu1  ;;  %v2615_v8 = vadd.f32 %v2614_v43, %v2254_v17  ;;  %v2256_v2 = vpop.f32.mrb[21].mxu0 }
 0x20e   : > { %v2620_v21 = vadd.f32 %v2034_v49, %v4141_v34  ;;  %v2617_v52 = vadd.f32 %v2616_v36, %v2256_v2  ;;  %v2258_v56 = vpop.f32.mrb[22].mxu0 }
 0x20f   : > { %2303 = vst [vmem:[%s4148_s20 + $0xa0] sm:$0xff] %v2615_v8  ;;  %v2619_v25 = vadd.f32 %v2618_v45, %v2258_v56  ;;  %v2260_v53 = vpop.f32.mrb[23].mxu0 }
 0x210   : > { %2304 = vst [vmem:[%s4148_s20 + $0xa8] sm:$0xff] %v2617_v52  ;;  %v2621_v58 = vadd.f32 %v2620_v21, %v2260_v53 }
 0x211   : > { %2305 = vst [vmem:[%s4148_s20 + $0xb0] sm:$0xff] %v2619_v25 }
 0x212   : > { %2306 = vst [vmem:[%s4148_s20 + $0xb8] sm:$0xff] %v2621_v58 }
 0x215   : > { %v2038_v30 = vpop.f32.mrb[24].mxu1 }
 0x216   : > { %v2622_v60 = vadd.f32 %v2038_v30, %v4139_v47  ;;  %v2040_v26 = vpop.f32.mrb[25].mxu1 }
 0x217   : > { %v2624_v33 = vadd.f32 %v2040_v26, %v4141_v34  ;;  %v2042_v31 = vpop.f32.mrb[26].mxu1  ;;  %v2264_v22 = vpop.f32.mrb[24].mxu0 }
 0x218   : > { %v2626_v50 = vadd.f32 %v2042_v31, %v4139_v47  ;;  %v2044_v63 = vpop.f32.mrb[27].mxu1  ;;  %v2623_v0 = vadd.f32 %v2622_v60, %v2264_v22  ;;  %v2266_v61 = vpop.f32.mrb[25].mxu0 }
 0x219   : > { %v2628_v5 = vadd.f32 %v2044_v63, %v4141_v34  ;;  %v2625_v1 = vadd.f32 %v2624_v33, %v2266_v61  ;;  %v2268_v62 = vpop.f32.mrb[26].mxu0 }
 0x21a   : > { %2307 = vst [vmem:[%s4148_s20 + $0xc0] sm:$0xff] %v2623_v0  ;;  %v2627_v27 = vadd.f32 %v2626_v50, %v2268_v62  ;;  %v2270_v51 = vpop.f32.mrb[27].mxu0 }
 0x21b   : > { %2308 = vst [vmem:[%s4148_s20 + $0xc8] sm:$0xff] %v2625_v1  ;;  %v2629_v57 = vadd.f32 %v2628_v5, %v2270_v51 }
 0x21c   : > { %2309 = vst [vmem:[%s4148_s20 + $0xd0] sm:$0xff] %v2627_v27 }
 0x21d   : > { %2310 = vst [vmem:[%s4148_s20 + $0xd8] sm:$0xff] %v2629_v57 }
 0x21f   : > { %v2048_v32 = vpop.f32.mrb[28].mxu1 }
 0x220   : > { %v2630_v41 = vadd.f32 %v2048_v32, %v4139_v47  ;;  %v2050_v6 = vpop.f32.mrb[29].mxu1 }
 0x221   : > { %v2274_v3 = vpop.f32.mrb[28].mxu0  ;;  %v2632_v16 = vadd.f32 %v2050_v6, %v4141_v34  ;;  %v2052_v55 = vpop.f32.mrb[30].mxu1 }
 0x222   : > { %v2631_v12 = vadd.f32 %v2630_v41, %v2274_v3  ;;  %v2276_v7 = vpop.f32.mrb[29].mxu0  ;;  %v2634_v14 = vadd.f32 %v2052_v55, %v4139_v47  ;;  %v2054_v13 = vpop.f32.mrb[31].mxu1 }
 0x223   : > { %v2633_v24 = vadd.f32 %v2632_v16, %v2276_v7  ;;  %v2278_v40 = vpop.f32.mrb[30].mxu0  ;;  %v2636_v42 = vadd.f32 %v2054_v13, %v4141_v34 }
 0x224   : > { %2311 = vst [vmem:[%s4148_s20 + $0xe0] sm:$0xff] %v2631_v12  ;;  %v2635_v59 = vadd.f32 %v2634_v14, %v2278_v40  ;;  %v2280_v15 = vpop.f32.mrb[31].mxu0 }
 0x225   : > { %2312 = vst [vmem:[%s4148_s20 + $0xe8] sm:$0xff] %v2633_v24  ;;  %v2637_v47 = vadd.f32 %v2636_v42, %v2280_v15 }
 0x226   : > { %2313 = vst [vmem:[%s4148_s20 + $0xf0] sm:$0xff] %v2635_v59 }
 0x227   : > { %2314 = vst [vmem:[%s4148_s20 + $0xf8] sm:$0xff] %v2637_v47 }
 0x228   : > { %3322 = shalt.err (!%p3319_p7)
}
 0x229   : > { %s3323_s10 = scalar_lea.hbm %s4212_s16, 4096  ;;  %s3327_s22 = scalar_lea.hbm %s4263_s3, 12288 }
 0x22a   : > { %p3324_p9 = scmp.ne.s32.totalorder %s4212_s16, %s3323_s10  ;;  %p3328_p5 = scmp.lt.u32.totalorder %s4212_s16, %s4263_s3 }
 0x22b   : > { %p3329_p10 = scmp.lt.u32.totalorder %s3327_s22, %s3323_s10  ;;  %p3331_p1 = scmp.lt.u32.totalorder %s3323_s10, %s4212_s16 }
 0x22c   : > { %p3325_p12 = pnand %p3324_p9, %p3523_p4 }
 0x22d   : > { %p3330_p11 = por %p3329_p10, %p3328_p5 }
 0x22e   : > { %p3326_p0 = pneg %p3325_p12 }
 0x22f   : > { %p3332_p2 = por %p3331_p1, %p3330_p11 }
 0x231   : > { %p3333_p6 = pnand %p3332_p2, %p3326_p0 }
 0x233   : > { %3336 = shalt.err (!%p3333_p6)
}
 0x234   : > { %s3389_s18 = smov 256   ;;  %s3390_s20 = smov 16  }
 0x235   : > { %2712 = dma.vmem_to_hbm [thread:$0]  (%p3523_p4), %s4214_s24, 4096, %s4212_s16, %s2316_s23, %s3389_s18, %s3389_s18, %s3390_s20  }
 0x236 PF: > { %p2734_p8 = scmp.ge.s32.totalorder %s3379_s15, 2  ;;  %s2345_s17 = sand.u32 1, %s3367_s12  }
 0x237   : > { %p4278_p13 = scmp.ne.s32.totalorder %s4268_s19, 0  ;;  %s2346_s26 = scalar_lea.sflag [#allocation4], %s2345_s17 }
 0x239   : > { %p2726_p3 = pnand %p2734_p8, %p4278_p13 }
 0x23b   : > { %3362 = dma.done.wait (!%p2726_p3), %s2346_s26, 4096  }
 0x23c   : > { %3364 = vsyncadd (!%p2726_p3), %s2346_s26, 4294963200  ;;  %p17_p7 = scmp.ge.s32.totalorder %s3513_s4, 5   ;;  %s4279_s12 = smov %s3371_s13 }
 0x23d   : > { %s4280_s13 = smov %s3375_s14  ;;  %s4281_s14 = smov %s3529_s7 }
 0x23e   : > { %s4282_s15 = smov %s3513_s4  ;;  %19 = sbr.rel (!%p17_p7) target bundleno = 6 (0x6), region = 85 }
 0x245   :  { %2351 = vsyncpa [#allocation3], 1 }
 0x246   :  { %2353 = vsyncpa [#allocation3 + $0x1], 1 }
 0x247   :  { %2354 = vsyncpa [#allocation6], 1 }
 0x248   :  { %2355 = vsyncpa [#allocation4], 1 }
 0x249   :  { %2357 = vsyncpa [#allocation4 + $0x1], 1 }

</bundles_post_ra>
